<compile_context>
chip_gen: v5e
topology: v5e:2x2
jax: 0.10.0
libtpu: 0.0.40
codegen_flags: <defaults>
</compile_context>

<pallas_src>
import functools
import math

import jax
import jax.numpy as jnp
from jax import lax
from jax.experimental import pallas as pl
from jax.experimental.pallas import tpu as pltpu


def _hash_u32(x):
    """lowbias32-style integer mixer; input/output uint32 arrays."""
    x = x ^ (x >> jnp.uint32(16))
    x = x * jnp.uint32(0x7FEB352D)
    x = x ^ (x >> jnp.uint32(15))
    x = x * jnp.uint32(0x846CA68B)
    x = x ^ (x >> jnp.uint32(16))
    return x


def uptrans_kernel(x_ref, skip_ref, bn1_ref, wup_ref, t2a_ref, bn2b_ref,
                   w2a_ref, w2b_ref, o_ref, *, drop_rate, seed,
                   spatial_size, tile_cols):
    # x_ref:    (C_in, T)        spatial in lanes, channels in sublanes
    # skip_ref: (8, C_s, T)      parity-blocked skip features
    # bn1_ref:  (C_in, 2)        [:,0]=scale, [:,1]=shift (BN1 folded)
    # wup_ref:  (8, C_in, C_in)  per-parity transpose-conv weights * bn2 scale
    # t2a_ref:  (C_in, 1)        BN2 shift for the up-path channels
    # bn2b_ref: (C_s, 2)         BN2 scale/shift for the skip channels
    # w2a_ref:  (C_out, C_in)    1x1 conv weights (up-path part)
    # w2b_ref:  (C_out, C_s)     1x1 conv weights (skip part)
    # o_ref:    (8, C_out, T)    parity-blocked output
    n = pl.program_id(0)
    s_blk = pl.program_id(1)

    x = x_ref[...]                                   # (C_in, T) f32
    s1 = bn1_ref[:, 0:1]
    t1 = bn1_ref[:, 1:2]
    y = jnp.maximum(x * s1 + t1, 0.0)                # BN1 + ReLU

    t2a = t2a_ref[...]                               # (C_in, 1)
    s2b = bn2b_ref[:, 0:1]                           # (C_s, 1)
    t2b = bn2b_ref[:, 1:2]
    w2a = w2a_ref[...]                               # (C_out, C_in)
    w2b = w2b_ref[...]                               # (C_out, C_s)

    use_dropout = drop_rate > 0.0
    if use_dropout:
        inv_keep = 1.0 / (1.0 - drop_rate)
        keep_thr = jnp.uint32(
            min(int(round((1.0 - drop_rate) * 4294967296.0)), 4294967295))
        shp = (y.shape[0], y.shape[1])
        row = lax.broadcasted_iota(jnp.int32, shp, 0).astype(jnp.uint32)
        col = lax.broadcasted_iota(jnp.int32, shp, 1).astype(jnp.uint32)
        gcol = col + s_blk.astype(jnp.uint32) * jnp.uint32(tile_cols)
        elem = row * jnp.uint32(spatial_size) + gcol
        base = (jnp.uint32(seed)
                + n.astype(jnp.uint32) * jnp.uint32(0x85EBCA77))

    # One iteration per output parity p = kd*4 + kh*2 + kw (static unroll).
    for p in range(8):
        # Transpose-conv contribution for this parity (BN2 scale pre-folded).
        u = jnp.dot(wup_ref[p], y,
                    preferred_element_type=jnp.float32,
                    precision=lax.Precision.HIGHEST)          # (C_in, T)
        if use_dropout:
            bits = _hash_u32(
                elem ^ (base + jnp.uint32(p) * jnp.uint32(0x9E3779B9)))
            u = jnp.where(bits < keep_thr, u * inv_keep, 0.0)
        z1 = jnp.maximum(u + t2a, 0.0)                        # BN2a + ReLU

        s = skip_ref[p]                                       # (C_s, T)
        z2 = jnp.maximum(s * s2b + t2b, 0.0)                  # BN2b + ReLU

        o = jnp.dot(w2a, z1, preferred_element_type=jnp.float32,
                    precision=lax.Precision.HIGHEST)
        o = o + jnp.dot(w2b, z2, preferred_element_type=jnp.float32,
                        precision=lax.Precision.HIGHEST)
        o_ref[p] = o.astype(o_ref.dtype)


def uptrans_forward(x, skipx,
                    gamma1, beta1, mean1, var1,
                    w_up,
                    gamma2, beta2, mean2, var2,
                    w_conv2,
                    drop_rate, eps=1e-5, tile_spatial=2048, seed=0):
    """x: (N, C_in, D, H, W);  skipx: (N, C_s, 2D, 2H, 2W);
    w_up: (C_in, C_in, 2, 2, 2) ConvTranspose3d weight;
    w_conv2: (C_out, C_in + C_s, 1, 1, 1) Conv3d weight (no bias)."""
    f32 = jnp.float32
    N, C_in, D, H, W = x.shape
    Ns, C_s, D2, H2, W2 = skipx.shape
    assert Ns == N and D2 == 2 * D and H2 == 2 * H and W2 == 2 * W
    C_cat = C_in + C_s
    C_out = w_conv2.shape[0]
    S = D * H * W

    # Fold BN (eval-mode running stats) into per-channel scale/shift.
    s1 = (gamma1 / jnp.sqrt(var1 + eps)).astype(f32)
    t1 = (beta1 - mean1 * s1).astype(f32)
    s2 = (gamma2 / jnp.sqrt(var2 + eps)).astype(f32)
    t2 = (beta2 - mean2 * s2).astype(f32)
    s2a, s2b = s2[:C_in], s2[C_in:]
    t2a, t2b = t2[:C_in], t2[C_in:]

    bn1 = jnp.stack([s1, t1], axis=1)                 # (C_in, 2)
    bn2b = jnp.stack([s2b, t2b], axis=1)              # (C_s, 2)
    t2a_col = t2a.reshape(C_in, 1)

    # Per-parity transpose-conv weights, with BN2's up-path scale folded in
    # (dropout is an elementwise scale so it commutes with s2a).
    wup = jnp.transpose(w_up.astype(f32), (2, 3, 4, 1, 0)).reshape(8, C_in, C_in)
    wup = wup * s2a[None, :, None]

    w2 = w_conv2.reshape(C_out, C_cat).astype(f32)
    w2a = w2[:, :C_in]
    w2b = w2[:, C_in:]

    # Native layout, no transpose: (N, C_in, D*H*W).
    x2 = x.astype(f32).reshape(N, C_in, S)
    # De-interleave skip into parity-blocked layout (n, p, c, dhw).
    skip_b = (skipx.astype(f32)
              .reshape(N, C_s, D, 2, H, 2, W, 2)
              .transpose(0, 3, 5, 7, 1, 2, 4, 6)
              .reshape(N, 8, C_s, S))

    # Spatial tile: lane-dense (multiple of 128) and as large as practical.
    t = S if S <= tile_spatial else max((tile_spatial // 128) * 128, 128)
    grid = (N, pl.cdiv(S, t))

    kernel = functools.partial(
        uptrans_kernel, drop_rate=float(drop_rate), seed=int(seed),
        spatial_size=S, tile_cols=t)

    flops = 2 * N * S * 8 * (C_in * C_in + C_out * C_in + C_out * C_s)
    bytes_accessed = 4 * N * S * (C_in + 8 * C_s + 8 * C_out)

    out_b = pl.pallas_call(
        kernel,
        out_shape=jax.ShapeDtypeStruct((N, 8, C_out, S), x.dtype),
        grid=grid,
        in_specs=[
            pl.BlockSpec((None, C_in, t), lambda n, s: (n, 0, s)),
            pl.BlockSpec((None, 8, C_s, t), lambda n, s: (n, 0, 0, s)),
            pl.BlockSpec((C_in, 2), lambda n, s: (0, 0)),
            pl.BlockSpec((8, C_in, C_in), lambda n, s: (0, 0, 0)),
            pl.BlockSpec((C_in, 1), lambda n, s: (0, 0)),
            pl.BlockSpec((C_s, 2), lambda n, s: (0, 0)),
            pl.BlockSpec((C_out, C_in), lambda n, s: (0, 0)),
            pl.BlockSpec((C_out, C_s), lambda n, s: (0, 0)),
        ],
        out_specs=pl.BlockSpec((None, 8, C_out, t), lambda n, s: (n, 0, 0, s)),
        compiler_params=pltpu.CompilerParams(
            dimension_semantics=("parallel", "parallel"),
            vmem_limit_bytes=48 * 1024 * 1024),
        cost_estimate=pl.CostEstimate(flops=flops, transcendentals=0,
                                      bytes_accessed=bytes_accessed),
    )(x2, skip_b, bn1, wup, t2a_col, bn2b, w2a, w2b)

    # Interleave parity-blocked output back to (N, C_out, 2D, 2H, 2W).
    out = (out_b.reshape(N, 2, 2, 2, C_out, D, H, W)
           .transpose(0, 4, 5, 1, 6, 2, 7, 3)
           .reshape(N, C_out, 2 * D, 2 * H, 2 * W))
    return out


if __name__ == "__main__":
    key = jax.random.PRNGKey(0)
    ks = jax.random.split(key, 12)

    # Small shapes consistent with the module.
    N, C_in, C_skip, C_out = 2, 4, 4, 8
    D = H = W = 8
    C_cat = C_in + C_skip
    drop_rate = 0.25
    eps = 1e-5

    x = jax.random.normal(ks[0], (N, C_in, D, H, W), dtype=jnp.float32)
    skipx = jax.random.normal(ks[1], (N, C_skip, 2 * D, 2 * H, 2 * W),
                              dtype=jnp.float32)

    b_up = 1.0 / math.sqrt(C_in * 8)
    w_up = jax.random.uniform(ks[2], (C_in, C_in, 2, 2, 2),
                              minval=-b_up, maxval=b_up, dtype=jnp.float32)
    b2 = 1.0 / math.sqrt(C_cat)
    w_conv2 = jax.random.uniform(ks[3], (C_out, C_cat, 1, 1, 1),
                                 minval=-b2, maxval=b2, dtype=jnp.float32)

    gamma1 = 1.0 + 0.1 * jax.random.normal(ks[4], (C_in,), dtype=jnp.float32)
    beta1 = 0.1 * jax.random.normal(ks[5], (C_in,), dtype=jnp.float32)
    mean1 = 0.1 * jax.random.normal(ks[6], (C_in,), dtype=jnp.float32)
    var1 = jnp.abs(1.0 + 0.1 * jax.random.normal(ks[7], (C_in,), dtype=jnp.float32))

    gamma2 = 1.0 + 0.1 * jax.random.normal(ks[8], (C_cat,), dtype=jnp.float32)
    beta2 = 0.1 * jax.random.normal(ks[9], (C_cat,), dtype=jnp.float32)
    mean2 = 0.1 * jax.random.normal(ks[10], (C_cat,), dtype=jnp.float32)
    var2 = jnp.abs(1.0 + 0.1 * jax.random.normal(ks[11], (C_cat,), dtype=jnp.float32))

    # --- check against a pure-JAX reference with dropout disabled ---
    out0 = uptrans_forward(x, skipx, gamma1, beta1, mean1, var1, w_up,
                           gamma2, beta2, mean2, var2, w_conv2, drop_rate=0.0)

    s1 = gamma1 / jnp.sqrt(var1 + eps)
    t1 = beta1 - mean1 * s1
    y = jnp.maximum(x * s1[None, :, None, None, None]
                    + t1[None, :, None, None, None], 0.0)
    up = jnp.einsum('ncdhw,coxyz->nodxhywz', y, w_up,
                    precision=lax.Precision.HIGHEST)
    up = up.reshape(N, C_in, 2 * D, 2 * H, 2 * W)
    cat = jnp.concatenate([up, skipx], axis=1)
    s2 = gamma2 / jnp.sqrt(var2 + eps)
    t2 = beta2 - mean2 * s2
    z = jnp.maximum(cat * s2[None, :, None, None, None]
                    + t2[None, :, None, None, None], 0.0)
    ref = jnp.einsum('ncdhw,oc->nodhw', z, w_conv2.reshape(C_out, C_cat),
                     precision=lax.Precision.HIGHEST)

    assert out0.shape == ref.shape
    assert bool(jnp.allclose(out0, ref, atol=1e-3, rtol=1e-3)), \
        float(jnp.max(jnp.abs(out0 - ref)))

    # --- run with dropout active (training semantics of F.dropout) ---
    out = uptrans_forward(x, skipx, gamma1, beta1, mean1, var1, w_up,
                          gamma2, beta2, mean2, var2, w_conv2,
                          drop_rate=drop_rate)
    out = jax.block_until_ready(out)
    assert out.shape == (N, C_out, 2 * D, 2 * H, 2 * W)
    assert bool(jnp.all(jnp.isfinite(out)))
    assert not bool(jnp.allclose(out, out0))  # dropout actually did something
    print("KERNEL_OK")
</pallas_src>

<mosaic_0001>
module attributes {stable_mosaic.version = 11 : i64} {
  func.func @uptrans_kernel(%arg0: i32, %arg1: i32, %arg2: memref<1x4x512xf32, #tpu.memory_space<vmem>>, %arg3: memref<1x8x4x512xf32, #tpu.memory_space<vmem>>, %arg4: memref<4x2xf32, #tpu.memory_space<vmem>>, %arg5: memref<8x4x4xf32, #tpu.memory_space<vmem>>, %arg6: memref<4x1xf32, #tpu.memory_space<vmem>>, %arg7: memref<4x2xf32, #tpu.memory_space<vmem>>, %arg8: memref<8x4xf32, #tpu.memory_space<vmem>>, %arg9: memref<8x4xf32, #tpu.memory_space<vmem>>, %arg10: memref<1x8x8x512xf32, #tpu.memory_space<vmem>>) attributes {dimension_semantics = [#tpu.dimension_semantics<parallel>, #tpu.dimension_semantics<parallel>], iteration_bounds = array<i64: 2, 1>, scalar_prefetch = 0 : i64, scratch_operands = 0 : i64, tpu.core_type = #tpu.core_type<tc>, window_params = [{transform_indices = @transform_0, window_bounds = array<i64: 1, 4, 512>}, {transform_indices = @transform_1, window_bounds = array<i64: 1, 8, 4, 512>}, {pipeline_mode = #tpu.pipeline_mode<synchronous>, transform_indices = @transform_2, window_bounds = array<i64: 4, 2>}, {pipeline_mode = #tpu.pipeline_mode<synchronous>, transform_indices = @transform_3, window_bounds = array<i64: 8, 4, 4>}, {pipeline_mode = #tpu.pipeline_mode<synchronous>, transform_indices = @transform_4, window_bounds = array<i64: 4, 1>}, {pipeline_mode = #tpu.pipeline_mode<synchronous>, transform_indices = @transform_5, window_bounds = array<i64: 4, 2>}, {pipeline_mode = #tpu.pipeline_mode<synchronous>, transform_indices = @transform_6, window_bounds = array<i64: 8, 4>}, {pipeline_mode = #tpu.pipeline_mode<synchronous>, transform_indices = @transform_7, window_bounds = array<i64: 8, 4>}, {transform_indices = @transform_8, window_bounds = array<i64: 1, 8, 8, 512>}]} {
    %c0 = arith.constant 0 : index
    %c0_0 = arith.constant 0 : index
    %c0_1 = arith.constant 0 : index
    %0 = vector.load %arg2[%c0, %c0_0, %c0_1] : memref<1x4x512xf32, #tpu.memory_space<vmem>>, vector<1x4x512xf32>
    %1 = vector.shape_cast %0 : vector<1x4x512xf32> to vector<4x512xf32>
    %c0_2 = arith.constant 0 : index
    %c0_3 = arith.constant 0 : index
    %2 = vector.load %arg4[%c0_2, %c0_3] : memref<4x2xf32, #tpu.memory_space<vmem>>, vector<4x1xf32>
    %c0_4 = arith.constant 0 : index
    %c1 = arith.constant 1 : index
    %3 = vector.load %arg4[%c0_4, %c1] : memref<4x2xf32, #tpu.memory_space<vmem>>, vector<4x1xf32>
    %4 = vector.broadcast %2 : vector<4x1xf32> to vector<4x512xf32>
    %5 = arith.mulf %1, %4 : vector<4x512xf32>
    %6 = vector.broadcast %3 : vector<4x1xf32> to vector<4x512xf32>
    %7 = arith.addf %5, %6 : vector<4x512xf32>
    %cst = arith.constant 0.000000e+00 : f32
    %8 = vector.broadcast %cst : f32 to vector<4x512xf32>
    %9 = arith.maximumf %7, %8 : vector<4x512xf32>
    %c0_5 = arith.constant 0 : index
    %c0_6 = arith.constant 0 : index
    %10 = vector.load %arg6[%c0_5, %c0_6] : memref<4x1xf32, #tpu.memory_space<vmem>>, vector<4x1xf32>
    %c0_7 = arith.constant 0 : index
    %c0_8 = arith.constant 0 : index
    %11 = vector.load %arg7[%c0_7, %c0_8] : memref<4x2xf32, #tpu.memory_space<vmem>>, vector<4x1xf32>
    %c0_9 = arith.constant 0 : index
    %c1_10 = arith.constant 1 : index
    %12 = vector.load %arg7[%c0_9, %c1_10] : memref<4x2xf32, #tpu.memory_space<vmem>>, vector<4x1xf32>
    %c0_11 = arith.constant 0 : index
    %c0_12 = arith.constant 0 : index
    %13 = vector.load %arg8[%c0_11, %c0_12] : memref<8x4xf32, #tpu.memory_space<vmem>>, vector<8x4xf32>
    %c0_13 = arith.constant 0 : index
    %c0_14 = arith.constant 0 : index
    %14 = vector.load %arg9[%c0_13, %c0_14] : memref<8x4xf32, #tpu.memory_space<vmem>>, vector<8x4xf32>
    %c0_15 = arith.constant 0 : index
    %c0_16 = arith.constant 0 : index
    %c0_17 = arith.constant 0 : index
    %15 = vector.load %arg5[%c0_15, %c0_16, %c0_17] : memref<8x4x4xf32, #tpu.memory_space<vmem>>, vector<1x4x4xf32>
    %16 = vector.shape_cast %15 : vector<1x4x4xf32> to vector<4x4xf32>
    %cst_18 = arith.constant dense<0.000000e+00> : vector<4x512xf32>
    %17 = tpu.matmul %16, %9, %cst_18 {dimension_numbers = #tpu.dot_dimension_numbers<[1], [0], [0], [1], [0, 0, 1, 1], [], []>, precision = #tpu.contract_precision<fp32>} : vector<4x4xf32>, vector<4x512xf32>, vector<4x512xf32> -> vector<4x512xf32>
    %18 = vector.broadcast %10 : vector<4x1xf32> to vector<4x512xf32>
    %19 = arith.addf %17, %18 : vector<4x512xf32>
    %cst_19 = arith.constant 0.000000e+00 : f32
    %20 = vector.broadcast %cst_19 : f32 to vector<4x512xf32>
    %21 = arith.maximumf %19, %20 : vector<4x512xf32>
    %c0_20 = arith.constant 0 : index
    %c0_21 = arith.constant 0 : index
    %c0_22 = arith.constant 0 : index
    %c0_23 = arith.constant 0 : index
    %22 = vector.load %arg3[%c0_20, %c0_21, %c0_22, %c0_23] : memref<1x8x4x512xf32, #tpu.memory_space<vmem>>, vector<1x1x4x512xf32>
    %23 = vector.shape_cast %22 : vector<1x1x4x512xf32> to vector<4x512xf32>
    %24 = vector.broadcast %11 : vector<4x1xf32> to vector<4x512xf32>
    %25 = arith.mulf %23, %24 : vector<4x512xf32>
    %26 = vector.broadcast %12 : vector<4x1xf32> to vector<4x512xf32>
    %27 = arith.addf %25, %26 : vector<4x512xf32>
    %cst_24 = arith.constant 0.000000e+00 : f32
    %28 = vector.broadcast %cst_24 : f32 to vector<4x512xf32>
    %29 = arith.maximumf %27, %28 : vector<4x512xf32>
    %cst_25 = arith.constant dense<0.000000e+00> : vector<8x512xf32>
    %30 = tpu.matmul %13, %21, %cst_25 {dimension_numbers = #tpu.dot_dimension_numbers<[1], [0], [0], [1], [0, 0, 1, 1], [], []>, precision = #tpu.contract_precision<fp32>} : vector<8x4xf32>, vector<4x512xf32>, vector<8x512xf32> -> vector<8x512xf32>
    %cst_26 = arith.constant dense<0.000000e+00> : vector<8x512xf32>
    %31 = tpu.matmul %14, %29, %cst_26 {dimension_numbers = #tpu.dot_dimension_numbers<[1], [0], [0], [1], [0, 0, 1, 1], [], []>, precision = #tpu.contract_precision<fp32>} : vector<8x4xf32>, vector<4x512xf32>, vector<8x512xf32> -> vector<8x512xf32>
    %32 = arith.addf %30, %31 : vector<8x512xf32>
    %c0_27 = arith.constant 0 : index
    %c0_28 = arith.constant 0 : index
    %c0_29 = arith.constant 0 : index
    %c0_30 = arith.constant 0 : index
    %33 = vector.load %arg10[%c0_27, %c0_28, %c0_29, %c0_30] : memref<1x8x8x512xf32, #tpu.memory_space<vmem>>, vector<1x1x8x512xf32>
    %34 = vector.shape_cast %33 : vector<1x1x8x512xf32> to vector<8x512xf32>
    %35 = vector.shape_cast %32 : vector<8x512xf32> to vector<1x1x8x512xf32>
    tpu.vector_store %arg10[%c0_27, %c0_28, %c0_29, %c0_30], %35 {strides = array<i32>} : memref<1x8x8x512xf32, #tpu.memory_space<vmem>>, vector<1x1x8x512xf32>,
    %c1_31 = arith.constant 1 : index
    %c0_32 = arith.constant 0 : index
    %c0_33 = arith.constant 0 : index
    %36 = vector.load %arg5[%c1_31, %c0_32, %c0_33] : memref<8x4x4xf32, #tpu.memory_space<vmem>>, vector<1x4x4xf32>
    %37 = vector.shape_cast %36 : vector<1x4x4xf32> to vector<4x4xf32>
    %cst_34 = arith.constant dense<0.000000e+00> : vector<4x512xf32>
    %38 = tpu.matmul %37, %9, %cst_34 {dimension_numbers = #tpu.dot_dimension_numbers<[1], [0], [0], [1], [0, 0, 1, 1], [], []>, precision = #tpu.contract_precision<fp32>} : vector<4x4xf32>, vector<4x512xf32>, vector<4x512xf32> -> vector<4x512xf32>
    %39 = vector.broadcast %10 : vector<4x1xf32> to vector<4x512xf32>
    %40 = arith.addf %38, %39 : vector<4x512xf32>
    %cst_35 = arith.constant 0.000000e+00 : f32
    %41 = vector.broadcast %cst_35 : f32 to vector<4x512xf32>
    %42 = arith.maximumf %40, %41 : vector<4x512xf32>
    %c0_36 = arith.constant 0 : index
    %c1_37 = arith.constant 1 : index
    %c0_38 = arith.constant 0 : index
    %c0_39 = arith.constant 0 : index
    %43 = vector.load %arg3[%c0_36, %c1_37, %c0_38, %c0_39] : memref<1x8x4x512xf32, #tpu.memory_space<vmem>>, vector<1x1x4x512xf32>
    %44 = vector.shape_cast %43 : vector<1x1x4x512xf32> to vector<4x512xf32>
    %45 = vector.broadcast %11 : vector<4x1xf32> to vector<4x512xf32>
    %46 = arith.mulf %44, %45 : vector<4x512xf32>
    %47 = vector.broadcast %12 : vector<4x1xf32> to vector<4x512xf32>
    %48 = arith.addf %46, %47 : vector<4x512xf32>
    %cst_40 = arith.constant 0.000000e+00 : f32
    %49 = vector.broadcast %cst_40 : f32 to vector<4x512xf32>
    %50 = arith.maximumf %48, %49 : vector<4x512xf32>
    %cst_41 = arith.constant dense<0.000000e+00> : vector<8x512xf32>
    %51 = tpu.matmul %13, %42, %cst_41 {dimension_numbers = #tpu.dot_dimension_numbers<[1], [0], [0], [1], [0, 0, 1, 1], [], []>, precision = #tpu.contract_precision<fp32>} : vector<8x4xf32>, vector<4x512xf32>, vector<8x512xf32> -> vector<8x512xf32>
    %cst_42 = arith.constant dense<0.000000e+00> : vector<8x512xf32>
    %52 = tpu.matmul %14, %50, %cst_42 {dimension_numbers = #tpu.dot_dimension_numbers<[1], [0], [0], [1], [0, 0, 1, 1], [], []>, precision = #tpu.contract_precision<fp32>} : vector<8x4xf32>, vector<4x512xf32>, vector<8x512xf32> -> vector<8x512xf32>
    %53 = arith.addf %51, %52 : vector<8x512xf32>
    %c0_43 = arith.constant 0 : index
    %c1_44 = arith.constant 1 : index
    %c0_45 = arith.constant 0 : index
    %c0_46 = arith.constant 0 : index
    %54 = vector.load %arg10[%c0_43, %c1_44, %c0_45, %c0_46] : memref<1x8x8x512xf32, #tpu.memory_space<vmem>>, vector<1x1x8x512xf32>
    %55 = vector.shape_cast %54 : vector<1x1x8x512xf32> to vector<8x512xf32>
    %56 = vector.shape_cast %53 : vector<8x512xf32> to vector<1x1x8x512xf32>
    tpu.vector_store %arg10[%c0_43, %c1_44, %c0_45, %c0_46], %56 {strides = array<i32>} : memref<1x8x8x512xf32, #tpu.memory_space<vmem>>, vector<1x1x8x512xf32>,
    %c2 = arith.constant 2 : index
    %c0_47 = arith.constant 0 : index
    %c0_48 = arith.constant 0 : index
    %57 = vector.load %arg5[%c2, %c0_47, %c0_48] : memref<8x4x4xf32, #tpu.memory_space<vmem>>, vector<1x4x4xf32>
    %58 = vector.shape_cast %57 : vector<1x4x4xf32> to vector<4x4xf32>
    %cst_49 = arith.constant dense<0.000000e+00> : vector<4x512xf32>
    %59 = tpu.matmul %58, %9, %cst_49 {dimension_numbers = #tpu.dot_dimension_numbers<[1], [0], [0], [1], [0, 0, 1, 1], [], []>, precision = #tpu.contract_precision<fp32>} : vector<4x4xf32>, vector<4x512xf32>, vector<4x512xf32> -> vector<4x512xf32>
    %60 = vector.broadcast %10 : vector<4x1xf32> to vector<4x512xf32>
    %61 = arith.addf %59, %60 : vector<4x512xf32>
    %cst_50 = arith.constant 0.000000e+00 : f32
    %62 = vector.broadcast %cst_50 : f32 to vector<4x512xf32>
    %63 = arith.maximumf %61, %62 : vector<4x512xf32>
    %c0_51 = arith.constant 0 : index
    %c2_52 = arith.constant 2 : index
    %c0_53 = arith.constant 0 : index
    %c0_54 = arith.constant 0 : index
    %64 = vector.load %arg3[%c0_51, %c2_52, %c0_53, %c0_54] : memref<1x8x4x512xf32, #tpu.memory_space<vmem>>, vector<1x1x4x512xf32>
    %65 = vector.shape_cast %64 : vector<1x1x4x512xf32> to vector<4x512xf32>
    %66 = vector.broadcast %11 : vector<4x1xf32> to vector<4x512xf32>
    %67 = arith.mulf %65, %66 : vector<4x512xf32>
    %68 = vector.broadcast %12 : vector<4x1xf32> to vector<4x512xf32>
    %69 = arith.addf %67, %68 : vector<4x512xf32>
    %cst_55 = arith.constant 0.000000e+00 : f32
    %70 = vector.broadcast %cst_55 : f32 to vector<4x512xf32>
    %71 = arith.maximumf %69, %70 : vector<4x512xf32>
    %cst_56 = arith.constant dense<0.000000e+00> : vector<8x512xf32>
    %72 = tpu.matmul %13, %63, %cst_56 {dimension_numbers = #tpu.dot_dimension_numbers<[1], [0], [0], [1], [0, 0, 1, 1], [], []>, precision = #tpu.contract_precision<fp32>} : vector<8x4xf32>, vector<4x512xf32>, vector<8x512xf32> -> vector<8x512xf32>
    %cst_57 = arith.constant dense<0.000000e+00> : vector<8x512xf32>
    %73 = tpu.matmul %14, %71, %cst_57 {dimension_numbers = #tpu.dot_dimension_numbers<[1], [0], [0], [1], [0, 0, 1, 1], [], []>, precision = #tpu.contract_precision<fp32>} : vector<8x4xf32>, vector<4x512xf32>, vector<8x512xf32> -> vector<8x512xf32>
    %74 = arith.addf %72, %73 : vector<8x512xf32>
    %c0_58 = arith.constant 0 : index
    %c2_59 = arith.constant 2 : index
    %c0_60 = arith.constant 0 : index
    %c0_61 = arith.constant 0 : index
    %75 = vector.load %arg10[%c0_58, %c2_59, %c0_60, %c0_61] : memref<1x8x8x512xf32, #tpu.memory_space<vmem>>, vector<1x1x8x512xf32>
    %76 = vector.shape_cast %75 : vector<1x1x8x512xf32> to vector<8x512xf32>
    %77 = vector.shape_cast %74 : vector<8x512xf32> to vector<1x1x8x512xf32>
    tpu.vector_store %arg10[%c0_58, %c2_59, %c0_60, %c0_61], %77 {strides = array<i32>} : memref<1x8x8x512xf32, #tpu.memory_space<vmem>>, vector<1x1x8x512xf32>,
    %c3 = arith.constant 3 : index
    %c0_62 = arith.constant 0 : index
    %c0_63 = arith.constant 0 : index
    %78 = vector.load %arg5[%c3, %c0_62, %c0_63] : memref<8x4x4xf32, #tpu.memory_space<vmem>>, vector<1x4x4xf32>
    %79 = vector.shape_cast %78 : vector<1x4x4xf32> to vector<4x4xf32>
    %cst_64 = arith.constant dense<0.000000e+00> : vector<4x512xf32>
    %80 = tpu.matmul %79, %9, %cst_64 {dimension_numbers = #tpu.dot_dimension_numbers<[1], [0], [0], [1], [0, 0, 1, 1], [], []>, precision = #tpu.contract_precision<fp32>} : vector<4x4xf32>, vector<4x512xf32>, vector<4x512xf32> -> vector<4x512xf32>
    %81 = vector.broadcast %10 : vector<4x1xf32> to vector<4x512xf32>
    %82 = arith.addf %80, %81 : vector<4x512xf32>
    %cst_65 = arith.constant 0.000000e+00 : f32
    %83 = vector.broadcast %cst_65 : f32 to vector<4x512xf32>
    %84 = arith.maximumf %82, %83 : vector<4x512xf32>
    %c0_66 = arith.constant 0 : index
    %c3_67 = arith.constant 3 : index
    %c0_68 = arith.constant 0 : index
    %c0_69 = arith.constant 0 : index
    %85 = vector.load %arg3[%c0_66, %c3_67, %c0_68, %c0_69] : memref<1x8x4x512xf32, #tpu.memory_space<vmem>>, vector<1x1x4x512xf32>
    %86 = vector.shape_cast %85 : vector<1x1x4x512xf32> to vector<4x512xf32>
    %87 = vector.broadcast %11 : vector<4x1xf32> to vector<4x512xf32>
    %88 = arith.mulf %86, %87 : vector<4x512xf32>
    %89 = vector.broadcast %12 : vector<4x1xf32> to vector<4x512xf32>
    %90 = arith.addf %88, %89 : vector<4x512xf32>
    %cst_70 = arith.constant 0.000000e+00 : f32
    %91 = vector.broadcast %cst_70 : f32 to vector<4x512xf32>
    %92 = arith.maximumf %90, %91 : vector<4x512xf32>
    %cst_71 = arith.constant dense<0.000000e+00> : vector<8x512xf32>
    %93 = tpu.matmul %13, %84, %cst_71 {dimension_numbers = #tpu.dot_dimension_numbers<[1], [0], [0], [1], [0, 0, 1, 1], [], []>, precision = #tpu.contract_precision<fp32>} : vector<8x4xf32>, vector<4x512xf32>, vector<8x512xf32> -> vector<8x512xf32>
    %cst_72 = arith.constant dense<0.000000e+00> : vector<8x512xf32>
    %94 = tpu.matmul %14, %92, %cst_72 {dimension_numbers = #tpu.dot_dimension_numbers<[1], [0], [0], [1], [0, 0, 1, 1], [], []>, precision = #tpu.contract_precision<fp32>} : vector<8x4xf32>, vector<4x512xf32>, vector<8x512xf32> -> vector<8x512xf32>
    %95 = arith.addf %93, %94 : vector<8x512xf32>
    %c0_73 = arith.constant 0 : index
    %c3_74 = arith.constant 3 : index
    %c0_75 = arith.constant 0 : index
    %c0_76 = arith.constant 0 : index
    %96 = vector.load %arg10[%c0_73, %c3_74, %c0_75, %c0_76] : memref<1x8x8x512xf32, #tpu.memory_space<vmem>>, vector<1x1x8x512xf32>
    %97 = vector.shape_cast %96 : vector<1x1x8x512xf32> to vector<8x512xf32>
    %98 = vector.shape_cast %95 : vector<8x512xf32> to vector<1x1x8x512xf32>
    tpu.vector_store %arg10[%c0_73, %c3_74, %c0_75, %c0_76], %98 {strides = array<i32>} : memref<1x8x8x512xf32, #tpu.memory_space<vmem>>, vector<1x1x8x512xf32>,
    %c4 = arith.constant 4 : index
    %c0_77 = arith.constant 0 : index
    %c0_78 = arith.constant 0 : index
    %99 = vector.load %arg5[%c4, %c0_77, %c0_78] : memref<8x4x4xf32, #tpu.memory_space<vmem>>, vector<1x4x4xf32>
    %100 = vector.shape_cast %99 : vector<1x4x4xf32> to vector<4x4xf32>
    %cst_79 = arith.constant dense<0.000000e+00> : vector<4x512xf32>
    %101 = tpu.matmul %100, %9, %cst_79 {dimension_numbers = #tpu.dot_dimension_numbers<[1], [0], [0], [1], [0, 0, 1, 1], [], []>, precision = #tpu.contract_precision<fp32>} : vector<4x4xf32>, vector<4x512xf32>, vector<4x512xf32> -> vector<4x512xf32>
    %102 = vector.broadcast %10 : vector<4x1xf32> to vector<4x512xf32>
    %103 = arith.addf %101, %102 : vector<4x512xf32>
    %cst_80 = arith.constant 0.000000e+00 : f32
    %104 = vector.broadcast %cst_80 : f32 to vector<4x512xf32>
    %105 = arith.maximumf %103, %104 : vector<4x512xf32>
    %c0_81 = arith.constant 0 : index
    %c4_82 = arith.constant 4 : index
    %c0_83 = arith.constant 0 : index
    %c0_84 = arith.constant 0 : index
    %106 = vector.load %arg3[%c0_81, %c4_82, %c0_83, %c0_84] : memref<1x8x4x512xf32, #tpu.memory_space<vmem>>, vector<1x1x4x512xf32>
    %107 = vector.shape_cast %106 : vector<1x1x4x512xf32> to vector<4x512xf32>
    %108 = vector.broadcast %11 : vector<4x1xf32> to vector<4x512xf32>
    %109 = arith.mulf %107, %108 : vector<4x512xf32>
    %110 = vector.broadcast %12 : vector<4x1xf32> to vector<4x512xf32>
    %111 = arith.addf %109, %110 : vector<4x512xf32>
    %cst_85 = arith.constant 0.000000e+00 : f32
    %112 = vector.broadcast %cst_85 : f32 to vector<4x512xf32>
    %113 = arith.maximumf %111, %112 : vector<4x512xf32>
    %cst_86 = arith.constant dense<0.000000e+00> : vector<8x512xf32>
    %114 = tpu.matmul %13, %105, %cst_86 {dimension_numbers = #tpu.dot_dimension_numbers<[1], [0], [0], [1], [0, 0, 1, 1], [], []>, precision = #tpu.contract_precision<fp32>} : vector<8x4xf32>, vector<4x512xf32>, vector<8x512xf32> -> vector<8x512xf32>
    %cst_87 = arith.constant dense<0.000000e+00> : vector<8x512xf32>
    %115 = tpu.matmul %14, %113, %cst_87 {dimension_numbers = #tpu.dot_dimension_numbers<[1], [0], [0], [1], [0, 0, 1, 1], [], []>, precision = #tpu.contract_precision<fp32>} : vector<8x4xf32>, vector<4x512xf32>, vector<8x512xf32> -> vector<8x512xf32>
    %116 = arith.addf %114, %115 : vector<8x512xf32>
    %c0_88 = arith.constant 0 : index
    %c4_89 = arith.constant 4 : index
    %c0_90 = arith.constant 0 : index
    %c0_91 = arith.constant 0 : index
    %117 = vector.load %arg10[%c0_88, %c4_89, %c0_90, %c0_91] : memref<1x8x8x512xf32, #tpu.memory_space<vmem>>, vector<1x1x8x512xf32>
    %118 = vector.shape_cast %117 : vector<1x1x8x512xf32> to vector<8x512xf32>
    %119 = vector.shape_cast %116 : vector<8x512xf32> to vector<1x1x8x512xf32>
    tpu.vector_store %arg10[%c0_88, %c4_89, %c0_90, %c0_91], %119 {strides = array<i32>} : memref<1x8x8x512xf32, #tpu.memory_space<vmem>>, vector<1x1x8x512xf32>,
    %c5 = arith.constant 5 : index
    %c0_92 = arith.constant 0 : index
    %c0_93 = arith.constant 0 : index
    %120 = vector.load %arg5[%c5, %c0_92, %c0_93] : memref<8x4x4xf32, #tpu.memory_space<vmem>>, vector<1x4x4xf32>
    %121 = vector.shape_cast %120 : vector<1x4x4xf32> to vector<4x4xf32>
    %cst_94 = arith.constant dense<0.000000e+00> : vector<4x512xf32>
    %122 = tpu.matmul %121, %9, %cst_94 {dimension_numbers = #tpu.dot_dimension_numbers<[1], [0], [0], [1], [0, 0, 1, 1], [], []>, precision = #tpu.contract_precision<fp32>} : vector<4x4xf32>, vector<4x512xf32>, vector<4x512xf32> -> vector<4x512xf32>
    %123 = vector.broadcast %10 : vector<4x1xf32> to vector<4x512xf32>
    %124 = arith.addf %122, %123 : vector<4x512xf32>
    %cst_95 = arith.constant 0.000000e+00 : f32
    %125 = vector.broadcast %cst_95 : f32 to vector<4x512xf32>
    %126 = arith.maximumf %124, %125 : vector<4x512xf32>
    %c0_96 = arith.constant 0 : index
    %c5_97 = arith.constant 5 : index
    %c0_98 = arith.constant 0 : index
    %c0_99 = arith.constant 0 : index
    %127 = vector.load %arg3[%c0_96, %c5_97, %c0_98, %c0_99] : memref<1x8x4x512xf32, #tpu.memory_space<vmem>>, vector<1x1x4x512xf32>
    %128 = vector.shape_cast %127 : vector<1x1x4x512xf32> to vector<4x512xf32>
    %129 = vector.broadcast %11 : vector<4x1xf32> to vector<4x512xf32>
    %130 = arith.mulf %128, %129 : vector<4x512xf32>
    %131 = vector.broadcast %12 : vector<4x1xf32> to vector<4x512xf32>
    %132 = arith.addf %130, %131 : vector<4x512xf32>
    %cst_100 = arith.constant 0.000000e+00 : f32
    %133 = vector.broadcast %cst_100 : f32 to vector<4x512xf32>
    %134 = arith.maximumf %132, %133 : vector<4x512xf32>
    %cst_101 = arith.constant dense<0.000000e+00> : vector<8x512xf32>
    %135 = tpu.matmul %13, %126, %cst_101 {dimension_numbers = #tpu.dot_dimension_numbers<[1], [0], [0], [1], [0, 0, 1, 1], [], []>, precision = #tpu.contract_precision<fp32>} : vector<8x4xf32>, vector<4x512xf32>, vector<8x512xf32> -> vector<8x512xf32>
    %cst_102 = arith.constant dense<0.000000e+00> : vector<8x512xf32>
    %136 = tpu.matmul %14, %134, %cst_102 {dimension_numbers = #tpu.dot_dimension_numbers<[1], [0], [0], [1], [0, 0, 1, 1], [], []>, precision = #tpu.contract_precision<fp32>} : vector<8x4xf32>, vector<4x512xf32>, vector<8x512xf32> -> vector<8x512xf32>
    %137 = arith.addf %135, %136 : vector<8x512xf32>
    %c0_103 = arith.constant 0 : index
    %c5_104 = arith.constant 5 : index
    %c0_105 = arith.constant 0 : index
    %c0_106 = arith.constant 0 : index
    %138 = vector.load %arg10[%c0_103, %c5_104, %c0_105, %c0_106] : memref<1x8x8x512xf32, #tpu.memory_space<vmem>>, vector<1x1x8x512xf32>
    %139 = vector.shape_cast %138 : vector<1x1x8x512xf32> to vector<8x512xf32>
    %140 = vector.shape_cast %137 : vector<8x512xf32> to vector<1x1x8x512xf32>
    tpu.vector_store %arg10[%c0_103, %c5_104, %c0_105, %c0_106], %140 {strides = array<i32>} : memref<1x8x8x512xf32, #tpu.memory_space<vmem>>, vector<1x1x8x512xf32>,
    %c6 = arith.constant 6 : index
    %c0_107 = arith.constant 0 : index
    %c0_108 = arith.constant 0 : index
    %141 = vector.load %arg5[%c6, %c0_107, %c0_108] : memref<8x4x4xf32, #tpu.memory_space<vmem>>, vector<1x4x4xf32>
    %142 = vector.shape_cast %141 : vector<1x4x4xf32> to vector<4x4xf32>
    %cst_109 = arith.constant dense<0.000000e+00> : vector<4x512xf32>
    %143 = tpu.matmul %142, %9, %cst_109 {dimension_numbers = #tpu.dot_dimension_numbers<[1], [0], [0], [1], [0, 0, 1, 1], [], []>, precision = #tpu.contract_precision<fp32>} : vector<4x4xf32>, vector<4x512xf32>, vector<4x512xf32> -> vector<4x512xf32>
    %144 = vector.broadcast %10 : vector<4x1xf32> to vector<4x512xf32>
    %145 = arith.addf %143, %144 : vector<4x512xf32>
    %cst_110 = arith.constant 0.000000e+00 : f32
    %146 = vector.broadcast %cst_110 : f32 to vector<4x512xf32>
    %147 = arith.maximumf %145, %146 : vector<4x512xf32>
    %c0_111 = arith.constant 0 : index
    %c6_112 = arith.constant 6 : index
    %c0_113 = arith.constant 0 : index
    %c0_114 = arith.constant 0 : index
    %148 = vector.load %arg3[%c0_111, %c6_112, %c0_113, %c0_114] : memref<1x8x4x512xf32, #tpu.memory_space<vmem>>, vector<1x1x4x512xf32>
    %149 = vector.shape_cast %148 : vector<1x1x4x512xf32> to vector<4x512xf32>
    %150 = vector.broadcast %11 : vector<4x1xf32> to vector<4x512xf32>
    %151 = arith.mulf %149, %150 : vector<4x512xf32>
    %152 = vector.broadcast %12 : vector<4x1xf32> to vector<4x512xf32>
    %153 = arith.addf %151, %152 : vector<4x512xf32>
    %cst_115 = arith.constant 0.000000e+00 : f32
    %154 = vector.broadcast %cst_115 : f32 to vector<4x512xf32>
    %155 = arith.maximumf %153, %154 : vector<4x512xf32>
    %cst_116 = arith.constant dense<0.000000e+00> : vector<8x512xf32>
    %156 = tpu.matmul %13, %147, %cst_116 {dimension_numbers = #tpu.dot_dimension_numbers<[1], [0], [0], [1], [0, 0, 1, 1], [], []>, precision = #tpu.contract_precision<fp32>} : vector<8x4xf32>, vector<4x512xf32>, vector<8x512xf32> -> vector<8x512xf32>
    %cst_117 = arith.constant dense<0.000000e+00> : vector<8x512xf32>
    %157 = tpu.matmul %14, %155, %cst_117 {dimension_numbers = #tpu.dot_dimension_numbers<[1], [0], [0], [1], [0, 0, 1, 1], [], []>, precision = #tpu.contract_precision<fp32>} : vector<8x4xf32>, vector<4x512xf32>, vector<8x512xf32> -> vector<8x512xf32>
    %158 = arith.addf %156, %157 : vector<8x512xf32>
    %c0_118 = arith.constant 0 : index
    %c6_119 = arith.constant 6 : index
    %c0_120 = arith.constant 0 : index
    %c0_121 = arith.constant 0 : index
    %159 = vector.load %arg10[%c0_118, %c6_119, %c0_120, %c0_121] : memref<1x8x8x512xf32, #tpu.memory_space<vmem>>, vector<1x1x8x512xf32>
    %160 = vector.shape_cast %159 : vector<1x1x8x512xf32> to vector<8x512xf32>
    %161 = vector.shape_cast %158 : vector<8x512xf32> to vector<1x1x8x512xf32>
    tpu.vector_store %arg10[%c0_118, %c6_119, %c0_120, %c0_121], %161 {strides = array<i32>} : memref<1x8x8x512xf32, #tpu.memory_space<vmem>>, vector<1x1x8x512xf32>,
    %c7 = arith.constant 7 : index
    %c0_122 = arith.constant 0 : index
    %c0_123 = arith.constant 0 : index
    %162 = vector.load %arg5[%c7, %c0_122, %c0_123] : memref<8x4x4xf32, #tpu.memory_space<vmem>>, vector<1x4x4xf32>
    %163 = vector.shape_cast %162 : vector<1x4x4xf32> to vector<4x4xf32>
    %cst_124 = arith.constant dense<0.000000e+00> : vector<4x512xf32>
    %164 = tpu.matmul %163, %9, %cst_124 {dimension_numbers = #tpu.dot_dimension_numbers<[1], [0], [0], [1], [0, 0, 1, 1], [], []>, precision = #tpu.contract_precision<fp32>} : vector<4x4xf32>, vector<4x512xf32>, vector<4x512xf32> -> vector<4x512xf32>
    %165 = vector.broadcast %10 : vector<4x1xf32> to vector<4x512xf32>
    %166 = arith.addf %164, %165 : vector<4x512xf32>
    %cst_125 = arith.constant 0.000000e+00 : f32
    %167 = vector.broadcast %cst_125 : f32 to vector<4x512xf32>
    %168 = arith.maximumf %166, %167 : vector<4x512xf32>
    %c0_126 = arith.constant 0 : index
    %c7_127 = arith.constant 7 : index
    %c0_128 = arith.constant 0 : index
    %c0_129 = arith.constant 0 : index
    %169 = vector.load %arg3[%c0_126, %c7_127, %c0_128, %c0_129] : memref<1x8x4x512xf32, #tpu.memory_space<vmem>>, vector<1x1x4x512xf32>
    %170 = vector.shape_cast %169 : vector<1x1x4x512xf32> to vector<4x512xf32>
    %171 = vector.broadcast %11 : vector<4x1xf32> to vector<4x512xf32>
    %172 = arith.mulf %170, %171 : vector<4x512xf32>
    %173 = vector.broadcast %12 : vector<4x1xf32> to vector<4x512xf32>
    %174 = arith.addf %172, %173 : vector<4x512xf32>
    %cst_130 = arith.constant 0.000000e+00 : f32
    %175 = vector.broadcast %cst_130 : f32 to vector<4x512xf32>
    %176 = arith.maximumf %174, %175 : vector<4x512xf32>
    %cst_131 = arith.constant dense<0.000000e+00> : vector<8x512xf32>
    %177 = tpu.matmul %13, %168, %cst_131 {dimension_numbers = #tpu.dot_dimension_numbers<[1], [0], [0], [1], [0, 0, 1, 1], [], []>, precision = #tpu.contract_precision<fp32>} : vector<8x4xf32>, vector<4x512xf32>, vector<8x512xf32> -> vector<8x512xf32>
    %cst_132 = arith.constant dense<0.000000e+00> : vector<8x512xf32>
    %178 = tpu.matmul %14, %176, %cst_132 {dimension_numbers = #tpu.dot_dimension_numbers<[1], [0], [0], [1], [0, 0, 1, 1], [], []>, precision = #tpu.contract_precision<fp32>} : vector<8x4xf32>, vector<4x512xf32>, vector<8x512xf32> -> vector<8x512xf32>
    %179 = arith.addf %177, %178 : vector<8x512xf32>
    %c0_133 = arith.constant 0 : index
    %c7_134 = arith.constant 7 : index
    %c0_135 = arith.constant 0 : index
    %c0_136 = arith.constant 0 : index
    %180 = vector.load %arg10[%c0_133, %c7_134, %c0_135, %c0_136] : memref<1x8x8x512xf32, #tpu.memory_space<vmem>>, vector<1x1x8x512xf32>
    %181 = vector.shape_cast %180 : vector<1x1x8x512xf32> to vector<8x512xf32>
    %182 = vector.shape_cast %179 : vector<8x512xf32> to vector<1x1x8x512xf32>
    tpu.vector_store %arg10[%c0_133, %c7_134, %c0_135, %c0_136], %182 {strides = array<i32>} : memref<1x8x8x512xf32, #tpu.memory_space<vmem>>, vector<1x1x8x512xf32>,
    return
  }
  func.func @transform_0(%arg0: i32, %arg1: i32) -> (i32, i32, i32) {
    %c0_i32 = arith.constant 0 : i32
    %c0_i32_0 = arith.constant 0 : i32
    return %arg0, %c0_i32, %arg1 : i32, i32, i32
  }
  func.func @transform_1(%arg0: i32, %arg1: i32) -> (i32, i32, i32, i32) {
    %c0_i32 = arith.constant 0 : i32
    %c0_i32_0 = arith.constant 0 : i32
    %c0_i32_1 = arith.constant 0 : i32
    return %arg0, %c0_i32, %c0_i32_0, %arg1 : i32, i32, i32, i32
  }
  func.func @transform_2(%arg0: i32, %arg1: i32) -> (i32, i32) {
    %c0_i32 = arith.constant 0 : i32
    %c0_i32_0 = arith.constant 0 : i32
    %c0_i32_1 = arith.constant 0 : i32
    return %c0_i32, %c0_i32_0 : i32, i32
  }
  func.func @transform_3(%arg0: i32, %arg1: i32) -> (i32, i32, i32) {
    %c0_i32 = arith.constant 0 : i32
    %c0_i32_0 = arith.constant 0 : i32
    %c0_i32_1 = arith.constant 0 : i32
    %c0_i32_2 = arith.constant 0 : i32
    return %c0_i32, %c0_i32_0, %c0_i32_1 : i32, i32, i32
  }
  func.func @transform_4(%arg0: i32, %arg1: i32) -> (i32, i32) {
    %c0_i32 = arith.constant 0 : i32
    %c0_i32_0 = arith.constant 0 : i32
    %c0_i32_1 = arith.constant 0 : i32
    return %c0_i32, %c0_i32_0 : i32, i32
  }
  func.func @transform_5(%arg0: i32, %arg1: i32) -> (i32, i32) {
    %c0_i32 = arith.constant 0 : i32
    %c0_i32_0 = arith.constant 0 : i32
    %c0_i32_1 = arith.constant 0 : i32
    return %c0_i32, %c0_i32_0 : i32, i32
  }
  func.func @transform_6(%arg0: i32, %arg1: i32) -> (i32, i32) {
    %c0_i32 = arith.constant 0 : i32
    %c0_i32_0 = arith.constant 0 : i32
    %c0_i32_1 = arith.constant 0 : i32
    return %c0_i32, %c0_i32_0 : i32, i32
  }
  func.func @transform_7(%arg0: i32, %arg1: i32) -> (i32, i32) {
    %c0_i32 = arith.constant 0 : i32
    %c0_i32_0 = arith.constant 0 : i32
    %c0_i32_1 = arith.constant 0 : i32
    return %c0_i32, %c0_i32_0 : i32, i32
  }
  func.func @transform_8(%arg0: i32, %arg1: i32) -> (i32, i32, i32, i32) {
    %c0_i32 = arith.constant 0 : i32
    %c0_i32_0 = arith.constant 0 : i32
    %c0_i32_1 = arith.constant 0 : i32
    return %arg0, %c0_i32, %c0_i32_0, %arg1 : i32, i32, i32, i32
  }
}

</mosaic_0001>

<bundles_post_ra>
// kernel: tpu_custom_call.1
= control target key start
LH: loop header
LB: loop body
LE: loop exit
PB: predicated region body
PF: predicated region fallthrough
CT: control target
= control target key end

     0   :  { %13 = vsyncpa [#allocation3], 0  ;;  %s17268_s0 = inlined_call_operand.vmem [shape: f32[2,4,512], index: 0, kind: input, shape index: {}]   ;;  %s17269_s1 = inlined_call_operand.hbm [shape: f32[2,8,4,512], index: 1, kind: input, shape index: {}]   ;;  %s17270_s2 = inlined_call_operand.vmem [shape: f32[4,2], index: 2, kind: input, shape index: {}]   ;;  %s17271_s3 = inlined_call_operand.vmem [shape: f32[8,4,4], index: 3, kind: input, shape index: {}]   ;;  %s17272_s4 = inlined_call_operand.vmem [shape: f32[4,1], index: 4, kind: input, shape index: {}]   ;;  %s17273_s5 = inlined_call_operand.vmem [shape: f32[4,2], index: 5, kind: input, shape index: {}]   ;;  %s17274_s6 = inlined_call_operand.vmem [shape: f32[8,4], index: 6, kind: input, shape index: {}]   ;;  %s17275_s7 = inlined_call_operand.vmem [shape: f32[8,4], index: 7, kind: input, shape index: {}]   ;;  %s17276_s8 = inlined_call_operand.hbm [shape: f32[2,8,8,512], index: 8, kind: output, shape index: {}]  }
   0x1   :  { %15 = vsyncpa [#allocation3 + $0x1], 0 }
   0x2   :  { %16 = vsyncpa [#allocation4], 0 }
   0x3   :  { %18 = vsyncpa [#allocation4 + $0x1], 0  ;;  %s15425_s27 = smov 0   ;;  %s15427_s28 = smov 0  }
   0x4   :  { %s15429_s29 = smov 0   ;;  %s15431_s30 = smov 0  }
   0x5   :  { %s15433_s9 = smov 0   ;;  %s15435_s10 = smov 0  }
   0x6 LB: > { %17279 = sst [smem:[#allocation8_spill]] %s15367_s9  ;;  %s15116_s11 = sadd.s32 4294967295, %s15371_s10   ;;  %s15371_s10 = sphi %s15435_s10, %s24_s10   ;;  %s15367_s9 = sphi %s15433_s9, %s17330_s9   ;;  %s15363_s30 = sphi %s15431_s30, %s17329_s30   ;;  %s15359_s29 = sphi %s15429_s29, %s17333_s29   ;;  %s15355_s28 = sphi %s15427_s28, %s17332_s28   ;;  %s15351_s27 = sphi %s15425_s27, %s17331_s27  }
   0x7   : > { %s15117_s12 = sadd.s32 4294967294, %s15371_s10   ;;  %s36_s13 = sadd.s32 1, %s15367_s9 }
   0x8   : > { %s73_s14 = sadd.s32 1, %s15359_s29  ;;  %p38_p0 = scmp.ge.s32.totalorder %s36_s13, 2 }
   0x9   : > { %p80_p1 = scmp.ne.s32.totalorder %s15359_s29, %s15355_s28  ;;  %p81_p2 = scmp.eq.s32.totalorder %s15371_s10, 0 }
   0xa   : > { %p86_p3 = scmp.ne.s32.totalorder %s15355_s28, %s15351_s27  ;;  %s17335_s13 = smov (%p38_p0, %s36_s13), 0 }
   0xb   : > { %17280 = sst [smem:[#allocation9_spill]] %s17335_s13  ;;  %p15466_p4 = por %p81_p2, %p80_p1 }
   0xc   : > { %p87_p5 = scmp.eq.s32.totalorder %s15116_s11, 0  ;;  %s68_s16 = ssub.s32 %s15367_s9, %s17335_s13 }
   0xd   : > { %p238_p6 = scmp.eq.s32.totalorder %s15116_s11, 1  ;;  %p71_p7 = scmp.eq.s32.totalorder %s68_s16, 0 }
   0xe   : > { %p15472_p8 = por %p87_p5, %p86_p3  ;;  %p244_p10 = scmp.eq.s32.totalorder %s15117_s12, 1 }
   0xf   : > { %p15476_p9 = por %p238_p6, %p80_p1  ;;  %p15119_p12 = scmp.ge.s32.totalorder %s15371_s10, 2 }
  0x10   : > { %s15481_s19 = scalar_select %p71_p7, %s15359_s29, %s73_s14  }
  0x11   : > { %p15483_p11 = por %p244_p10, %p86_p3  ;;  %p15197_p13 = scmp.lt.s32.totalorder %s15371_s10, 2 }
  0x12   : > { %17284 = sst [smem:[#allocation10_spill]] %s15481_s19  ;;  %s295_s21 = sand.u32 1, %s15359_s29  }
  0x13   : > { %s15120_s22 = sshll.u32 %s295_s21, 7  ;;  %s15182_s23 = sshll.u32 %s15367_s9, 7 }
  0x14   : > { %s306_s26 = scalar_lea.hbm %s17269_s1, %s15182_s23  ;;  %s299_s11 = scalar_lea.vmem [#allocation2], %s15120_s22 }
  0x15   : > { %s309_s16 = sshll.u32 %s299_s11, 4  ;;  %s307_s13 = sshll.u32 %s306_s26, 4  ;;  %s310_s16 = int_to_ptr.vmem [resolvable:$true] %s309_s16  ;;  %s308_s13 = int_to_ptr.hbm [resolvable:$true] %s307_s13 }
  0x16   : > { %p15190_p0 = pnand %p15197_p13, %p15466_p4  ;;  %p15123_p1 = scmp.ge.s32.totalorder %s15371_s10, 1 }
  0x17   : > { %s296_s12 = scalar_lea.sflag [#allocation3], %s295_s21  ;;  %s15373_s14 = smov 256  }
  0x18   : > { %s15374_s19 = smov 16   ;;  %p317_p2 = scmp.lt.s32.totalorder %s15371_s10, 3 }
  0x19   : > { %15192 = dma.hbm_to_vmem [thread:$0]  (!%p15190_p0), %s308_s13, 2048, %s310_s16, %s296_s12, %s15373_s14, %s15373_s14, %s15374_s19  }
  0x1a   : > { %p318_p3 = pnand %p15123_p1, %p317_p2 }
  0x1c   : > { %321 = sbr.rel (%p318_p3) target bundleno = 1950 (0x79e), region = 52 }
  0x21   : > { %s15499_s9 = sand.u32 1, %s15355_s28  }
  0x22   : > { %s15124_s22 = sshll.u32 %s15499_s9, 7  ;;  %s324_s23 = scalar_lea.sflag [#allocation3], %s15499_s9 }
  0x23   : > { %s15503_s24 = scalar_lea.vmem [#allocation2], %s15124_s22 }
  0x24   : > { %15342 = dma.done.wait (%p15472_p8), %s324_s23, 2048  }
  0x25   : > { %15344 = vsyncadd (%p15472_p8), %s324_s23, 4294965248  ;;  %v15375_v0 = vmov 0   ;;  %v384_v1 = vld [vmem:[%s17270_s2] sm:$0xf]  ;;  %v15376_v3 = vmov 1   ;;  %p371_p4 = scmp.lt.s32.totalorder %s15363_s30, 1 }
  0x26   : > { %15254 = vset.pattern.permute.xlu0 %v15375_v0  ;;  %15256 = vset.pattern.permute.xlu1 %v15375_v0  ;;  %v409_v2 = vld [vmem:[%s17273_s5] sm:$0xf]  ;;  %v15377_v4 = vmov 839922192   ;;  %vm427_vm0 = vcmask 31744   ;;  %v15150_v12 = vld [vmem:[%s15503_s24 + $0x40] sm:$0xff] }
  0x27   : > { %15258 = vset.pattern.permute.xlu2 %v15375_v0  ;;  %387 = vperm.xlu0 %15254, %v384_v1   ;;  %s372_s17 = scalar_select %p371_p4, %s15363_s30, 1  ;;  %v390_v5 = vunpack.c.l.s4 %v15377_v4  ;;  %v412_v8 = vld [vmem:[%s17271_s3] sm:$0xf]  ;;  %v15151_v13 = vld [vmem:[%s15503_s24 + $0x48] sm:$0xff]  ;;  %v15157_v18 = vld [vmem:[%s15503_s24 + $0x50] sm:$0xff]  ;;  %vm431_vm1 = vcmask 1043456  }
  0x28   : > { %1032 = vperm.xlu1 %15256, %v409_v2   ;;  %v429_v10 = vsel %vm427_vm0, %v412_v8, 0  ;;  %v15158_v19 = vld [vmem:[%s15503_s24 + $0x58] sm:$0xff]  ;;  %v15164_v20 = vld [vmem:[%s15503_s24 + $0x60] sm:$0xff]  ;;  %v15165_v21 = vld [vmem:[%s15503_s24 + $0x68] sm:$0xff]  ;;  %s15125_s25 = sshll.u32 %s15499_s9, 8  ;;  %s15309_s19 = scalar_lea.hbm %s17276_s8, 512 }
  0x29   : > { %s15183_s11 = sshll.u32 %s372_s17, 4  ;;  %v391_v9 = vunpack.c.0.s8 %v390_v5  ;;  %v15526_v14 = vand.u32 4294901760, %v429_v10  ;;  %v15171_v22 = vld [vmem:[%s15503_s24 + $0x70] sm:$0xff]  ;;  %v15172_v29 = vld [vmem:[%s15503_s24 + $0x78] sm:$0xff]  ;;  %v1028_v32 = vld [vmem:[%s15503_s24] sm:$0xff]  ;;  %s16050_s26 = scalar_lea.vmem [#allocation5], %s15125_s25 }
  0x2a   : > { %s378_s14 = scalar_lea.vmem %s17268_s0, %s15183_s11  ;;  %v1029_v37 = vld [vmem:[%s15503_s24 + $0x8] sm:$0xff]  ;;  %v15129_v8 = vld [vmem:[%s15503_s24 + $0x10] sm:$0xff]  ;;  %s15184_s25 = sshll.u32 %s15363_s30, 8 }
  0x2b   : > { %v382_v15 = vld [vmem:[%s378_s14] sm:$0xff]  ;;  %v383_v16 = vld [vmem:[%s378_s14 + $0x8] sm:$0xff]  ;;  %v15539_v31 = vsub.f32 %v429_v10, %v15526_v14  ;;  %s15007_s12 = scalar_lea.hbm %s17276_s8, %s15184_s25  ;;  %s15008_s14 = sshll.u32 %s16050_s26, 4  ;;  %s15009_s14 = int_to_ptr.vmem [resolvable:$true] %s15008_s14 }
  0x2c   : > { %s15010_s22 = sshll.u32 %s15007_s12, 4  ;;  %s14994_s30 = scalar_lea.sflag [#allocation4], %s15499_s9  ;;  %s15011_s22 = int_to_ptr.hbm [resolvable:$true] %s15010_s22 }
  0x2d   : > { %v15584_v55 = vand.u32 4294901760, %v15539_v31  ;;  %s15303_s23 = sshra.s32 %s15011_s22, 4  ;;  %s15304_s23 = int_to_ptr.hbm [resolvable:$true] %s15303_s23 }
  0x2e   : > { %s15305_s13 = scalar_lea.hbm %s15304_s23, 256  ;;  %p15310_p8 = scmp.lt.s32.totalorder %s15304_s23, %s17276_s8 }
  0x2f   : > { %15255 = vset.pattern.permute.xlu0 %v15376_v3  ;;  %v460_v58 = vsub.f32 %v15539_v31, %v15584_v55  ;;  %p15306_p5 = scmp.ne.s32.totalorder %s15304_s23, %s15305_s13  ;;  %p15311_p10 = scmp.lt.s32.totalorder %s15309_s19, %s15305_s13 }
  0x30   : > { %15257 = vset.pattern.permute.xlu1 %v15376_v3  ;;  %397 = vperm.xlu0 %15255, %v384_v1  }
  0x31   : > { %1042 = vperm.xlu1 %15257, %v409_v2   ;;  %v15591_v2 = vand.u32 4294901760, %v460_v58  ;;  %v15137_v58 = vld [vmem:[%s15503_s24 + $0x28] sm:$0xff]  ;;  %p15307_p6 = pnand %p15306_p5, %p15476_p9  ;;  %p15312_p13 = por %p15311_p10, %p15310_p8 }
  0x33   : > { %p15308_p7 = pneg %p15307_p6 }
  0x35   : > { %p15313_p0 = pnand %p15312_p13, %p15308_p7 }
  0x99   : > { %v388_v6 = vpop.permute.xlu0 %387 }
  0x9a   : > { %v1033_v7 = vpop.permute.xlu1 %1032  ;;  %v392_v11 = vperm.slane %v388_v6, %v391_v9 }
  0x9b   : > { %v15528_v17 = vperm.slane %v1033_v7, %v391_v9 }
  0x9c   : > { %v394_v27 = vmul.f32 %v392_v11, %v382_v15  ;;  %v395_v28 = vmul.f32 %v392_v11, %v383_v16 }
  0x9d   : > { %v8328_v23 = vmul.f32 %v15150_v12, %v15528_v17  ;;  %v8329_v24 = vmul.f32 %v15151_v13, %v15528_v17  ;;  %v10147_v33 = vmul.f32 %v15157_v18, %v15528_v17  ;;  %v10148_v34 = vmul.f32 %v15158_v19, %v15528_v17  ;;  %v15130_v12 = vld [vmem:[%s15503_s24 + $0x18] sm:$0xff] }
  0x9e   : > { %v11966_v35 = vmul.f32 %v15164_v20, %v15528_v17  ;;  %v11967_v38 = vmul.f32 %v15165_v21, %v15528_v17  ;;  %v13785_v39 = vmul.f32 %v15171_v22, %v15528_v17  ;;  %v13786_v42 = vmul.f32 %v15172_v29, %v15528_v17 }
  0x9f   : > { %v1039_v45 = vmul.f32 %v15528_v17, %v1028_v32  ;;  %v1040_v48 = vmul.f32 %v15528_v17, %v1029_v37  ;;  %v2871_v15 = vmul.f32 %v15129_v8, %v15528_v17  ;;  %v2872_v19 = vmul.f32 %v15130_v12, %v15528_v17  ;;  %v408_v37 = vld [vmem:[%s17272_s4] sm:$0xf] }
  0xa0   : > { %415 = vperm.xlu2 %15258, %v408_v37  }
  0xa2   : > { %v398_v25 = vpop.permute.xlu0 %397 }
  0xa3   : > { %v1043_v26 = vpop.permute.xlu1 %1042  ;;  %v402_v30 = vperm.slane %v398_v25, %v391_v9 }
  0xa4   : > { %v15545_v36 = vperm.slane %v1043_v26, %v391_v9 }
  0xa5   : > { %v404_v40 = vadd.f32 %v402_v30, %v394_v27  ;;  %v405_v41 = vadd.f32 %v402_v30, %v395_v28 }
  0xa6   : > { %v15552_v43 = vadd.f32 %v8328_v23, %v15545_v36  ;;  %v15555_v44 = vadd.f32 %v8329_v24, %v15545_v36  ;;  %v15565_v49 = vadd.f32 %v10147_v33, %v15545_v36  ;;  %v15568_v50 = vadd.f32 %v10148_v34, %v15545_v36 }
  0xa7   : > { %v15558_v46 = vmax.f32 %v404_v40, 0.0  ;;  %v15560_v47 = vmax.f32 %v405_v41, 0.0  ;;  %v15571_v51 = vadd.f32 %v11966_v35, %v15545_v36  ;;  %v15574_v52 = vadd.f32 %v11967_v38, %v15545_v36 }
  0xa8   : > { %v15578_v53 = vadd.f32 %v13785_v39, %v15545_v36  ;;  %v15581_v54 = vadd.f32 %v13786_v42, %v15545_v36  ;;  %v1049_v56 = vadd.f32 %v15545_v36, %v1039_v45  ;;  %v1050_v57 = vadd.f32 %v15545_v36, %v1040_v48  ;;  %v15136_v48 = vld [vmem:[%s15503_s24 + $0x20] sm:$0xff] }
  0xa9   : > { %420 = vst [vmem:[#allocation1] ss:$2 sm:$0xff] %v15558_v46  ;;  %v2873_v27 = vadd.f32 %v2871_v15, %v15545_v36  ;;  %v2874_v32 = vadd.f32 %v2872_v19, %v15545_v36 }
  0xaa   : > { %422 = vst [vmem:[#allocation1 + $0x10] ss:$2 sm:$0xff] %v15560_v47  ;;  %v1051_v59 = vmax.f32 %v1049_v56, 0.0  ;;  %v1052_v60 = vmax.f32 %v1050_v57, 0.0 }
  0xab   : > { %v2875_v35 = vmax.f32 %v2873_v27, 0.0  ;;  %v2876_v38 = vmax.f32 %v2874_v32, 0.0  ;;  %v15144_v32 = vld [vmem:[%s15503_s24 + $0x38] sm:$0xff] }
  0xb0   : > { %v423_v61 = vld.sshfl [vmem:[#allocation1] sm:$0xff pattern:$0x75316420]  ;;  %v424_v62 = vld.sshfl [vmem:[#allocation1 + $0x8] sm:$0xff pattern:$0x75316420] }
  0xb1   : > { %v425_v63 = vld.sshfl [vmem:[#allocation1 + $0x10] sm:$0xff pattern:$0x75316420]  ;;  %v426_v0 = vld.sshfl [vmem:[#allocation1 + $0x18] sm:$0xff pattern:$0x75316420] }
  0xb2   : > { %v432_v1 = vsel %vm431_vm1, %v423_v61, 0  ;;  %v434_v3 = vsel %vm431_vm1, %v424_v62, 0  ;;  %v436_v4 = vsel %vm431_vm1, %v425_v63, 0  ;;  %1055 = vst [vmem:[#allocation1] ss:$2 sm:$0xff] %v1051_v59  ;;  %v438_v7 = vsel %vm431_vm1, %v426_v0, 0 }
  0xb3   : > { %v455_v5 = vand.u32 4294901760, %v432_v1  ;;  %v601_v6 = vand.u32 4294901760, %v434_v3  ;;  %1057 = vst [vmem:[#allocation1 + $0x10] ss:$2 sm:$0xff] %v1052_v60  ;;  %v15597_v11 = vand.u32 4294901760, %v436_v4  ;;  %v15602_v13 = vand.u32 4294901760, %v438_v7 }
  0xb4   : > { %v4690_v60 = vmul.f32 %v15136_v48, %v15528_v17  ;;  %v4691_v62 = vmul.f32 %v15137_v58, %v15528_v17 }
  0xb5   : > { %456 = vmatpush.msra.mxu0 %v455_v5  ;;  %532 = vmatpush.msra.mxu3 %v455_v5  ;;  %v482_v9 = vsub.f32 %v432_v1, %v455_v5  ;;  %v628_v10 = vsub.f32 %v434_v3, %v601_v6  ;;  %v774_v22 = vsub.f32 %v436_v4, %v15597_v11  ;;  %v411_v3 = vld [vmem:[%s17275_s7] sm:$0xff] }
  0xb6   : > { %462 = vmatmul.f32.vlgmr.msra.gmra.mxu0 %v15591_v2  ;;  %536 = vmatmul.f32.vlgmr.msra.gmra.mxu3 %v15584_v55  ;;  %v15611_v25 = vsub.f32 %v438_v7, %v15602_v13  ;;  %v4692_v1 = vadd.f32 %v4690_v60, %v15545_v36  ;;  %v4693_v7 = vadd.f32 %v4691_v62, %v15545_v36  ;;  %v1063_v8 = vsel %vm427_vm0, %v411_v3, 0 }
  0xb7   : > { %509 = vmatpush.msra.mxu2 %v482_v9  ;;  %v483_v16 = vand.u32 4294901760, %v482_v9  ;;  %v629_v18 = vand.u32 4294901760, %v628_v10  ;;  %v775_v33 = vand.u32 4294901760, %v774_v22 }
  0xb8   : > { %512 = vmatmul.f32.vlgmr.msra.gmra.mxu2 %v15539_v31  ;;  %v921_v34 = vand.u32 4294901760, %v15611_v25 }
  0xb9   : > { %602 = vmatpush.msrb.mxu2 %v601_v6  ;;  %558 = vmatpush.msrb.mxu0 %v483_v16  ;;  %v484_v20 = vsub.f32 %v482_v9, %v483_v16  ;;  %v630_v21 = vsub.f32 %v628_v10, %v629_v18  ;;  %v1058_v23 = vld.sshfl [vmem:[#allocation1] sm:$0xff pattern:$0x75316420]  ;;  %v15608_v24 = vld.sshfl [vmem:[#allocation1 + $0x8] sm:$0xff pattern:$0x75316420]  ;;  %v776_v39 = vsub.f32 %v774_v22, %v775_v33 }
  0xba   : > { %2262 = vst [vmem:[#allocation1] ss:$2 sm:$0xff] %v15558_v46  ;;  %v15614_v26 = vld.sshfl [vmem:[#allocation1 + $0x10] sm:$0xff pattern:$0x75316420]  ;;  %v922_v42 = vsub.f32 %v15611_v25, %v921_v34  ;;  %v1065_v61 = vsel %vm431_vm1, %v1058_v23, 0 }
  0xbb   : > { %704 = vmatpush.msra.mxu2 %v629_v18  ;;  %655 = vmatpush.msra.mxu0 %v628_v10  ;;  %v485_v28 = vand.u32 4294901760, %v484_v20  ;;  %v631_v29 = vand.u32 4294901760, %v630_v21  ;;  %v15617_v30 = vld.sshfl [vmem:[#allocation1 + $0x18] sm:$0xff pattern:$0x75316420]  ;;  %v777_v57 = vand.u32 4294901760, %v776_v39 }
  0xbc   : > { %2264 = vst [vmem:[#allocation1 + $0x10] ss:$2 sm:$0xff] %v15560_v47  ;;  %v923_v59 = vand.u32 4294901760, %v922_v42  ;;  %v15658_v4 = vand.u32 4294901760, %v1065_v61  ;;  %v1067_v9 = vsel %vm431_vm1, %v15608_v24, 0  ;;  %v4694_v10 = vmax.f32 %v4692_v1, 0.0 }
  0xbd   : > { %486 = vmatpush.msra.mxu1 %v485_v28  ;;  %632 = vmatpush.msrb.mxu3 %v631_v29  ;;  %v15675_v15 = vand.u32 4294901760, %v1067_v9  ;;  %v4695_v16 = vmax.f32 %v4693_v7, 0.0  ;;  %v15679_v18 = vand.u32 4294901760, %v1063_v8  ;;  %v1069_v58 = vsel %vm431_vm1, %v15614_v26, 0 }
  0xbe   : > { %488 = vmatmul.f32.vlgmr.msra.gmra.mxu1 %v15526_v14  ;;  %560 = vmatmul.f32.vlgmr.msrb.gmra.mxu0 %v15526_v14  ;;  %v1115_v12 = vsub.f32 %v1065_v61, %v15658_v4  ;;  %v1071_v60 = vsel %vm431_vm1, %v15617_v30, 0  ;;  %v1380_v61 = vand.u32 4294901760, %v1069_v58 }
  0xbf   : > { %580 = vmatpush.msrb.mxu1 %v455_v5  ;;  %634 = vmatmul.f32.vlgmr.msrb.gmra.mxu3 %v15526_v14  ;;  %v15682_v19 = vsub.f32 %v1067_v9, %v15675_v15  ;;  %v15696_v27 = vsub.f32 %v1063_v8, %v15679_v18 }
  0xc0   : > { %726 = vmatpush.msra.mxu3 %v601_v6  ;;  %748 = vmatpush.msrb.mxu0 %v15597_v11  ;;  %v1116_v21 = vand.u32 4294901760, %v1115_v12 }
  0xc1   : > { %678 = vmatpush.msra.mxu1 %v601_v6  ;;  %v15630_v40 = vld.sshfl [vmem:[#allocation1] sm:$0xff pattern:$0x75316420]  ;;  %v15632_v41 = vld.sshfl [vmem:[#allocation1 + $0x8] sm:$0xff pattern:$0x75316420]  ;;  %608 = vmatmul.f32.vlgmr.msrb.gmra.mxu2 %v15591_v2 }
  0xc2   : > { %824 = vmatpush.msrb.mxu3 %v15597_v11  ;;  %2879 = vst [vmem:[#allocation1] ss:$2 sm:$0xff] %v2875_v35  ;;  %801 = vmatpush.msrb.mxu2 %v774_v22  ;;  %v1262_v22 = vand.u32 4294901760, %v15682_v19  ;;  %v1117_v28 = vsub.f32 %v1115_v12, %v1116_v21 }
  0xc3   : > { %v15636_v45 = vld.sshfl [vmem:[#allocation1 + $0x10] sm:$0xff pattern:$0x75316420]  ;;  %v15639_v56 = vld.sshfl [vmem:[#allocation1 + $0x18] sm:$0xff pattern:$0x75316420] }
  0xc4   : > { %2881 = vst [vmem:[#allocation1 + $0x10] ss:$2 sm:$0xff] %v2876_v38  ;;  %v1263_v29 = vsub.f32 %v15682_v19, %v1262_v22  ;;  %v6510_v38 = vmul.f32 %v15144_v32, %v15528_v17 }
  0xc6   : > { %582 = vmatmul.f32.vlgmr.msrb.gmra.mxu1 %v15526_v14  ;;  %658 = vmatmul.f32.vlgmr.msra.gmra.mxu0 %v15539_v31  ;;  %v1264_v39 = vand.u32 4294901760, %v1263_v29  ;;  %v8333_v29 = vmax.f32 %v15555_v44, 0.0 }
  0xc7   : > { %728 = vmatmul.f32.vlgmr.msra.gmra.mxu3 %v15526_v14  ;;  %778 = vmatpush.msrb.mxu1 %v777_v57 }
  0xc8   : > { %850 = vmatpush.msra.mxu0 %v775_v33  ;;  %924 = vmatpush.msra.mxu3 %v923_v59 }
  0xc9   : > { %v15648_v63 = vld.sshfl [vmem:[#allocation1] sm:$0xff pattern:$0x75316420]  ;;  %706 = vmatmul.f32.vlgmr.msra.gmra.mxu2 %v15526_v14  ;;  %v15651_v0 = vld.sshfl [vmem:[#allocation1 + $0x8] sm:$0xff pattern:$0x75316420] }
  0xca   : > { %894 = vmatpush.msra.mxu2 %v15602_v13  ;;  %4081 = vst [vmem:[#allocation1] ss:$2 sm:$0xff] %v15558_v46 }
  0xcb   : > { %v15661_v5 = vld.sshfl [vmem:[#allocation1 + $0x10] sm:$0xff pattern:$0x75316420]  ;;  %v15663_v6 = vld.sshfl [vmem:[#allocation1 + $0x18] sm:$0xff pattern:$0x75316420] }
  0xcc   : > { %4083 = vst [vmem:[#allocation1 + $0x10] ss:$2 sm:$0xff] %v15560_v47 }
  0xce   : > { %682 = vmatmul.f32.vlgmr.msra.gmra.mxu1 %v15584_v55  ;;  %754 = vmatmul.f32.vlgmr.msrb.gmra.mxu0 %v15591_v2 }
  0xcf   : > { %828 = vmatmul.f32.vlgmr.msrb.gmra.mxu3 %v15584_v55  ;;  %872 = vmatpush.msra.mxu1 %v15597_v11 }
  0xd0   : > { %947 = vmatpush.msrb.mxu0 %v15611_v25  ;;  %1018 = vmatpush.msrb.mxu3 %v15602_v13  ;;  %v15143_v25 = vld [vmem:[%s15503_s24 + $0x30] sm:$0xff] }
  0xd1   : > { %804 = vmatmul.f32.vlgmr.msrb.gmra.mxu2 %v15539_v31  ;;  %v15685_v20 = vld.sshfl [vmem:[#allocation1] sm:$0xff pattern:$0x75316420]  ;;  %v15687_v11 = vld.sshfl [vmem:[#allocation1 + $0x8] sm:$0xff pattern:$0x75316420]  ;;  %v6509_v33 = vmul.f32 %v15143_v25, %v15528_v17  ;;  %v6512_v17 = vadd.f32 %v6510_v38, %v15545_v36 }
  0xd2   : > { %996 = vmatpush.msrb.mxu2 %v921_v34  ;;  %4698 = vst [vmem:[#allocation1] ss:$2 sm:$0xff] %v4694_v10  ;;  %v15709_v34 = vand.u32 4294901760, %v15696_v27 }
  0xd3   : > { %v15690_v23 = vld.sshfl [vmem:[#allocation1 + $0x10] sm:$0xff pattern:$0x75316420]  ;;  %v15692_v24 = vld.sshfl [vmem:[#allocation1 + $0x18] sm:$0xff pattern:$0x75316420]  ;;  %v6511_v42 = vadd.f32 %v6509_v33, %v15545_v36 }
  0xd4   : > { %4700 = vst [vmem:[#allocation1 + $0x10] ss:$2 sm:$0xff] %v4695_v16  ;;  %v6514_v1 = vmax.f32 %v6512_v17, 0.0  ;;  %v15739_v36 = vand.u32 4294901760, %v1071_v60  ;;  %v10152_v17 = vmax.f32 %v15568_v50, 0.0 }
  0xd5   : > { %v6513_v59 = vmax.f32 %v6511_v42, 0.0 }
  0xd6   : > { %780 = vmatmul.f32.vlgmr.msrb.gmra.mxu1 %v15526_v14  ;;  %852 = vmatmul.f32.vlgmr.msra.gmra.mxu0 %v15526_v14  ;;  %v1553_v7 = vsub.f32 %v1071_v60, %v15739_v36 }
  0xd7   : > { %970 = vmatpush.msrb.mxu1 %v15602_v13  ;;  %926 = vmatmul.f32.vlgmr.msra.gmra.mxu3 %v15526_v14  ;;  %v1118_v13 = vand.u32 4294901760, %v1117_v28 }
  0xd8   : > { %1089 = vmatpush.msra.mxu0 %v15658_v4  ;;  %1165 = vmatpush.msra.mxu3 %v15658_v4  ;;  %v1554_v8 = vand.u32 4294901760, %v1553_v7 }
  0xd9   : > { %900 = vmatmul.f32.vlgmr.msra.gmra.mxu2 %v15591_v2  ;;  %v15711_v35 = vld.sshfl [vmem:[#allocation1] sm:$0xff pattern:$0x75316420]  ;;  %v15713_v37 = vld.sshfl [vmem:[#allocation1 + $0x8] sm:$0xff pattern:$0x75316420]  ;;  %v1093_v2 = vsub.f32 %v15696_v27, %v15709_v34 }
  0xda   : > { %1142 = vmatpush.msra.mxu2 %v1115_v12  ;;  %5900 = vst [vmem:[#allocation1] ss:$2 sm:$0xff] %v15558_v46 }
  0xdb   : > { %v15718_v48 = vld.sshfl [vmem:[#allocation1 + $0x10] sm:$0xff pattern:$0x75316420]  ;;  %v15720_v57 = vld.sshfl [vmem:[#allocation1 + $0x18] sm:$0xff pattern:$0x75316420] }
  0xdc   : > { %5902 = vst [vmem:[#allocation1 + $0x10] ss:$2 sm:$0xff] %v15560_v47 }
  0xde   : > { %874 = vmatmul.f32.vlgmr.msra.gmra.mxu1 %v15526_v14  ;;  %950 = vmatmul.f32.vlgmr.msrb.gmra.mxu0 %v15539_v31  ;;  %v15734_v31 = vand.u32 4294901760, %v1093_v2 }
  0xdf   : > { %1020 = vmatmul.f32.vlgmr.msrb.gmra.mxu3 %v15526_v14  ;;  %1119 = vmatpush.msra.mxu1 %v1118_v13 }
  0xe0   : > { %1191 = vmatpush.msrb.mxu0 %v1116_v21  ;;  %1265 = vmatpush.msrb.mxu3 %v1264_v39  ;;  %v8332_v21 = vmax.f32 %v15552_v43, 0.0  ;;  %v10151_v39 = vmax.f32 %v15565_v49, 0.0 }
  0xe1   : > { %998 = vmatmul.f32.vlgmr.msrb.gmra.mxu2 %v15526_v14  ;;  %v15737_v62 = vld.sshfl [vmem:[#allocation1] sm:$0xff pattern:$0x75316420]  ;;  %v15741_v3 = vld.sshfl [vmem:[#allocation1 + $0x8] sm:$0xff pattern:$0x75316420]  ;;  %v1407_v14 = vsub.f32 %v1069_v58, %v1380_v61 }
  0xe2   : > { %1235 = vmatpush.msrb.mxu2 %v15675_v15  ;;  %6517 = vst [vmem:[#allocation1] ss:$2 sm:$0xff] %v6513_v59 }
  0xe3   : > { %v15745_v26 = vld.sshfl [vmem:[#allocation1 + $0x10] sm:$0xff pattern:$0x75316420]  ;;  %v15749_v30 = vld.sshfl [vmem:[#allocation1 + $0x18] sm:$0xff pattern:$0x75316420] }
  0xe4   : > { %6519 = vst [vmem:[#allocation1 + $0x10] ss:$2 sm:$0xff] %v6514_v1  ;;  %v11970_v1 = vmax.f32 %v15571_v51, 0.0 }
  0xe6   : > { %974 = vmatmul.f32.vlgmr.msrb.gmra.mxu1 %v15584_v55  ;;  %1095 = vmatmul.f32.vlgmr.msra.gmra.mxu0 %v15734_v31  ;;  %v1408_v55 = vand.u32 4294901760, %v1407_v14 }
  0xe7   : > { %1169 = vmatmul.f32.vlgmr.msra.gmra.mxu3 %v15709_v34  ;;  %1213 = vmatpush.msrb.mxu1 %v15658_v4 }
  0xe8   : > { %1288 = vmatpush.msra.mxu0 %v15682_v19  ;;  %1359 = vmatpush.msra.mxu3 %v15675_v15  ;;  %v1409_v4 = vsub.f32 %v1407_v14, %v1408_v55  ;;  %v1555_v19 = vsub.f32 %v1553_v7, %v1554_v8 }
  0xe9   : > { %1145 = vmatmul.f32.vlgmr.msra.gmra.mxu2 %v15696_v27  ;;  %v15755_v9 = vld.sshfl [vmem:[#allocation1] sm:$0xff pattern:$0x75316420]  ;;  %v15757_v10 = vld.sshfl [vmem:[#allocation1 + $0x8] sm:$0xff pattern:$0x75316420] }
  0xea   : > { %1337 = vmatpush.msra.mxu2 %v1262_v22  ;;  %7719 = vst [vmem:[#allocation1] ss:$2 sm:$0xff] %v15558_v46  ;;  %v1410_v22 = vand.u32 4294901760, %v1409_v4  ;;  %v1556_v25 = vand.u32 4294901760, %v1555_v19 }
  0xeb   : > { %v15764_v12 = vld.sshfl [vmem:[#allocation1 + $0x10] sm:$0xff pattern:$0x75316420]  ;;  %v15766_v16 = vld.sshfl [vmem:[#allocation1 + $0x18] sm:$0xff pattern:$0x75316420] }
  0xec   : > { %7721 = vst [vmem:[#allocation1 + $0x10] ss:$2 sm:$0xff] %v15560_v47 }
  0xee   : > { %1121 = vmatmul.f32.vlgmr.msra.gmra.mxu1 %v15679_v18  ;;  %1193 = vmatmul.f32.vlgmr.msrb.gmra.mxu0 %v15679_v18 }
  0xef   : > { %1267 = vmatmul.f32.vlgmr.msrb.gmra.mxu3 %v15679_v18  ;;  %1311 = vmatpush.msra.mxu1 %v15675_v15 }
  0xf0   : > { %1381 = vmatpush.msrb.mxu0 %v1380_v61  ;;  %1457 = vmatpush.msrb.mxu3 %v1380_v61 }
  0xf1   : > { %1241 = vmatmul.f32.vlgmr.msrb.gmra.mxu2 %v15734_v31  ;;  %v15771_v28 = vld.sshfl [vmem:[#allocation1] sm:$0xff pattern:$0x75316420]  ;;  %v15773_v15 = vld.sshfl [vmem:[#allocation1 + $0x8] sm:$0xff pattern:$0x75316420] }
  0xf2   : > { %1434 = vmatpush.msrb.mxu2 %v1407_v14  ;;  %8336 = vst [vmem:[#allocation1] ss:$2 sm:$0xff] %v8332_v21 }
  0xf3   : > { %v15779_v43 = vld.sshfl [vmem:[#allocation1 + $0x10] sm:$0xff pattern:$0x75316420]  ;;  %v15781_v32 = vld.sshfl [vmem:[#allocation1 + $0x18] sm:$0xff pattern:$0x75316420] }
  0xf4   : > { %8338 = vst [vmem:[#allocation1 + $0x10] ss:$2 sm:$0xff] %v8333_v29  ;;  %v13790_v29 = vmax.f32 %v15581_v54, 0.0 }
  0xf6   : > { %1215 = vmatmul.f32.vlgmr.msrb.gmra.mxu1 %v15679_v18  ;;  %1291 = vmatmul.f32.vlgmr.msra.gmra.mxu0 %v15696_v27 }
  0xf7   : > { %1361 = vmatmul.f32.vlgmr.msra.gmra.mxu3 %v15679_v18  ;;  %1411 = vmatpush.msrb.mxu1 %v1410_v22  ;;  %v13789_v22 = vmax.f32 %v15578_v53, 0.0 }
  0xf8   : > { %1483 = vmatpush.msra.mxu0 %v1408_v55  ;;  %1557 = vmatpush.msra.mxu3 %v1556_v25 }
  0xf9   : > { %1339 = vmatmul.f32.vlgmr.msra.gmra.mxu2 %v15679_v18  ;;  %v15785_v44 = vld.sshfl [vmem:[#allocation1] sm:$0xff pattern:$0x75316420]  ;;  %v15787_v33 = vld.sshfl [vmem:[#allocation1 + $0x8] sm:$0xff pattern:$0x75316420] }
  0xfa   : > { %1527 = vmatpush.msra.mxu2 %v15739_v36  ;;  %9538 = vst [vmem:[#allocation1] ss:$2 sm:$0xff] %v15558_v46  ;;  %v15864_v53 = vpop.permute.xlu2 %415 }
  0xfb   : > { %v15794_v13 = vld.sshfl [vmem:[#allocation1 + $0x10] sm:$0xff pattern:$0x75316420]  ;;  %v15797_v38 = vld.sshfl [vmem:[#allocation1 + $0x18] sm:$0xff pattern:$0x75316420] }
  0xfc   : > { %17286 = vst [vmem:[#allocation11_spill] sm:$0xff] %v15797_v38 }
  0xfd   : > { %9540 = vst [vmem:[#allocation1 + $0x10] ss:$2 sm:$0xff] %v15560_v47 }
  0xfe   : > { %1315 = vmatmul.f32.vlgmr.msra.gmra.mxu1 %v15709_v34  ;;  %1387 = vmatmul.f32.vlgmr.msrb.gmra.mxu0 %v15734_v31 }
  0xff   : > { %1505 = vmatpush.msra.mxu1 %v1380_v61  ;;  %1461 = vmatmul.f32.vlgmr.msrb.gmra.mxu3 %v15709_v34 }
 0x100   : > { %1580 = vmatpush.msrb.mxu0 %v1553_v7  ;;  %1651 = vmatpush.msrb.mxu3 %v15739_v36  ;;  %v11971_v7 = vmax.f32 %v15574_v52, 0.0 }
 0x101   : > { %1437 = vmatmul.f32.vlgmr.msrb.gmra.mxu2 %v15696_v27  ;;  %v15801_v42 = vld.sshfl [vmem:[#allocation1] sm:$0xff pattern:$0x75316420]  ;;  %v15805_v2 = vld.sshfl [vmem:[#allocation1 + $0x8] sm:$0xff pattern:$0x75316420] }
 0x102   : > { %1629 = vmatpush.msrb.mxu2 %v1554_v8  ;;  %17287 = vst [vmem:[#allocation12_spill] sm:$0xff] %v15801_v42 }
 0x103   : > { %17288 = vst [vmem:[#allocation13_spill] sm:$0xff] %v15805_v2 }
 0x104   : > { %10155 = vst [vmem:[#allocation1] ss:$2 sm:$0xff] %v10151_v39  ;;  %v15811_v49 = vld.sshfl [vmem:[#allocation1 + $0x10] sm:$0xff pattern:$0x75316420] }
 0x105   : > { %17289 = vst [vmem:[#allocation14_spill] sm:$0xff] %v15811_v49  ;;  %v15815_v58 = vld.sshfl [vmem:[#allocation1 + $0x18] sm:$0xff pattern:$0x75316420] }
 0x106   : > { %1413 = vmatmul.f32.vlgmr.msrb.gmra.mxu1 %v15679_v18  ;;  %1485 = vmatmul.f32.vlgmr.msra.gmra.mxu0 %v15679_v18  ;;  %17290 = vst [vmem:[#allocation15_spill] sm:$0xff] %v15815_v58 }
 0x107   : > { %1603 = vmatpush.msrb.mxu1 %v15739_v36  ;;  %1559 = vmatmul.f32.vlgmr.msra.gmra.mxu3 %v15679_v18  ;;  %10157 = vst [vmem:[#allocation1 + $0x10] ss:$2 sm:$0xff] %v10152_v17 }
 0x109   : > { %1533 = vmatmul.f32.vlgmr.msra.gmra.mxu2 %v15734_v31 }
 0x10b   : > { %v15818_v59 = vld.sshfl [vmem:[#allocation1] sm:$0xff pattern:$0x75316420]  ;;  %v15820_v60 = vld.sshfl [vmem:[#allocation1 + $0x8] sm:$0xff pattern:$0x75316420] }
 0x10c   : > { %17291 = vst [vmem:[#allocation16_spill] sm:$0xff] %v15818_v59 }
 0x10d   : > { %17292 = vst [vmem:[#allocation17_spill] sm:$0xff] %v15820_v60 }
 0x10e   : > { %1507 = vmatmul.f32.vlgmr.msra.gmra.mxu1 %v15679_v18  ;;  %1583 = vmatmul.f32.vlgmr.msrb.gmra.mxu0 %v15696_v27  ;;  %11357 = vst [vmem:[#allocation1] ss:$2 sm:$0xff] %v15558_v46  ;;  %v15825_v50 = vld.sshfl [vmem:[#allocation1 + $0x10] sm:$0xff pattern:$0x75316420] }
 0x10f   : > { %1653 = vmatmul.f32.vlgmr.msrb.gmra.mxu3 %v15679_v18  ;;  %17293 = vst [vmem:[#allocation18_spill] sm:$0xff] %v15825_v50  ;;  %v15827_v61 = vld.sshfl [vmem:[#allocation1 + $0x18] sm:$0xff pattern:$0x75316420] }
 0x110   : > { %17294 = vst [vmem:[#allocation19_spill] sm:$0xff] %v15827_v61 }
 0x111   : > { %1631 = vmatmul.f32.vlgmr.msrb.gmra.mxu2 %v15679_v18  ;;  %11359 = vst [vmem:[#allocation1 + $0x10] ss:$2 sm:$0xff] %v15560_v47 }
 0x115   : > { %v15831_v36 = vld.sshfl [vmem:[#allocation1] sm:$0xff pattern:$0x75316420]  ;;  %v15833_v14 = vld.sshfl [vmem:[#allocation1 + $0x8] sm:$0xff pattern:$0x75316420] }
 0x116   : > { %1607 = vmatmul.f32.vlgmr.msrb.gmra.mxu1 %v15709_v34  ;;  %17295 = vst [vmem:[#allocation20_spill] sm:$0xff] %v15831_v36 }
 0x117   : > { %17296 = vst [vmem:[#allocation21_spill] sm:$0xff] %v15833_v14 }
 0x118   : > { %11974 = vst [vmem:[#allocation1] ss:$2 sm:$0xff] %v11970_v1  ;;  %v15836_v55 = vld.sshfl [vmem:[#allocation1 + $0x10] sm:$0xff pattern:$0x75316420] }
 0x119   : > { %17297 = vst [vmem:[#allocation22_spill] sm:$0xff] %v15836_v55  ;;  %v15838_v8 = vld.sshfl [vmem:[#allocation1 + $0x18] sm:$0xff pattern:$0x75316420] }
 0x11a   : > { %17298 = vst [vmem:[#allocation23_spill] sm:$0xff] %v15838_v8 }
 0x11b   : > { %11976 = vst [vmem:[#allocation1 + $0x10] ss:$2 sm:$0xff] %v11971_v7 }
 0x11f   : > { %v15840_v4 = vld.sshfl [vmem:[#allocation1] sm:$0xff pattern:$0x75316420]  ;;  %v15842_v19 = vld.sshfl [vmem:[#allocation1 + $0x8] sm:$0xff pattern:$0x75316420] }
 0x120   : > { %17299 = vst [vmem:[#allocation24_spill] sm:$0xff] %v15840_v4 }
 0x121   : > { %17300 = vst [vmem:[#allocation25_spill] sm:$0xff] %v15842_v19 }
 0x122   : > { %13176 = vst [vmem:[#allocation1] ss:$2 sm:$0xff] %v15558_v46  ;;  %v15845_v21 = vld.sshfl [vmem:[#allocation1 + $0x10] sm:$0xff pattern:$0x75316420]  ;;  %v410_v46 = vld [vmem:[%s17274_s6] sm:$0xff] }
 0x123   : > { %17301 = vst [vmem:[#allocation26_spill] sm:$0xff] %v15845_v21  ;;  %v15847_v51 = vld.sshfl [vmem:[#allocation1 + $0x18] sm:$0xff pattern:$0x75316420] }
 0x124   : > { %17302 = vst [vmem:[#allocation27_spill] sm:$0xff] %v15847_v51 }
 0x125   : > { %13178 = vst [vmem:[#allocation1 + $0x10] ss:$2 sm:$0xff] %v15560_v47  ;;  %v1658_v47 = vsel %vm427_vm0, %v410_v46, 0 }
 0x126   : > { %v15866_v7 = vand.u32 4294901760, %v1658_v47 }
 0x129   : > { %v15851_v52 = vld.sshfl [vmem:[#allocation1] sm:$0xff pattern:$0x75316420]  ;;  %v15853_v25 = vld.sshfl [vmem:[#allocation1 + $0x8] sm:$0xff pattern:$0x75316420] }
 0x12a   : > { %17303 = vst [vmem:[#allocation28_spill] sm:$0xff] %v15851_v52 }
 0x12b   : > { %17304 = vst [vmem:[#allocation29_spill] sm:$0xff] %v15853_v25 }
 0x12c   : > { %13793 = vst [vmem:[#allocation1] ss:$2 sm:$0xff] %v13789_v22  ;;  %v15856_v39 = vld.sshfl [vmem:[#allocation1 + $0x10] sm:$0xff pattern:$0x75316420] }
 0x12d   : > { %17305 = vst [vmem:[#allocation30_spill] sm:$0xff] %v15856_v39  ;;  %v15858_v17 = vld.sshfl [vmem:[#allocation1 + $0x18] sm:$0xff pattern:$0x75316420]  ;;  %v15870_v39 = vsub.f32 %v1658_v47, %v15866_v7 }
 0x12e   : > { %17306 = vst [vmem:[#allocation31_spill] sm:$0xff] %v15858_v17 }
 0x12f   : > { %13795 = vst [vmem:[#allocation1 + $0x10] ss:$2 sm:$0xff] %v13790_v29  ;;  %v15873_v29 = vand.u32 4294901760, %v15870_v39 }
 0x133   : > { %v463_v1 = vpop.f32.mrf.mxu0 }
 0x134   : > { %v464_v22 = vadd.f32 %v463_v1, %v15864_v53  ;;  %v1692_v1 = vsub.f32 %v15870_v39, %v15873_v29 }
 0x139   : > { %v537_v25 = vpop.f32.mrf.mxu3 }
 0x13b   : > { %v489_v54 = vpop.f32.mrf.mxu1  ;;  %v513_v52 = vpop.f32.mrf.mxu2 }
 0x13c   : > { %v490_v17 = vadd.f32 %v489_v54, %v464_v22  ;;  %v561_v51 = vpop.f32.mrf.mxu0 }
 0x13e   : > { %v514_v21 = vadd.f32 %v513_v52, %v490_v17  ;;  %v15879_v52 = vand.u32 4294901760, %v1692_v1 }
 0x140   : > { %v538_v19 = vadd.f32 %v537_v25, %v514_v21 }
 0x142   : > { %v562_v46 = vadd.f32 %v561_v51, %v538_v19  ;;  %v635_v4 = vpop.f32.mrf.mxu3 }
 0x143   : > { %v583_v8 = vpop.f32.mrf.mxu1 }
 0x144   : > { %v584_v55 = vadd.f32 %v583_v8, %v562_v46  ;;  %v659_v14 = vpop.f32.mrf.mxu0  ;;  %v609_v36 = vpop.f32.mrf.mxu2 }
 0x145   : > { %v610_v47 = vadd.f32 %v609_v36, %v15864_v53 }
 0x146   : > { %v1024_v61 = vmax.f32 %v584_v55, 0.0 }
 0x147   : > { %v636_v54 = vadd.f32 %v635_v4, %v610_v47 }
 0x148   : > { %v1661_v22 = vsel %vm431_vm1, %v1024_v61, 0 }
 0x149   : > { %v1687_v21 = vand.u32 4294901760, %v1661_v22  ;;  %v660_v25 = vadd.f32 %v659_v14, %v636_v54 }
 0x14a   : > { %v729_v17 = vpop.f32.mrf.mxu3 }
 0x14b   : > { %v1714_v19 = vsub.f32 %v1661_v22, %v1687_v21  ;;  %v683_v51 = vpop.f32.mrf.mxu1  ;;  %1688 = vmatpush.msra.mxu0 %v1687_v21  ;;  %1764 = vmatpush.msra.mxu3 %v1687_v21 }
 0x14c   : > { %v684_v8 = vadd.f32 %v683_v51, %v660_v25  ;;  %1694 = vmatmul.f32.vlgmr.msra.gmra.mxu0 %v15879_v52  ;;  %1768 = vmatmul.f32.vlgmr.msra.gmra.mxu3 %v15873_v29  ;;  %v707_v55 = vpop.f32.mrf.mxu2  ;;  %v755_v46 = vpop.f32.mrf.mxu0 }
 0x14d   : > { %1741 = vmatpush.msra.mxu2 %v1714_v19  ;;  %v1715_v36 = vand.u32 4294901760, %v1714_v19  ;;  %v756_v47 = vadd.f32 %v755_v46, %v15864_v53 }
 0x14e   : > { %v708_v61 = vadd.f32 %v707_v55, %v684_v8  ;;  %1744 = vmatmul.f32.vlgmr.msra.gmra.mxu2 %v15870_v39 }
 0x14f   : > { %1790 = vmatpush.msrb.mxu0 %v1715_v36  ;;  %v1716_v4 = vsub.f32 %v1714_v19, %v1715_v36 }
 0x150   : > { %v730_v14 = vadd.f32 %v729_v17, %v708_v61 }
 0x151   : > { %v1717_v1 = vand.u32 4294901760, %v1716_v4 }
 0x152   : > { %v1025_v22 = vmax.f32 %v730_v14, 0.0  ;;  %v829_v25 = vpop.f32.mrf.mxu3 }
 0x153   : > { %v781_v54 = vpop.f32.mrf.mxu1  ;;  %1718 = vmatpush.msra.mxu1 %v1717_v1 }
 0x154   : > { %v1664_v51 = vsel %vm431_vm1, %v1025_v22, 0  ;;  %v782_v50 = vadd.f32 %v781_v54, %v756_v47  ;;  %1720 = vmatmul.f32.vlgmr.msra.gmra.mxu1 %v15866_v7  ;;  %1792 = vmatmul.f32.vlgmr.msrb.gmra.mxu0 %v15866_v7  ;;  %v805_v55 = vpop.f32.mrf.mxu2  ;;  %v853_v60 = vpop.f32.mrf.mxu0 }
 0x155   : > { %v1833_v8 = vand.u32 4294901760, %v1664_v51  ;;  %1812 = vmatpush.msrb.mxu1 %v1687_v21 }
 0x156   : > { %v806_v19 = vadd.f32 %v805_v55, %v782_v50 }
 0x157   : > { %v1860_v17 = vsub.f32 %v1664_v51, %v1833_v8  ;;  %1834 = vmatpush.msrb.mxu2 %v1833_v8  ;;  %1910 = vmatpush.msra.mxu1 %v1833_v8 }
 0x158   : > { %v830_v46 = vadd.f32 %v829_v25, %v806_v19  ;;  %1840 = vmatmul.f32.vlgmr.msrb.gmra.mxu2 %v15879_v52 }
 0x159   : > { %1887 = vmatpush.msra.mxu0 %v1860_v17  ;;  %v1861_v36 = vand.u32 4294901760, %v1860_v17 }
 0x15a   : > { %v854_v61 = vadd.f32 %v853_v60, %v830_v46  ;;  %v927_v47 = vpop.f32.mrf.mxu3  ;;  %v2272_v60 = vsel %vm431_vm1, %v15630_v40, 0  ;;  %v15128_v46 = vld [vmem:[%s17271_s3 + $0x4] sm:$0xf] }
 0x15b   : > { %v875_v4 = vpop.f32.mrf.mxu1  ;;  %1936 = vmatpush.msra.mxu2 %v1861_v36  ;;  %v1862_v14 = vsub.f32 %v1860_v17, %v1861_v36 }
 0x15c   : > { %v876_v1 = vadd.f32 %v875_v4, %v854_v61  ;;  %1814 = vmatmul.f32.vlgmr.msrb.gmra.mxu1 %v15866_v7  ;;  %1890 = vmatmul.f32.vlgmr.msra.gmra.mxu0 %v15870_v39  ;;  %v901_v21 = vpop.f32.mrf.mxu2  ;;  %v951_v25 = vpop.f32.mrf.mxu0  ;;  %v2295_v4 = vand.u32 4294901760, %v2272_v60 }
 0x15d   : > { %v1863_v50 = vand.u32 4294901760, %v1862_v14  ;;  %v902_v54 = vadd.f32 %v901_v21, %v15864_v53 }
 0x15e   : > { %v1026_v22 = vmax.f32 %v876_v1, 0.0 }
 0x15f   : > { %1864 = vmatpush.msrb.mxu3 %v1863_v50  ;;  %v928_v55 = vadd.f32 %v927_v47, %v902_v54 }
 0x160   : > { %v1667_v51 = vsel %vm431_vm1, %v1026_v22, 0  ;;  %1866 = vmatmul.f32.vlgmr.msrb.gmra.mxu3 %v15866_v7  ;;  %1938 = vmatmul.f32.vlgmr.msra.gmra.mxu2 %v15866_v7  ;;  %v2322_v22 = vsub.f32 %v2272_v60, %v2295_v4  ;;  %v2274_v60 = vsel %vm431_vm1, %v15632_v41, 0 }
 0x161   : > { %v1979_v19 = vand.u32 4294901760, %v1667_v51  ;;  %1958 = vmatpush.msra.mxu3 %v1833_v8  ;;  %v952_v17 = vadd.f32 %v951_v25, %v928_v55  ;;  %v2270_v8 = vsel %vm427_vm0, %v15128_v46, 0 }
 0x162   : > { %v1021_v40 = vpop.f32.mrf.mxu3  ;;  %v15905_v25 = vand.u32 4294901760, %v2270_v8 }
 0x163   : > { %v2006_v36 = vsub.f32 %v1667_v51, %v1979_v19  ;;  %v975_v61 = vpop.f32.mrf.mxu1  ;;  %1980 = vmatpush.msrb.mxu0 %v1979_v19  ;;  %2056 = vmatpush.msrb.mxu3 %v1979_v19 }
 0x164   : > { %v976_v14 = vadd.f32 %v975_v61, %v952_v17  ;;  %1914 = vmatmul.f32.vlgmr.msra.gmra.mxu1 %v15873_v29  ;;  %1986 = vmatmul.f32.vlgmr.msrb.gmra.mxu0 %v15879_v52  ;;  %v999_v1 = vpop.f32.mrf.mxu2  ;;  %v2323_v17 = vand.u32 4294901760, %v2322_v22  ;;  %v15913_v46 = vsub.f32 %v2270_v8, %v15905_v25 }
 0x165   : > { %2033 = vmatpush.msrb.mxu2 %v2006_v36  ;;  %v2007_v21 = vand.u32 4294901760, %v2006_v36 }
 0x166   : > { %v1000_v47 = vadd.f32 %v999_v1, %v976_v14  ;;  %v2324_v1 = vsub.f32 %v2322_v22, %v2323_v17 }
 0x167   : > { %2082 = vmatpush.msra.mxu0 %v2007_v21  ;;  %v2008_v50 = vsub.f32 %v2006_v36, %v2007_v21  ;;  %v15918_v21 = vand.u32 4294901760, %v15913_v46 }
 0x168   : > { %v1022_v54 = vadd.f32 %v1021_v40, %v1000_v47  ;;  %1960 = vmatmul.f32.vlgmr.msra.gmra.mxu3 %v15866_v7  ;;  %2036 = vmatmul.f32.vlgmr.msrb.gmra.mxu2 %v15870_v39  ;;  %v2441_v40 = vand.u32 4294901760, %v2274_v60  ;;  %v2325_v41 = vand.u32 4294901760, %v2324_v1 }
 0x169   : > { %v2009_v51 = vand.u32 4294901760, %v2008_v50 }
 0x16a   : > { %v1027_v55 = vmax.f32 %v1022_v54, 0.0  ;;  %v2468_v50 = vsub.f32 %v2274_v60, %v2441_v40 }
 0x16b   : > { %2010 = vmatpush.msrb.mxu1 %v2009_v51 }
 0x16c   : > { %v1670_v61 = vsel %vm431_vm1, %v1027_v55, 0  ;;  %2012 = vmatmul.f32.vlgmr.msrb.gmra.mxu1 %v15866_v7  ;;  %2084 = vmatmul.f32.vlgmr.msra.gmra.mxu0 %v15866_v7  ;;  %v2469_v51 = vand.u32 4294901760, %v2468_v50 }
 0x16d   : > { %v2125_v36 = vand.u32 4294901760, %v1670_v61  ;;  %2104 = vmatpush.msra.mxu1 %v1979_v19  ;;  %v2300_v19 = vsub.f32 %v15913_v46, %v15918_v21 }
 0x16e   : > { %v2470_v60 = vsub.f32 %v2468_v50, %v2469_v51 }
 0x16f   : > { %v2152_v14 = vsub.f32 %v1670_v61, %v2125_v36  ;;  %2126 = vmatpush.msra.mxu2 %v2125_v36  ;;  %2202 = vmatpush.msrb.mxu1 %v2125_v36  ;;  %v15926_v55 = vand.u32 4294901760, %v2300_v19  ;;  %v2276_v61 = vsel %vm431_vm1, %v15636_v45, 0 }
 0x170   : > { %2060 = vmatmul.f32.vlgmr.msrb.gmra.mxu3 %v15873_v29  ;;  %2132 = vmatmul.f32.vlgmr.msra.gmra.mxu2 %v15879_v52 }
 0x171   : > { %2179 = vmatpush.msrb.mxu0 %v2152_v14  ;;  %v2153_v47 = vand.u32 4294901760, %v2152_v14 }
 0x173   : > { %2296 = vmatpush.msra.mxu0 %v2295_v4  ;;  %2228 = vmatpush.msrb.mxu2 %v2153_v47  ;;  %v2154_v8 = vsub.f32 %v2152_v14, %v2153_v47  ;;  %v2587_v14 = vand.u32 4294901760, %v2276_v61 }
 0x174   : > { %2106 = vmatmul.f32.vlgmr.msra.gmra.mxu1 %v15866_v7  ;;  %2182 = vmatmul.f32.vlgmr.msrb.gmra.mxu0 %v15870_v39 }
 0x175   : > { %2326 = vmatpush.msra.mxu1 %v2325_v41  ;;  %2349 = vmatpush.msra.mxu2 %v2322_v22  ;;  %v2155_v54 = vand.u32 4294901760, %v2154_v8  ;;  %v2471_v22 = vand.u32 4294901760, %v2470_v60  ;;  %v15942_v8 = vpop.f32.mrf.mxu0 }
 0x176   : > { %2398 = vmatpush.msrb.mxu0 %v2323_v17  ;;  %v2614_v17 = vsub.f32 %v2276_v61, %v2587_v14 }
 0x177   : > { %2156 = vmatpush.msra.mxu3 %v2155_v54  ;;  %v15950_v54 = vpop.f32.mrf.mxu1 }
 0x178   : > { %2158 = vmatmul.f32.vlgmr.msra.gmra.mxu3 %v15866_v7  ;;  %2230 = vmatmul.f32.vlgmr.msrb.gmra.mxu2 %v15866_v7  ;;  %v2615_v45 = vand.u32 4294901760, %v2614_v17  ;;  %v1123_v58 = vadd.f32 %v15950_v54, %v15942_v8 }
 0x179   : > { %2250 = vmatpush.msrb.mxu3 %v2125_v36  ;;  %2442 = vmatpush.msrb.mxu2 %v2441_v40  ;;  %v2278_v36 = vsel %vm431_vm1, %v15639_v56, 0 }
 0x17a   : > { %v2733_v1 = vand.u32 4294901760, %v2278_v36 }
 0x17b   : > { %2372 = vmatpush.msra.mxu3 %v2295_v4 }
 0x17c   : > { %2206 = vmatmul.f32.vlgmr.msrb.gmra.mxu1 %v15873_v29  ;;  %2302 = vmatmul.f32.vlgmr.msra.gmra.mxu0 %v15926_v55  ;;  %v2760_v41 = vsub.f32 %v2278_v36, %v2733_v1 }
 0x17d   : > { %2420 = vmatpush.msrb.mxu1 %v2295_v4  ;;  %2495 = vmatpush.msra.mxu0 %v2468_v50  ;;  %v2616_v4 = vsub.f32 %v2614_v17, %v2615_v45  ;;  %v2886_v50 = vsel %vm431_vm1, %v15648_v63, 0 }
 0x17e   : > { %v2761_v56 = vand.u32 4294901760, %v2760_v41  ;;  %v2909_v19 = vand.u32 4294901760, %v2886_v50 }
 0x17f   : > { %v2617_v47 = vand.u32 4294901760, %v2616_v4  ;;  %v15964_v4 = vpop.f32.mrf.mxu1 }
 0x180   : > { %2252 = vmatmul.f32.vlgmr.msrb.gmra.mxu3 %v15866_v7  ;;  %2352 = vmatmul.f32.vlgmr.msra.gmra.mxu2 %v15913_v46  ;;  %v2936_v60 = vsub.f32 %v2886_v50, %v2909_v19 }
 0x181   : > { %2472 = vmatpush.msrb.mxu3 %v2471_v22  ;;  %2544 = vmatpush.msra.mxu2 %v2469_v51  ;;  %v15952_v51 = vpop.f32.mrf.mxu2  ;;  %v15954_v22 = vpop.f32.mrf.mxu0 }
 0x182   : > { %v2937_v63 = vand.u32 4294901760, %v2936_v60 }
 0x184   : > { %2328 = vmatmul.f32.vlgmr.msra.gmra.mxu1 %v15905_v25  ;;  %2400 = vmatmul.f32.vlgmr.msrb.gmra.mxu0 %v15905_v25 }
 0x185   : > { %2518 = vmatpush.msra.mxu1 %v2441_v40  ;;  %2588 = vmatpush.msrb.mxu0 %v2587_v14 }
 0x188   : > { %2376 = vmatmul.f32.vlgmr.msra.gmra.mxu3 %v15918_v21  ;;  %2448 = vmatmul.f32.vlgmr.msrb.gmra.mxu2 %v15926_v55 }
 0x189   : > { %2566 = vmatpush.msra.mxu3 %v2441_v40  ;;  %2641 = vmatpush.msrb.mxu2 %v2614_v17  ;;  %v2762_v40 = vsub.f32 %v2760_v41, %v2761_v56  ;;  %v15956_v17 = vpop.f32.mrf.mxu3 }
 0x18b   : > { %v2763_v61 = vand.u32 4294901760, %v2762_v40 }
 0x18c   : > { %2422 = vmatmul.f32.vlgmr.msrb.gmra.mxu1 %v15905_v25  ;;  %2498 = vmatmul.f32.vlgmr.msra.gmra.mxu0 %v15913_v46 }
 0x18d   : > { %2618 = vmatpush.msrb.mxu1 %v2617_v47  ;;  %2690 = vmatpush.msra.mxu0 %v2615_v45  ;;  %v2938_v45 = vsub.f32 %v2936_v60, %v2937_v63  ;;  %v15968_v47 = vpop.f32.mrf.mxu2 }
 0x18f   : > { %v2939_v50 = vand.u32 4294901760, %v2938_v45 }
 0x190   : > { %2474 = vmatmul.f32.vlgmr.msrb.gmra.mxu3 %v15905_v25  ;;  %2546 = vmatmul.f32.vlgmr.msra.gmra.mxu2 %v15905_v25 }
 0x191   : > { %2664 = vmatpush.msrb.mxu3 %v2587_v14  ;;  %2734 = vmatpush.msra.mxu2 %v2733_v1 }
 0x194   : > { %2522 = vmatmul.f32.vlgmr.msra.gmra.mxu1 %v15918_v21  ;;  %2594 = vmatmul.f32.vlgmr.msrb.gmra.mxu0 %v15926_v55 }
 0x195   : > { %2712 = vmatpush.msra.mxu1 %v2587_v14  ;;  %2787 = vmatpush.msrb.mxu0 %v2760_v41  ;;  %v2888_v14 = vsel %vm431_vm1, %v15651_v0, 0  ;;  %v15970_v41 = vpop.f32.mrf.mxu0 }
 0x196   : > { %v3055_v36 = vand.u32 4294901760, %v2888_v14 }
 0x198   : > { %2568 = vmatmul.f32.vlgmr.msra.gmra.mxu3 %v15905_v25  ;;  %2644 = vmatmul.f32.vlgmr.msrb.gmra.mxu2 %v15913_v46  ;;  %v3082_v0 = vsub.f32 %v2888_v14, %v3055_v36 }
 0x199   : > { %2764 = vmatpush.msra.mxu3 %v2763_v61  ;;  %2836 = vmatpush.msrb.mxu2 %v2761_v56  ;;  %v15972_v56 = vpop.f32.mrf.mxu3  ;;  %v15982_v61 = vpop.f32.mrf.mxu2 }
 0x19a   : > { %v3083_v40 = vand.u32 4294901760, %v3082_v0 }
 0x19c   : > { %2620 = vmatmul.f32.vlgmr.msrb.gmra.mxu1 %v15905_v25  ;;  %2692 = vmatmul.f32.vlgmr.msra.gmra.mxu0 %v15905_v25 }
 0x19d   : > { %2810 = vmatpush.msrb.mxu1 %v2733_v1  ;;  %2910 = vmatpush.msra.mxu0 %v2909_v19  ;;  %v15984_v14 = vpop.f32.mrf.mxu0 }
 0x1a0   : > { %2668 = vmatmul.f32.vlgmr.msrb.gmra.mxu3 %v15918_v21  ;;  %2740 = vmatmul.f32.vlgmr.msra.gmra.mxu2 %v15926_v55  ;;  %v2890_v55 = vsel %vm431_vm1, %v15661_v5, 0 }
 0x1a1   : > { %2858 = vmatpush.msrb.mxu3 %v2733_v1  ;;  %2963 = vmatpush.msra.mxu2 %v2936_v60  ;;  %v15980_v1 = vpop.f32.mrf.mxu1  ;;  %v3084_v60 = vsub.f32 %v3082_v0, %v3083_v40  ;;  %v15986_v45 = vpop.f32.mrf.mxu3 }
 0x1a4   : > { %2714 = vmatmul.f32.vlgmr.msra.gmra.mxu1 %v15905_v25  ;;  %2790 = vmatmul.f32.vlgmr.msrb.gmra.mxu0 %v15913_v46  ;;  %v3201_v46 = vand.u32 4294901760, %v2890_v55 }
 0x1a5   : > { %2940 = vmatpush.msra.mxu1 %v2939_v50  ;;  %3012 = vmatpush.msrb.mxu0 %v2937_v63  ;;  %v3085_v63 = vand.u32 4294901760, %v3084_v60 }
 0x1a6   : > { %v3228_v5 = vsub.f32 %v2890_v55, %v3201_v46 }
 0x1a8   : > { %2766 = vmatmul.f32.vlgmr.msra.gmra.mxu3 %v15905_v25  ;;  %2838 = vmatmul.f32.vlgmr.msrb.gmra.mxu2 %v15905_v25  ;;  %v3229_v59 = vand.u32 4294901760, %v3228_v5 }
 0x1a9   : > { %2986 = vmatpush.msra.mxu3 %v2909_v19  ;;  %3056 = vmatpush.msrb.mxu2 %v3055_v36  ;;  %v15992_v50 = vpop.f32.mrf.mxu1 }
 0x1aa   : > { %v3230_v55 = vsub.f32 %v3228_v5, %v3229_v59 }
 0x1ac   : > { %2814 = vmatmul.f32.vlgmr.msrb.gmra.mxu1 %v15918_v21  ;;  %2916 = vmatmul.f32.vlgmr.msra.gmra.mxu0 %v15734_v31  ;;  %v15996_v21 = vpop.f32.mrf.mxu2  ;;  %v3231_v60 = vand.u32 4294901760, %v3230_v55 }
 0x1ad   : > { %3034 = vmatpush.msrb.mxu1 %v2909_v19  ;;  %3109 = vmatpush.msra.mxu0 %v3082_v0  ;;  %v2892_v19 = vsel %vm431_vm1, %v15663_v6, 0  ;;  %v16000_v0 = vpop.f32.mrf.mxu0 }
 0x1b0   : > { %2860 = vmatmul.f32.vlgmr.msrb.gmra.mxu3 %v15905_v25  ;;  %2966 = vmatmul.f32.vlgmr.msra.gmra.mxu2 %v15696_v27  ;;  %v16002_v25 = vpop.f32.mrf.mxu3 }
 0x1b1   : > { %3086 = vmatpush.msrb.mxu3 %v3085_v63  ;;  %3158 = vmatpush.msra.mxu2 %v3083_v40  ;;  %v3347_v40 = vand.u32 4294901760, %v2892_v19  ;;  %v16008_v6 = vpop.f32.mrf.mxu1 }
 0x1b3   : > { %v3374_v63 = vsub.f32 %v2892_v19, %v3347_v40 }
 0x1b4   : > { %2942 = vmatmul.f32.vlgmr.msra.gmra.mxu1 %v15679_v18  ;;  %3014 = vmatmul.f32.vlgmr.msrb.gmra.mxu0 %v15679_v18  ;;  %v16012_v49 = vpop.f32.mrf.mxu2 }
 0x1b5   : > { %3132 = vmatpush.msra.mxu1 %v3055_v36  ;;  %3202 = vmatpush.msrb.mxu0 %v3201_v46  ;;  %v16014_v2 = vpop.f32.mrf.mxu0 }
 0x1b8   : > { %2990 = vmatmul.f32.vlgmr.msra.gmra.mxu3 %v15709_v34  ;;  %3062 = vmatmul.f32.vlgmr.msrb.gmra.mxu2 %v15734_v31  ;;  %v16016_v42 = vpop.f32.mrf.mxu3 }
 0x1b9   : > { %3180 = vmatpush.msra.mxu3 %v3055_v36  ;;  %3255 = vmatpush.msrb.mxu2 %v3228_v5  ;;  %v3375_v36 = vand.u32 4294901760, %v3374_v63  ;;  %v16024_v19 = vpop.f32.mrf.mxu1 }
 0x1bb   : > { %v3376_v5 = vsub.f32 %v3374_v63, %v3375_v36 }
 0x1bc   : > { %3036 = vmatmul.f32.vlgmr.msrb.gmra.mxu1 %v15679_v18  ;;  %3112 = vmatmul.f32.vlgmr.msra.gmra.mxu0 %v15696_v27  ;;  %v16028_v55 = vpop.f32.mrf.mxu2 }
 0x1bd   : > { %3232 = vmatpush.msrb.mxu1 %v3231_v60  ;;  %3304 = vmatpush.msra.mxu0 %v3229_v59  ;;  %v1147_v59 = vadd.f32 %v15952_v51, %v1123_v58  ;;  %v3377_v54 = vand.u32 4294901760, %v3376_v5 }
 0x1bf   : > { %v1171_v8 = vadd.f32 %v15956_v17, %v1147_v59 }
 0x1c0   : > { %3088 = vmatmul.f32.vlgmr.msrb.gmra.mxu3 %v15679_v18  ;;  %3160 = vmatmul.f32.vlgmr.msra.gmra.mxu2 %v15679_v18  ;;  %v16030_v51 = vpop.f32.mrf.mxu3 }
 0x1c1   : > { %3278 = vmatpush.msrb.mxu3 %v3201_v46  ;;  %3348 = vmatpush.msra.mxu2 %v3347_v40  ;;  %v1195_v60 = vadd.f32 %v15954_v22, %v1171_v8 }
 0x1c3   : > { %v1217_v17 = vadd.f32 %v15964_v4, %v1195_v60  ;;  %v1415_v60 = vadd.f32 %v15992_v50, %v15984_v14 }
 0x1c4   : > { %3136 = vmatmul.f32.vlgmr.msra.gmra.mxu1 %v15709_v34  ;;  %3208 = vmatmul.f32.vlgmr.msrb.gmra.mxu0 %v15734_v31 }
 0x1c5   : > { %3326 = vmatpush.msra.mxu1 %v3201_v46  ;;  %3401 = vmatpush.msrb.mxu0 %v3374_v63  ;;  %v1269_v46 = vadd.f32 %v15972_v56, %v15968_v47 }
 0x1c8   : > { %3182 = vmatmul.f32.vlgmr.msra.gmra.mxu3 %v15679_v18  ;;  %3258 = vmatmul.f32.vlgmr.msrb.gmra.mxu2 %v15696_v27 }
 0x1c9   : > { %3378 = vmatpush.msra.mxu3 %v3377_v54  ;;  %3450 = vmatpush.msrb.mxu2 %v3375_v36  ;;  %v1695_v58 = vpop.f32.mrf.mxu0  ;;  %v1293_v54 = vadd.f32 %v15970_v41, %v1269_v46 }
 0x1ca   : > { %v1696_v63 = vadd.f32 %v1695_v58, %v1217_v17 }
 0x1cb   : > { %v1317_v47 = vadd.f32 %v15980_v1, %v1293_v54  ;;  %v1561_v54 = vadd.f32 %v16016_v42, %v16012_v49 }
 0x1cc   : > { %3234 = vmatmul.f32.vlgmr.msrb.gmra.mxu1 %v15679_v18  ;;  %3306 = vmatmul.f32.vlgmr.msra.gmra.mxu0 %v15679_v18 }
 0x1cd   : > { %3424 = vmatpush.msrb.mxu1 %v3347_v40  ;;  %v1341_v46 = vadd.f32 %v15982_v61, %v1317_v47 }
 0x1cf   : > { %v1769_v8 = vpop.f32.mrf.mxu3  ;;  %v1363_v1 = vadd.f32 %v15986_v45, %v1341_v46 }
 0x1d0   : > { %3282 = vmatmul.f32.vlgmr.msrb.gmra.mxu3 %v15709_v34  ;;  %3354 = vmatmul.f32.vlgmr.msra.gmra.mxu2 %v15734_v31 }
 0x1d1   : > { %3472 = vmatpush.msrb.mxu3 %v3347_v40  ;;  %v1721_v36 = vpop.f32.mrf.mxu1  ;;  %v1793_v59 = vpop.f32.mrf.mxu0 }
 0x1d2   : > { %v1722_v22 = vadd.f32 %v1721_v36, %v1696_v63  ;;  %v1745_v5 = vpop.f32.mrf.mxu2 }
 0x1d4   : > { %v1746_v38 = vadd.f32 %v1745_v5, %v1722_v22  ;;  %3328 = vmatmul.f32.vlgmr.msra.gmra.mxu1 %v15679_v18  ;;  %3404 = vmatmul.f32.vlgmr.msrb.gmra.mxu0 %v15696_v27 }
 0x1d6   : > { %v1770_v4 = vadd.f32 %v1769_v8, %v1746_v38  ;;  %v1439_v38 = vadd.f32 %v15996_v21, %v1415_v60 }
 0x1d8   : > { %v1794_v56 = vadd.f32 %v1793_v59, %v1770_v4  ;;  %3380 = vmatmul.f32.vlgmr.msra.gmra.mxu3 %v15679_v18  ;;  %3452 = vmatmul.f32.vlgmr.msrb.gmra.mxu2 %v15679_v18  ;;  %v1463_v14 = vadd.f32 %v16002_v25, %v1439_v38  ;;  %v1585_v25 = vadd.f32 %v16014_v2, %v1561_v54 }
 0x1d9   : > { %v1815_v40 = vpop.f32.mrf.mxu1  ;;  %v1891_v58 = vpop.f32.mrf.mxu0 }
 0x1da   : > { %v1816_v41 = vadd.f32 %v1815_v40, %v1794_v56  ;;  %v1487_v5 = vadd.f32 %v16000_v0, %v1463_v14  ;;  %v1609_v0 = vadd.f32 %v16024_v19, %v1585_v25 }
 0x1db   : > { %v1841_v17 = vpop.f32.mrf.mxu2 }
 0x1dc   : > { %2256 = vst [vmem:[%s16050_s26] sm:$0xff] %v1816_v41  ;;  %3428 = vmatmul.f32.vlgmr.msrb.gmra.mxu1 %v15709_v34  ;;  %v1842_v50 = vadd.f32 %v1841_v17, %v1363_v1  ;;  %v1509_v47 = vadd.f32 %v16008_v6, %v1487_v5 }
 0x1e0   : > { %3474 = vmatmul.f32.vlgmr.msrb.gmra.mxu3 %v15679_v18 }
 0x1e1   : > { %v1915_v63 = vpop.f32.mrf.mxu1  ;;  %v1987_v36 = vpop.f32.mrf.mxu0 }
 0x1e2   : > { %v1988_v41 = vadd.f32 %v1987_v36, %v1509_v47 }
 0x1e3   : > { %v1867_v59 = vpop.f32.mrf.mxu3  ;;  %v1939_v22 = vpop.f32.mrf.mxu2 }
 0x1e4   : > { %v1868_v61 = vadd.f32 %v1867_v59, %v1842_v50 }
 0x1e6   : > { %v1892_v8 = vadd.f32 %v1891_v58, %v1868_v61 }
 0x1e8   : > { %v1916_v21 = vadd.f32 %v1915_v63, %v1892_v8  ;;  %v1633_v63 = vadd.f32 %v16028_v55, %v1609_v0 }
 0x1e9   : > { %v2013_v4 = vpop.f32.mrf.mxu1  ;;  %v2085_v45 = vpop.f32.mrf.mxu0 }
 0x1ea   : > { %v1940_v56 = vadd.f32 %v1939_v22, %v1916_v21  ;;  %v2014_v46 = vadd.f32 %v2013_v4, %v1988_v41  ;;  %v1655_v50 = vadd.f32 %v16030_v51, %v1633_v63 }
 0x1eb   : > { %v1961_v40 = vpop.f32.mrf.mxu3  ;;  %v2037_v60 = vpop.f32.mrf.mxu2 }
 0x1ec   : > { %v1962_v17 = vadd.f32 %v1961_v40, %v1940_v56  ;;  %v2038_v42 = vadd.f32 %v2037_v60, %v2014_v46 }
 0x1ee   : > { %2257 = vst [vmem:[%s16050_s26 + $0x8] sm:$0xff] %v1962_v17 }
 0x1f1   : > { %v2107_v58 = vpop.f32.mrf.mxu1  ;;  %v2183_v38 = vpop.f32.mrf.mxu0 }
 0x1f3   : > { %v2061_v49 = vpop.f32.mrf.mxu3  ;;  %v2133_v1 = vpop.f32.mrf.mxu2 }
 0x1f4   : > { %v2062_v6 = vadd.f32 %v2061_v49, %v2038_v42  ;;  %v2134_v36 = vadd.f32 %v2133_v1, %v1655_v50 }
 0x1f6   : > { %v2086_v14 = vadd.f32 %v2085_v45, %v2062_v6 }
 0x1f8   : > { %v2108_v59 = vadd.f32 %v2107_v58, %v2086_v14 }
 0x1f9   : > { %v2207_v2 = vpop.f32.mrf.mxu1  ;;  %v2303_v22 = vpop.f32.mrf.mxu0 }
 0x1fa   : > { %2258 = vst [vmem:[%s16050_s26 + $0x10] sm:$0xff] %v2108_v59  ;;  %v2304_v55 = vadd.f32 %v2303_v22, %v15864_v53 }
 0x1fb   : > { %v2159_v61 = vpop.f32.mrf.mxu3  ;;  %v2231_v5 = vpop.f32.mrf.mxu2 }
 0x1fc   : > { %v2160_v19 = vadd.f32 %v2159_v61, %v2134_v36 }
 0x1fe   : > { %v2184_v8 = vadd.f32 %v2183_v38, %v2160_v19 }
 0x200   : > { %v2208_v54 = vadd.f32 %v2207_v2, %v2184_v8 }
 0x201   : > { %v2329_v21 = vpop.f32.mrf.mxu1  ;;  %v2401_v40 = vpop.f32.mrf.mxu0 }
 0x202   : > { %v2232_v4 = vadd.f32 %v2231_v5, %v2208_v54  ;;  %v2330_v51 = vadd.f32 %v2329_v21, %v2304_v55 }
 0x203   : > { %v2253_v47 = vpop.f32.mrf.mxu3  ;;  %v2353_v56 = vpop.f32.mrf.mxu2 }
 0x204   : > { %v2254_v45 = vadd.f32 %v2253_v47, %v2232_v4  ;;  %v2354_v25 = vadd.f32 %v2353_v56, %v2330_v51 }
 0x206   : > { %2259 = vst [vmem:[%s16050_s26 + $0x18] sm:$0xff] %v2254_v45 }
 0x209   : > { %v2423_v60 = vpop.f32.mrf.mxu1  ;;  %v2499_v58 = vpop.f32.mrf.mxu0 }
 0x20b   : > { %v2377_v41 = vpop.f32.mrf.mxu3  ;;  %v2449_v17 = vpop.f32.mrf.mxu2 }
 0x20c   : > { %v2378_v46 = vadd.f32 %v2377_v41, %v2354_v25  ;;  %v2450_v1 = vadd.f32 %v2449_v17, %v15864_v53 }
 0x20e   : > { %v2402_v0 = vadd.f32 %v2401_v40, %v2378_v46 }
 0x210   : > { %v2424_v42 = vadd.f32 %v2423_v60, %v2402_v0 }
 0x211   : > { %v2523_v38 = vpop.f32.mrf.mxu1  ;;  %v2595_v61 = vpop.f32.mrf.mxu0 }
 0x212   : > { %v2864_v49 = vmax.f32 %v2424_v42, 0.0  ;;  %v2596_v4 = vadd.f32 %v2595_v61, %v15864_v53  ;;  %v4091_v61 = vsel %vm431_vm1, %v15685_v20, 0 }
 0x213   : > { %v2475_v63 = vpop.f32.mrf.mxu3  ;;  %v2547_v6 = vpop.f32.mrf.mxu2 }
 0x214   : > { %v3479_v14 = vsel %vm431_vm1, %v2864_v49, 0  ;;  %v2476_v50 = vadd.f32 %v2475_v63, %v2450_v1 }
 0x215   : > { %v3505_v59 = vand.u32 4294901760, %v3479_v14 }
 0x216   : > { %v2500_v2 = vadd.f32 %v2499_v58, %v2476_v50 }
 0x217   : > { %3506 = vmatpush.msra.mxu0 %v3505_v59  ;;  %3582 = vmatpush.msra.mxu3 %v3505_v59  ;;  %v3532_v36 = vsub.f32 %v3479_v14, %v3505_v59 }
 0x218   : > { %v2524_v22 = vadd.f32 %v2523_v38, %v2500_v2  ;;  %3512 = vmatmul.f32.vlgmr.msra.gmra.mxu0 %v15879_v52  ;;  %3586 = vmatmul.f32.vlgmr.msra.gmra.mxu3 %v15873_v29 }
 0x219   : > { %3559 = vmatpush.msra.mxu2 %v3532_v36  ;;  %v3533_v5 = vand.u32 4294901760, %v3532_v36  ;;  %v2621_v8 = vpop.f32.mrf.mxu1  ;;  %v2693_v25 = vpop.f32.mrf.mxu0 }
 0x21a   : > { %v2548_v19 = vadd.f32 %v2547_v6, %v2524_v22  ;;  %3562 = vmatmul.f32.vlgmr.msra.gmra.mxu2 %v15870_v39  ;;  %v2622_v45 = vadd.f32 %v2621_v8, %v2596_v4 }
 0x21b   : > { %v2569_v54 = vpop.f32.mrf.mxu3  ;;  %3608 = vmatpush.msrb.mxu0 %v3533_v5  ;;  %v3534_v21 = vsub.f32 %v3532_v36, %v3533_v5  ;;  %v2645_v56 = vpop.f32.mrf.mxu2 }
 0x21c   : > { %v2570_v47 = vadd.f32 %v2569_v54, %v2548_v19  ;;  %v2646_v41 = vadd.f32 %v2645_v56, %v2622_v45  ;;  %v15135_v54 = vld [vmem:[%s17271_s3 + $0x8] sm:$0xf] }
 0x21d   : > { %v3535_v55 = vand.u32 4294901760, %v3534_v21 }
 0x21e   : > { %v2865_v40 = vmax.f32 %v2570_v47, 0.0  ;;  %v4114_v47 = vand.u32 4294901760, %v4091_v61 }
 0x21f   : > { %3536 = vmatpush.msra.mxu1 %v3535_v55  ;;  %v4089_v55 = vsel %vm427_vm0, %v15135_v54, 0 }
 0x220   : > { %v3482_v51 = vsel %vm431_vm1, %v2865_v40, 0  ;;  %3538 = vmatmul.f32.vlgmr.msra.gmra.mxu1 %v15866_v7  ;;  %3610 = vmatmul.f32.vlgmr.msrb.gmra.mxu0 %v15866_v7 }
 0x221   : > { %v3651_v60 = vand.u32 4294901760, %v3482_v51  ;;  %3630 = vmatpush.msrb.mxu1 %v3505_v59  ;;  %v2715_v0 = vpop.f32.mrf.mxu1  ;;  %v2791_v2 = vpop.f32.mrf.mxu0 }
 0x223   : > { %v3678_v17 = vsub.f32 %v3482_v51, %v3651_v60  ;;  %v2669_v46 = vpop.f32.mrf.mxu3  ;;  %3652 = vmatpush.msrb.mxu2 %v3651_v60  ;;  %3728 = vmatpush.msra.mxu1 %v3651_v60  ;;  %v2741_v49 = vpop.f32.mrf.mxu2 }
 0x224   : > { %v2670_v58 = vadd.f32 %v2669_v46, %v2646_v41  ;;  %3658 = vmatmul.f32.vlgmr.msrb.gmra.mxu2 %v15879_v52  ;;  %v2742_v14 = vadd.f32 %v2741_v49, %v15864_v53  ;;  %v16096_v41 = vand.u32 4294901760, %v4089_v55 }
 0x225   : > { %3705 = vmatpush.msra.mxu0 %v3678_v17  ;;  %v3679_v42 = vand.u32 4294901760, %v3678_v17 }
 0x226   : > { %v2694_v38 = vadd.f32 %v2693_v25, %v2670_v58 }
 0x227   : > { %3754 = vmatpush.msra.mxu2 %v3679_v42  ;;  %v3680_v1 = vsub.f32 %v3678_v17, %v3679_v42  ;;  %v4093_v42 = vsel %vm431_vm1, %v15687_v11, 0 }
 0x228   : > { %v2716_v63 = vadd.f32 %v2715_v0, %v2694_v38  ;;  %3632 = vmatmul.f32.vlgmr.msrb.gmra.mxu1 %v15866_v7  ;;  %3708 = vmatmul.f32.vlgmr.msra.gmra.mxu0 %v15870_v39  ;;  %v16104_v38 = vsub.f32 %v4089_v55, %v16096_v41 }
 0x229   : > { %v3681_v6 = vand.u32 4294901760, %v3680_v1  ;;  %v2815_v19 = vpop.f32.mrf.mxu1 }
 0x22a   : > { %v2866_v50 = vmax.f32 %v2716_v63, 0.0 }
 0x22b   : > { %v2767_v59 = vpop.f32.mrf.mxu3  ;;  %3682 = vmatpush.msrb.mxu3 %v3681_v6  ;;  %v2839_v4 = vpop.f32.mrf.mxu2  ;;  %v4260_v6 = vand.u32 4294901760, %v4093_v42 }
 0x22c   : > { %v3485_v36 = vsel %vm431_vm1, %v2866_v50, 0  ;;  %v2768_v22 = vadd.f32 %v2767_v59, %v2742_v14  ;;  %3684 = vmatmul.f32.vlgmr.msrb.gmra.mxu3 %v15866_v7  ;;  %3756 = vmatmul.f32.vlgmr.msra.gmra.mxu2 %v15866_v7  ;;  %v16109_v14 = vand.u32 4294901760, %v16104_v38 }
 0x22d   : > { %v3797_v5 = vand.u32 4294901760, %v3485_v36  ;;  %3776 = vmatpush.msra.mxu3 %v3651_v60  ;;  %v4141_v60 = vsub.f32 %v4091_v61, %v4114_v47 }
 0x22e   : > { %v2792_v8 = vadd.f32 %v2791_v2, %v2768_v22  ;;  %v4287_v2 = vsub.f32 %v4093_v42, %v4260_v6 }
 0x22f   : > { %v3824_v21 = vsub.f32 %v3485_v36, %v3797_v5  ;;  %3798 = vmatpush.msrb.mxu0 %v3797_v5  ;;  %3874 = vmatpush.msrb.mxu3 %v3797_v5  ;;  %v4142_v0 = vand.u32 4294901760, %v4141_v60  ;;  %v4119_v36 = vsub.f32 %v16104_v38, %v16109_v14 }
 0x230   : > { %v2816_v56 = vadd.f32 %v2815_v19, %v2792_v8  ;;  %3732 = vmatmul.f32.vlgmr.msra.gmra.mxu1 %v15873_v29  ;;  %3804 = vmatmul.f32.vlgmr.msrb.gmra.mxu0 %v15879_v52  ;;  %v4288_v61 = vand.u32 4294901760, %v4287_v2  ;;  %v4095_v19 = vsel %vm431_vm1, %v15690_v23, 0 }
 0x231   : > { %3851 = vmatpush.msrb.mxu2 %v3824_v21  ;;  %v3825_v20 = vand.u32 4294901760, %v3824_v21  ;;  %v4143_v63 = vsub.f32 %v4141_v60, %v4142_v0  ;;  %v4406_v54 = vand.u32 4294901760, %v4095_v19 }
 0x232   : > { %v2840_v45 = vadd.f32 %v2839_v4, %v2816_v56  ;;  %v4289_v8 = vsub.f32 %v4287_v2, %v4288_v61  ;;  %v4097_v56 = vsel %vm431_vm1, %v15692_v24, 0 }
 0x233   : > { %v2861_v40 = vpop.f32.mrf.mxu3  ;;  %3900 = vmatpush.msra.mxu0 %v3825_v20  ;;  %v3826_v51 = vsub.f32 %v3824_v21, %v3825_v20  ;;  %v4144_v11 = vand.u32 4294901760, %v4143_v63  ;;  %v4433_v4 = vsub.f32 %v4095_v19, %v4406_v54  ;;  %v4552_v20 = vand.u32 4294901760, %v4097_v56 }
 0x234   : > { %v2862_v25 = vadd.f32 %v2861_v40, %v2840_v45  ;;  %3778 = vmatmul.f32.vlgmr.msra.gmra.mxu3 %v15866_v7  ;;  %3854 = vmatmul.f32.vlgmr.msrb.gmra.mxu2 %v15870_v39  ;;  %v4290_v21 = vand.u32 4294901760, %v4289_v8  ;;  %v16133_v40 = vpop.f32.mrf.mxu0 }
 0x235   : > { %v3827_v17 = vand.u32 4294901760, %v3826_v51  ;;  %v4434_v23 = vand.u32 4294901760, %v4433_v4  ;;  %v4579_v45 = vsub.f32 %v4097_v56, %v4552_v20  ;;  %v4705_v51 = vsel %vm431_vm1, %v15711_v35, 0 }
 0x236   : > { %v2867_v46 = vmax.f32 %v2862_v25, 0.0  ;;  %v4728_v25 = vand.u32 4294901760, %v4705_v51 }
 0x237   : > { %3828 = vmatpush.msrb.mxu1 %v3827_v17  ;;  %v4580_v24 = vand.u32 4294901760, %v4579_v45  ;;  %v16141_v17 = vpop.f32.mrf.mxu1 }
 0x238   : > { %v3488_v58 = vsel %vm431_vm1, %v2867_v46, 0  ;;  %3830 = vmatmul.f32.vlgmr.msrb.gmra.mxu1 %v15866_v7  ;;  %3902 = vmatmul.f32.vlgmr.msra.gmra.mxu0 %v15866_v7  ;;  %v16143_v46 = vpop.f32.mrf.mxu2 }
 0x239   : > { %v3943_v49 = vand.u32 4294901760, %v3488_v58  ;;  %3922 = vmatpush.msra.mxu1 %v3797_v5  ;;  %v16117_v5 = vand.u32 4294901760, %v4119_v36 }
 0x23b   : > { %v3970_v1 = vsub.f32 %v3488_v58, %v3943_v49  ;;  %3944 = vmatpush.msra.mxu2 %v3943_v49  ;;  %4020 = vmatpush.msrb.mxu1 %v3943_v49  ;;  %v4755_v58 = vsub.f32 %v4705_v51, %v4728_v25 }
 0x23c   : > { %3878 = vmatmul.f32.vlgmr.msrb.gmra.mxu3 %v15873_v29  ;;  %3950 = vmatmul.f32.vlgmr.msra.gmra.mxu2 %v15879_v52  ;;  %v16145_v42 = vpop.f32.mrf.mxu0 }
 0x23d   : > { %3997 = vmatpush.msrb.mxu0 %v3970_v1  ;;  %v3971_v50 = vand.u32 4294901760, %v3970_v1  ;;  %v4756_v35 = vand.u32 4294901760, %v4755_v58 }
 0x23f   : > { %4115 = vmatpush.msra.mxu0 %v4114_v47  ;;  %4046 = vmatpush.msrb.mxu2 %v3971_v50  ;;  %v3972_v59 = vsub.f32 %v3970_v1, %v3971_v50  ;;  %v4707_v1 = vsel %vm431_vm1, %v15713_v37, 0  ;;  %v4757_v63 = vsub.f32 %v4755_v58, %v4756_v35  ;;  %v16155_v50 = vpop.f32.mrf.mxu1 }
 0x240   : > { %3924 = vmatmul.f32.vlgmr.msra.gmra.mxu1 %v15866_v7  ;;  %4000 = vmatmul.f32.vlgmr.msrb.gmra.mxu0 %v15870_v39 }
 0x241   : > { %4145 = vmatpush.msra.mxu1 %v4144_v11  ;;  %4168 = vmatpush.msra.mxu2 %v4141_v60  ;;  %v3973_v22 = vand.u32 4294901760, %v3972_v59  ;;  %v4581_v60 = vsub.f32 %v4579_v45, %v4580_v24  ;;  %v16159_v11 = vpop.f32.mrf.mxu2  ;;  %v4758_v36 = vand.u32 4294901760, %v4757_v63 }
 0x242   : > { %4217 = vmatpush.msrb.mxu0 %v4142_v0 }
 0x243   : > { %3974 = vmatpush.msra.mxu3 %v3973_v22  ;;  %v4582_v0 = vand.u32 4294901760, %v4581_v60  ;;  %v2944_v60 = vadd.f32 %v16141_v17, %v16133_v40 }
 0x244   : > { %3976 = vmatmul.f32.vlgmr.msra.gmra.mxu3 %v15866_v7  ;;  %4048 = vmatmul.f32.vlgmr.msrb.gmra.mxu2 %v15866_v7  ;;  %v16161_v59 = vpop.f32.mrf.mxu0 }
 0x245   : > { %4068 = vmatpush.msrb.mxu3 %v3943_v49  ;;  %4261 = vmatpush.msrb.mxu2 %v4260_v6  ;;  %v16147_v49 = vpop.f32.mrf.mxu3 }
 0x247   : > { %4191 = vmatpush.msra.mxu3 %v4114_v47 }
 0x248   : > { %4024 = vmatmul.f32.vlgmr.msrb.gmra.mxu1 %v15873_v29  ;;  %4121 = vmatmul.f32.vlgmr.msra.gmra.mxu0 %v16117_v5 }
 0x249   : > { %4239 = vmatpush.msrb.mxu1 %v4114_v47  ;;  %4314 = vmatpush.msra.mxu0 %v4287_v2  ;;  %v4435_v47 = vsub.f32 %v4433_v4, %v4434_v23  ;;  %v16173_v19 = vpop.f32.mrf.mxu2 }
 0x24b   : > { %v4436_v55 = vand.u32 4294901760, %v4435_v47  ;;  %v4711_v47 = vsel %vm431_vm1, %v15720_v57, 0 }
 0x24c   : > { %4070 = vmatmul.f32.vlgmr.msrb.gmra.mxu3 %v15866_v7  ;;  %4171 = vmatmul.f32.vlgmr.msra.gmra.mxu2 %v16104_v38 }
 0x24d   : > { %4291 = vmatpush.msrb.mxu3 %v4290_v21  ;;  %4363 = vmatpush.msra.mxu2 %v4288_v61  ;;  %v16163_v2 = vpop.f32.mrf.mxu3  ;;  %v4709_v61 = vsel %vm431_vm1, %v15718_v48, 0 }
 0x250   : > { %4147 = vmatmul.f32.vlgmr.msra.gmra.mxu1 %v16096_v41  ;;  %4219 = vmatmul.f32.vlgmr.msrb.gmra.mxu0 %v16096_v41 }
 0x251   : > { %4337 = vmatpush.msra.mxu1 %v4260_v6  ;;  %4407 = vmatpush.msrb.mxu0 %v4406_v54 }
 0x254   : > { %4195 = vmatmul.f32.vlgmr.msra.gmra.mxu3 %v16109_v14  ;;  %4267 = vmatmul.f32.vlgmr.msrb.gmra.mxu2 %v16117_v5 }
 0x255   : > { %4385 = vmatpush.msra.mxu3 %v4260_v6  ;;  %4460 = vmatpush.msrb.mxu2 %v4433_v4  ;;  %v4874_v6 = vand.u32 4294901760, %v4707_v1  ;;  %v16177_v21 = vpop.f32.mrf.mxu3 }
 0x257   : > { %v4901_v37 = vsub.f32 %v4707_v1, %v4874_v6  ;;  %v2968_v1 = vadd.f32 %v16143_v46, %v2944_v60 }
 0x258   : > { %4241 = vmatmul.f32.vlgmr.msrb.gmra.mxu1 %v16096_v41  ;;  %4317 = vmatmul.f32.vlgmr.msra.gmra.mxu0 %v16104_v38 }
 0x259   : > { %4437 = vmatpush.msrb.mxu1 %v4436_v55  ;;  %4509 = vmatpush.msra.mxu0 %v4434_v23  ;;  %v4902_v22 = vand.u32 4294901760, %v4901_v37  ;;  %v2992_v40 = vadd.f32 %v16147_v49, %v2968_v1 }
 0x25b   : > { %v4903_v8 = vsub.f32 %v4901_v37, %v4902_v22 }
 0x25c   : > { %4293 = vmatmul.f32.vlgmr.msrb.gmra.mxu3 %v16096_v41  ;;  %4365 = vmatmul.f32.vlgmr.msra.gmra.mxu2 %v16096_v41 }
 0x25d   : > { %4483 = vmatpush.msrb.mxu3 %v4406_v54  ;;  %4553 = vmatpush.msra.mxu2 %v4552_v20  ;;  %v4904_v4 = vand.u32 4294901760, %v4903_v8 }
 0x260   : > { %4341 = vmatmul.f32.vlgmr.msra.gmra.mxu1 %v16109_v14  ;;  %4413 = vmatmul.f32.vlgmr.msrb.gmra.mxu0 %v16117_v5 }
 0x261   : > { %4531 = vmatpush.msra.mxu1 %v4406_v54  ;;  %4606 = vmatpush.msrb.mxu0 %v4579_v45  ;;  %v16175_v54 = vpop.f32.mrf.mxu0  ;;  %v5166_v45 = vand.u32 4294901760, %v4711_v47 }
 0x263   : > { %v5193_v51 = vsub.f32 %v4711_v47, %v5166_v45 }
 0x264   : > { %4387 = vmatmul.f32.vlgmr.msra.gmra.mxu3 %v16096_v41  ;;  %4463 = vmatmul.f32.vlgmr.msrb.gmra.mxu2 %v16104_v38 }
 0x265   : > { %4583 = vmatpush.msra.mxu3 %v4582_v0  ;;  %4655 = vmatpush.msrb.mxu2 %v4580_v24 }
 0x268   : > { %4439 = vmatmul.f32.vlgmr.msrb.gmra.mxu1 %v16096_v41  ;;  %4511 = vmatmul.f32.vlgmr.msra.gmra.mxu0 %v16096_v41 }
 0x269   : > { %4629 = vmatpush.msrb.mxu1 %v4552_v20  ;;  %4729 = vmatpush.msra.mxu0 %v4728_v25 }
 0x26c   : > { %4487 = vmatmul.f32.vlgmr.msrb.gmra.mxu3 %v16109_v14  ;;  %4559 = vmatmul.f32.vlgmr.msra.gmra.mxu2 %v16117_v5  ;;  %v16171_v5 = vpop.f32.mrf.mxu1 }
 0x26d   : > { %4677 = vmatpush.msrb.mxu3 %v4552_v20  ;;  %4782 = vmatpush.msra.mxu2 %v4755_v58  ;;  %v16191_v20 = vpop.f32.mrf.mxu0 }
 0x270   : > { %4533 = vmatmul.f32.vlgmr.msra.gmra.mxu1 %v16096_v41  ;;  %4609 = vmatmul.f32.vlgmr.msrb.gmra.mxu0 %v16104_v38  ;;  %v5020_v38 = vand.u32 4294901760, %v4709_v61 }
 0x271   : > { %4759 = vmatpush.msra.mxu1 %v4758_v36  ;;  %4831 = vmatpush.msrb.mxu0 %v4756_v35  ;;  %v5194_v35 = vand.u32 4294901760, %v5193_v51 }
 0x272   : > { %v5047_v48 = vsub.f32 %v4709_v61, %v5020_v38  ;;  %v3090_v61 = vadd.f32 %v16163_v2, %v16159_v11 }
 0x273   : > { %v5195_v63 = vsub.f32 %v5193_v51, %v5194_v35 }
 0x274   : > { %4585 = vmatmul.f32.vlgmr.msra.gmra.mxu3 %v16096_v41  ;;  %4657 = vmatmul.f32.vlgmr.msrb.gmra.mxu2 %v16096_v41  ;;  %v16183_v23 = vpop.f32.mrf.mxu1  ;;  %v5048_v56 = vand.u32 4294901760, %v5047_v48  ;;  %v3114_v47 = vadd.f32 %v16161_v59, %v3090_v61 }
 0x275   : > { %4805 = vmatpush.msra.mxu3 %v4728_v25  ;;  %4875 = vmatpush.msrb.mxu2 %v4874_v6  ;;  %v16205_v0 = vpop.f32.mrf.mxu0  ;;  %v5196_v17 = vand.u32 4294901760, %v5195_v63 }
 0x276   : > { %v5049_v55 = vsub.f32 %v5047_v48, %v5048_v56  ;;  %v3138_v11 = vadd.f32 %v16171_v5, %v3114_v47 }
 0x278   : > { %4633 = vmatmul.f32.vlgmr.msrb.gmra.mxu1 %v16109_v14  ;;  %4735 = vmatmul.f32.vlgmr.msra.gmra.mxu0 %v15734_v31  ;;  %v16187_v14 = vpop.f32.mrf.mxu2  ;;  %v5050_v24 = vand.u32 4294901760, %v5049_v55 }
 0x279   : > { %4853 = vmatpush.msrb.mxu1 %v4728_v25  ;;  %4928 = vmatpush.msra.mxu0 %v4901_v37 }
 0x27c   : > { %4679 = vmatmul.f32.vlgmr.msrb.gmra.mxu3 %v16096_v41  ;;  %4785 = vmatmul.f32.vlgmr.msra.gmra.mxu2 %v15696_v27  ;;  %v16193_v41 = vpop.f32.mrf.mxu3  ;;  %v16199_v57 = vpop.f32.mrf.mxu1 }
 0x27d   : > { %4905 = vmatpush.msrb.mxu3 %v4904_v4  ;;  %4977 = vmatpush.msra.mxu2 %v4902_v22  ;;  %v3016_v22 = vadd.f32 %v16145_v42, %v2992_v40 }
 0x27f   : > { %v3038_v49 = vadd.f32 %v16155_v50, %v3016_v22 }
 0x280   : > { %4761 = vmatmul.f32.vlgmr.msra.gmra.mxu1 %v15679_v18  ;;  %4833 = vmatmul.f32.vlgmr.msrb.gmra.mxu0 %v15679_v18  ;;  %v16203_v25 = vpop.f32.mrf.mxu2 }
 0x281   : > { %4951 = vmatpush.msra.mxu1 %v4874_v6  ;;  %5021 = vmatpush.msrb.mxu0 %v5020_v38 }
 0x284   : > { %4809 = vmatmul.f32.vlgmr.msra.gmra.mxu3 %v15709_v34  ;;  %4881 = vmatmul.f32.vlgmr.msrb.gmra.mxu2 %v15734_v31  ;;  %v16207_v58 = vpop.f32.mrf.mxu3 }
 0x285   : > { %4999 = vmatpush.msra.mxu3 %v4874_v6  ;;  %5074 = vmatpush.msrb.mxu2 %v5047_v48  ;;  %v16215_v6 = vpop.f32.mrf.mxu1  ;;  %v3382_v61 = vadd.f32 %v16207_v58, %v16203_v25 }
 0x288   : > { %4855 = vmatmul.f32.vlgmr.msrb.gmra.mxu1 %v15679_v18  ;;  %4931 = vmatmul.f32.vlgmr.msra.gmra.mxu0 %v15696_v27  ;;  %v16219_v36 = vpop.f32.mrf.mxu2 }
 0x289   : > { %5051 = vmatpush.msrb.mxu1 %v5050_v24  ;;  %5123 = vmatpush.msra.mxu0 %v5048_v56 }
 0x28c   : > { %4907 = vmatmul.f32.vlgmr.msrb.gmra.mxu3 %v15679_v18  ;;  %4979 = vmatmul.f32.vlgmr.msra.gmra.mxu2 %v15679_v18  ;;  %v16221_v37 = vpop.f32.mrf.mxu3 }
 0x28d   : > { %5097 = vmatpush.msrb.mxu3 %v5020_v38  ;;  %5167 = vmatpush.msra.mxu2 %v5166_v45 }
 0x290   : > { %4955 = vmatmul.f32.vlgmr.msra.gmra.mxu1 %v15709_v34  ;;  %5027 = vmatmul.f32.vlgmr.msrb.gmra.mxu0 %v15734_v31 }
 0x291   : > { %5145 = vmatpush.msra.mxu1 %v5020_v38  ;;  %5220 = vmatpush.msrb.mxu0 %v5193_v51  ;;  %v3236_v51 = vadd.f32 %v16183_v23, %v16175_v54 }
 0x293   : > { %v3260_v1 = vadd.f32 %v16187_v14, %v3236_v51 }
 0x294   : > { %5001 = vmatmul.f32.vlgmr.msra.gmra.mxu3 %v15679_v18  ;;  %5077 = vmatmul.f32.vlgmr.msrb.gmra.mxu2 %v15696_v27 }
 0x295   : > { %5197 = vmatpush.msra.mxu3 %v5196_v17  ;;  %5269 = vmatpush.msrb.mxu2 %v5194_v35  ;;  %v3513_v46 = vpop.f32.mrf.mxu0  ;;  %v3162_v35 = vadd.f32 %v16173_v19, %v3138_v11  ;;  %v3284_v17 = vadd.f32 %v16193_v41, %v3260_v1  ;;  %v3406_v41 = vadd.f32 %v16205_v0, %v3382_v61 }
 0x296   : > { %v3514_v8 = vadd.f32 %v3513_v46, %v3038_v49 }
 0x297   : > { %v3184_v5 = vadd.f32 %v16177_v21, %v3162_v35  ;;  %v3308_v19 = vadd.f32 %v16191_v20, %v3284_v17  ;;  %v3430_v20 = vadd.f32 %v16215_v6, %v3406_v41 }
 0x298   : > { %5053 = vmatmul.f32.vlgmr.msrb.gmra.mxu1 %v15679_v18  ;;  %5125 = vmatmul.f32.vlgmr.msra.gmra.mxu0 %v15679_v18 }
 0x299   : > { %5243 = vmatpush.msrb.mxu1 %v5166_v45 }
 0x29b   : > { %v3587_v56 = vpop.f32.mrf.mxu3 }
 0x29c   : > { %5101 = vmatmul.f32.vlgmr.msrb.gmra.mxu3 %v15709_v34  ;;  %5173 = vmatmul.f32.vlgmr.msra.gmra.mxu2 %v15734_v31 }
 0x29d   : > { %5291 = vmatpush.msrb.mxu3 %v5166_v45  ;;  %v3539_v38 = vpop.f32.mrf.mxu1  ;;  %v3611_v4 = vpop.f32.mrf.mxu0 }
 0x29e   : > { %v3540_v48 = vadd.f32 %v3539_v38, %v3514_v8  ;;  %v3563_v42 = vpop.f32.mrf.mxu2  ;;  %v3330_v38 = vadd.f32 %v16199_v57, %v3308_v19 }
 0x2a0   : > { %v3564_v55 = vadd.f32 %v3563_v42, %v3540_v48  ;;  %5147 = vmatmul.f32.vlgmr.msra.gmra.mxu1 %v15679_v18  ;;  %5223 = vmatmul.f32.vlgmr.msrb.gmra.mxu0 %v15696_v27 }
 0x2a2   : > { %v3588_v50 = vadd.f32 %v3587_v56, %v3564_v55 }
 0x2a4   : > { %v3612_v2 = vadd.f32 %v3611_v4, %v3588_v50  ;;  %5199 = vmatmul.f32.vlgmr.msra.gmra.mxu3 %v15679_v18  ;;  %5271 = vmatmul.f32.vlgmr.msrb.gmra.mxu2 %v15679_v18 }
 0x2a5   : > { %v3633_v45 = vpop.f32.mrf.mxu1  ;;  %v3709_v24 = vpop.f32.mrf.mxu0 }
 0x2a6   : > { %v3634_v60 = vadd.f32 %v3633_v45, %v3612_v2  ;;  %v3454_v45 = vadd.f32 %v16219_v36, %v3430_v20 }
 0x2a7   : > { %v3659_v59 = vpop.f32.mrf.mxu2 }
 0x2a8   : > { %15131 = vst [vmem:[%s16050_s26 + $0x20] sm:$0xff] %v3634_v60  ;;  %5247 = vmatmul.f32.vlgmr.msrb.gmra.mxu1 %v15709_v34  ;;  %v3660_v46 = vadd.f32 %v3659_v59, %v3184_v5  ;;  %v3476_v51 = vadd.f32 %v16221_v37, %v3454_v45 }
 0x2ac   : > { %5293 = vmatmul.f32.vlgmr.msrb.gmra.mxu3 %v15679_v18 }
 0x2ad   : > { %v3733_v63 = vpop.f32.mrf.mxu1  ;;  %v3805_v40 = vpop.f32.mrf.mxu0 }
 0x2ae   : > { %v3806_v56 = vadd.f32 %v3805_v40, %v3330_v38 }
 0x2af   : > { %v3685_v22 = vpop.f32.mrf.mxu3  ;;  %v3757_v54 = vpop.f32.mrf.mxu2 }
 0x2b0   : > { %v3686_v23 = vadd.f32 %v3685_v22, %v3660_v46 }
 0x2b2   : > { %v3710_v49 = vadd.f32 %v3709_v24, %v3686_v23 }
 0x2b4   : > { %v3734_v14 = vadd.f32 %v3733_v63, %v3710_v49 }
 0x2b5   : > { %v3831_v8 = vpop.f32.mrf.mxu1  ;;  %v3903_v21 = vpop.f32.mrf.mxu0 }
 0x2b6   : > { %v3758_v4 = vadd.f32 %v3757_v54, %v3734_v14  ;;  %v3832_v55 = vadd.f32 %v3831_v8, %v3806_v56 }
 0x2b7   : > { %v3779_v48 = vpop.f32.mrf.mxu3  ;;  %v3855_v42 = vpop.f32.mrf.mxu2 }
 0x2b8   : > { %v3780_v47 = vadd.f32 %v3779_v48, %v3758_v4  ;;  %v3856_v25 = vadd.f32 %v3855_v42, %v3832_v55 }
 0x2ba   : > { %15132 = vst [vmem:[%s16050_s26 + $0x28] sm:$0xff] %v3780_v47 }
 0x2bd   : > { %v3925_v50 = vpop.f32.mrf.mxu1  ;;  %v4001_v11 = vpop.f32.mrf.mxu0 }
 0x2bf   : > { %v3879_v58 = vpop.f32.mrf.mxu3  ;;  %v3951_v2 = vpop.f32.mrf.mxu2 }
 0x2c0   : > { %v3880_v57 = vadd.f32 %v3879_v58, %v3856_v25  ;;  %v3952_v59 = vadd.f32 %v3951_v2, %v3476_v51 }
 0x2c2   : > { %v3904_v24 = vadd.f32 %v3903_v21, %v3880_v57 }
 0x2c4   : > { %v3926_v60 = vadd.f32 %v3925_v50, %v3904_v24 }
 0x2c5   : > { %v4025_v0 = vpop.f32.mrf.mxu1  ;;  %v4122_v35 = vpop.f32.mrf.mxu0 }
 0x2c6   : > { %15133 = vst [vmem:[%s16050_s26 + $0x30] sm:$0xff] %v3926_v60  ;;  %v4123_v36 = vadd.f32 %v4122_v35, %v15864_v53 }
 0x2c7   : > { %v3977_v1 = vpop.f32.mrf.mxu3  ;;  %v4049_v5 = vpop.f32.mrf.mxu2 }
 0x2c8   : > { %v3978_v6 = vadd.f32 %v3977_v1, %v3952_v59 }
 0x2ca   : > { %v4002_v63 = vadd.f32 %v4001_v11, %v3978_v6 }
 0x2cc   : > { %v4026_v40 = vadd.f32 %v4025_v0, %v4002_v63 }
 0x2cd   : > { %v4148_v17 = vpop.f32.mrf.mxu1  ;;  %v4220_v19 = vpop.f32.mrf.mxu0 }
 0x2ce   : > { %v4050_v46 = vadd.f32 %v4049_v5, %v4026_v40  ;;  %v4149_v37 = vadd.f32 %v4148_v17, %v4123_v36 }
 0x2cf   : > { %v4071_v22 = vpop.f32.mrf.mxu3  ;;  %v4172_v54 = vpop.f32.mrf.mxu2 }
 0x2d0   : > { %v4072_v23 = vadd.f32 %v4071_v22, %v4050_v46  ;;  %v4173_v61 = vadd.f32 %v4172_v54, %v4149_v37 }
 0x2d2   : > { %15134 = vst [vmem:[%s16050_s26 + $0x38] sm:$0xff] %v4072_v23 }
 0x2d5   : > { %v4242_v49 = vpop.f32.mrf.mxu1  ;;  %v4318_v4 = vpop.f32.mrf.mxu0 }
 0x2d7   : > { %v4196_v14 = vpop.f32.mrf.mxu3  ;;  %v4268_v8 = vpop.f32.mrf.mxu2 }
 0x2d8   : > { %v4197_v21 = vadd.f32 %v4196_v14, %v4173_v61  ;;  %v4269_v56 = vadd.f32 %v4268_v8, %v15864_v53 }
 0x2da   : > { %v4221_v38 = vadd.f32 %v4220_v19, %v4197_v21 }
 0x2dc   : > { %v4243_v48 = vadd.f32 %v4242_v49, %v4221_v38 }
 0x2dd   : > { %v4342_v42 = vpop.f32.mrf.mxu1  ;;  %v4414_v45 = vpop.f32.mrf.mxu0 }
 0x2de   : > { %v4683_v41 = vmax.f32 %v4243_v48, 0.0  ;;  %v4415_v59 = vadd.f32 %v4414_v45, %v15864_v53 }
 0x2df   : > { %v4294_v47 = vpop.f32.mrf.mxu3  ;;  %v4366_v55 = vpop.f32.mrf.mxu2 }
 0x2e0   : > { %v5298_v20 = vsel %vm431_vm1, %v4683_v41, 0  ;;  %v4295_v50 = vadd.f32 %v4294_v47, %v4269_v56  ;;  %v5910_v47 = vsel %vm431_vm1, %v15737_v62, 0 }
 0x2e1   : > { %v5324_v11 = vand.u32 4294901760, %v5298_v20 }
 0x2e2   : > { %v4319_v25 = vadd.f32 %v4318_v4, %v4295_v50 }
 0x2e3   : > { %5325 = vmatpush.msra.mxu0 %v5324_v11  ;;  %5401 = vmatpush.msra.mxu3 %v5324_v11  ;;  %v5351_v58 = vsub.f32 %v5298_v20, %v5324_v11 }
 0x2e4   : > { %v4343_v2 = vadd.f32 %v4342_v42, %v4319_v25  ;;  %5331 = vmatmul.f32.vlgmr.msra.gmra.mxu0 %v15879_v52  ;;  %5405 = vmatmul.f32.vlgmr.msra.gmra.mxu3 %v15873_v29 }
 0x2e5   : > { %5378 = vmatpush.msra.mxu2 %v5351_v58  ;;  %v5352_v57 = vand.u32 4294901760, %v5351_v58  ;;  %v4440_v51 = vpop.f32.mrf.mxu1  ;;  %v4512_v46 = vpop.f32.mrf.mxu0 }
 0x2e6   : > { %v4367_v24 = vadd.f32 %v4366_v55, %v4343_v2  ;;  %5381 = vmatmul.f32.vlgmr.msra.gmra.mxu2 %v15870_v39  ;;  %v4441_v6 = vadd.f32 %v4440_v51, %v4415_v59  ;;  %v5933_v2 = vand.u32 4294901760, %v5910_v47 }
 0x2e7   : > { %v4388_v60 = vpop.f32.mrf.mxu3  ;;  %5427 = vmatpush.msrb.mxu0 %v5352_v57  ;;  %v5353_v0 = vsub.f32 %v5351_v58, %v5352_v57  ;;  %v4464_v1 = vpop.f32.mrf.mxu2 }
 0x2e8   : > { %v4389_v35 = vadd.f32 %v4388_v60, %v4367_v24  ;;  %v4465_v22 = vadd.f32 %v4464_v1, %v4441_v6 }
 0x2e9   : > { %v5354_v5 = vand.u32 4294901760, %v5353_v0  ;;  %v5960_v0 = vsub.f32 %v5910_v47, %v5933_v2 }
 0x2ea   : > { %v4684_v63 = vmax.f32 %v4389_v35, 0.0 }
 0x2eb   : > { %5355 = vmatpush.msra.mxu1 %v5354_v5  ;;  %v5961_v6 = vand.u32 4294901760, %v5960_v0 }
 0x2ec   : > { %v5301_v40 = vsel %vm431_vm1, %v4684_v63, 0  ;;  %5357 = vmatmul.f32.vlgmr.msra.gmra.mxu1 %v15866_v7  ;;  %5429 = vmatmul.f32.vlgmr.msrb.gmra.mxu0 %v15866_v7 }
 0x2ed   : > { %v5470_v17 = vand.u32 4294901760, %v5301_v40  ;;  %5449 = vmatpush.msrb.mxu1 %v5324_v11  ;;  %v4534_v23 = vpop.f32.mrf.mxu1  ;;  %v4610_v42 = vpop.f32.mrf.mxu0  ;;  %v15142_v11 = vld [vmem:[%s17271_s3 + $0xc] sm:$0xf] }
 0x2ee   : > { %v5908_v57 = vsel %vm427_vm0, %v15142_v11, 0 }
 0x2ef   : > { %v5497_v54 = vsub.f32 %v5301_v40, %v5470_v17  ;;  %v4488_v36 = vpop.f32.mrf.mxu3  ;;  %5471 = vmatpush.msrb.mxu2 %v5470_v17  ;;  %5547 = vmatpush.msra.mxu1 %v5470_v17  ;;  %v4560_v61 = vpop.f32.mrf.mxu2  ;;  %v16284_v35 = vand.u32 4294901760, %v5908_v57  ;;  %v5912_v40 = vsel %vm431_vm1, %v15741_v3, 0 }
 0x2f0   : > { %v4489_v19 = vadd.f32 %v4488_v36, %v4465_v22  ;;  %5477 = vmatmul.f32.vlgmr.msrb.gmra.mxu2 %v15879_v52  ;;  %v4561_v38 = vadd.f32 %v4560_v61, %v15864_v53  ;;  %v6079_v36 = vand.u32 4294901760, %v5912_v40 }
 0x2f1   : > { %5524 = vmatpush.msra.mxu0 %v5497_v54  ;;  %v5498_v37 = vand.u32 4294901760, %v5497_v54 }
 0x2f2   : > { %v4513_v49 = vadd.f32 %v4512_v46, %v4489_v19 }
 0x2f3   : > { %5573 = vmatpush.msra.mxu2 %v5498_v37  ;;  %v5499_v14 = vsub.f32 %v5497_v54, %v5498_v37  ;;  %v5962_v54 = vsub.f32 %v5960_v0, %v5961_v6 }
 0x2f4   : > { %v4535_v8 = vadd.f32 %v4534_v23, %v4513_v49  ;;  %5451 = vmatmul.f32.vlgmr.msrb.gmra.mxu1 %v15866_v7  ;;  %5527 = vmatmul.f32.vlgmr.msra.gmra.mxu0 %v15870_v39  ;;  %v6106_v49 = vsub.f32 %v5912_v40, %v6079_v36 }
 0x2f5   : > { %v5500_v21 = vand.u32 4294901760, %v5499_v14  ;;  %v4634_v20 = vpop.f32.mrf.mxu1  ;;  %v5963_v3 = vand.u32 4294901760, %v5962_v54  ;;  %v16321_v11 = vpop.f32.mrf.mxu0  ;;  %v6528_v54 = vsel %vm431_vm1, %v15764_v12, 0 }
 0x2f6   : > { %v4685_v4 = vmax.f32 %v4535_v8, 0.0  ;;  %v6107_v8 = vand.u32 4294901760, %v6106_v49 }
 0x2f7   : > { %v4586_v48 = vpop.f32.mrf.mxu3  ;;  %5501 = vmatpush.msrb.mxu3 %v5500_v21  ;;  %v4658_v58 = vpop.f32.mrf.mxu2 }
 0x2f8   : > { %v5304_v41 = vsel %vm431_vm1, %v4685_v4, 0  ;;  %v4587_v56 = vadd.f32 %v4586_v48, %v4561_v38  ;;  %5503 = vmatmul.f32.vlgmr.msrb.gmra.mxu3 %v15866_v7  ;;  %5575 = vmatmul.f32.vlgmr.msra.gmra.mxu2 %v15866_v7  ;;  %v5914_v38 = vsel %vm431_vm1, %v15745_v26, 0  ;;  %v6108_v4 = vsub.f32 %v6106_v49, %v6107_v8 }
 0x2f9   : > { %v5616_v55 = vand.u32 4294901760, %v5304_v41  ;;  %5595 = vmatpush.msra.mxu3 %v5470_v17  ;;  %v16292_v17 = vsub.f32 %v5908_v57, %v16284_v35  ;;  %v6225_v48 = vand.u32 4294901760, %v5914_v38 }
 0x2fa   : > { %v4611_v50 = vadd.f32 %v4610_v42, %v4587_v56  ;;  %v6109_v42 = vand.u32 4294901760, %v6108_v4  ;;  %v5916_v56 = vsel %vm431_vm1, %v15749_v30, 0 }
 0x2fb   : > { %v5643_v25 = vsub.f32 %v5304_v41, %v5616_v55  ;;  %5617 = vmatpush.msrb.mxu0 %v5616_v55  ;;  %5693 = vmatpush.msrb.mxu3 %v5616_v55  ;;  %v16297_v23 = vand.u32 4294901760, %v16292_v17  ;;  %v6252_v41 = vsub.f32 %v5914_v38, %v6225_v48 }
 0x2fc   : > { %v4635_v45 = vadd.f32 %v4634_v20, %v4611_v50  ;;  %5551 = vmatmul.f32.vlgmr.msra.gmra.mxu1 %v15873_v29  ;;  %5623 = vmatmul.f32.vlgmr.msrb.gmra.mxu0 %v15879_v52 }
 0x2fd   : > { %5670 = vmatpush.msrb.mxu2 %v5643_v25  ;;  %v5644_v62 = vand.u32 4294901760, %v5643_v25  ;;  %v5938_v61 = vsub.f32 %v16292_v17, %v16297_v23  ;;  %v6253_v26 = vand.u32 4294901760, %v6252_v41 }
 0x2fe   : > { %v4659_v24 = vadd.f32 %v4658_v58, %v4635_v45  ;;  %v16329_v45 = vpop.f32.mrf.mxu1 }
 0x2ff   : > { %v4680_v51 = vpop.f32.mrf.mxu3  ;;  %5719 = vmatpush.msra.mxu0 %v5644_v62  ;;  %v5645_v60 = vsub.f32 %v5643_v25, %v5644_v62  ;;  %v16305_v21 = vand.u32 4294901760, %v5938_v61  ;;  %v6254_v47 = vsub.f32 %v6252_v41, %v6253_v26  ;;  %v6524_v25 = vsel %vm431_vm1, %v15755_v9, 0  ;;  %v16331_v62 = vpop.f32.mrf.mxu2 }
 0x300   : > { %v4681_v59 = vadd.f32 %v4680_v51, %v4659_v24  ;;  %5597 = vmatmul.f32.vlgmr.msra.gmra.mxu3 %v15866_v7  ;;  %5673 = vmatmul.f32.vlgmr.msrb.gmra.mxu2 %v15870_v39  ;;  %v16333_v51 = vpop.f32.mrf.mxu0 }
 0x301   : > { %v5646_v1 = vand.u32 4294901760, %v5645_v60  ;;  %v6255_v20 = vand.u32 4294901760, %v6254_v47 }
 0x302   : > { %v4686_v5 = vmax.f32 %v4681_v59, 0.0 }
 0x303   : > { %5647 = vmatpush.msrb.mxu1 %v5646_v1 }
 0x304   : > { %v5307_v63 = vsel %vm431_vm1, %v4686_v5, 0  ;;  %5649 = vmatmul.f32.vlgmr.msrb.gmra.mxu1 %v15866_v7  ;;  %5721 = vmatmul.f32.vlgmr.msra.gmra.mxu0 %v15866_v7 }
 0x305   : > { %v5762_v46 = vand.u32 4294901760, %v5307_v63  ;;  %5741 = vmatpush.msra.mxu1 %v5616_v55  ;;  %v6371_v55 = vand.u32 4294901760, %v5916_v56 }
 0x306   : > { %v16343_v5 = vpop.f32.mrf.mxu1 }
 0x307   : > { %v5789_v22 = vsub.f32 %v5307_v63, %v5762_v46  ;;  %5763 = vmatpush.msra.mxu2 %v5762_v46  ;;  %5839 = vmatpush.msrb.mxu1 %v5762_v46  ;;  %v6398_v50 = vsub.f32 %v5916_v56, %v6371_v55  ;;  %v16335_v60 = vpop.f32.mrf.mxu3 }
 0x308   : > { %5697 = vmatmul.f32.vlgmr.msrb.gmra.mxu3 %v15873_v29  ;;  %5769 = vmatmul.f32.vlgmr.msra.gmra.mxu2 %v15879_v52  ;;  %v16349_v63 = vpop.f32.mrf.mxu0 }
 0x309   : > { %5816 = vmatpush.msrb.mxu0 %v5789_v22  ;;  %v5790_v19 = vand.u32 4294901760, %v5789_v22  ;;  %v6399_v30 = vand.u32 4294901760, %v6398_v50 }
 0x30b   : > { %5934 = vmatpush.msra.mxu0 %v5933_v2  ;;  %5865 = vmatpush.msrb.mxu2 %v5790_v19  ;;  %v5791_v37 = vsub.f32 %v5789_v22, %v5790_v19  ;;  %v6400_v58 = vsub.f32 %v6398_v50, %v6399_v30 }
 0x30c   : > { %5743 = vmatmul.f32.vlgmr.msra.gmra.mxu1 %v15866_v7  ;;  %5819 = vmatmul.f32.vlgmr.msrb.gmra.mxu0 %v15870_v39 }
 0x30d   : > { %5964 = vmatpush.msra.mxu1 %v5963_v3  ;;  %5987 = vmatpush.msra.mxu2 %v5960_v0  ;;  %v5792_v14 = vand.u32 4294901760, %v5791_v37  ;;  %v6401_v57 = vand.u32 4294901760, %v6400_v58  ;;  %v6526_v0 = vsel %vm431_vm1, %v15757_v10, 0 }
 0x30e   : > { %6036 = vmatpush.msrb.mxu0 %v5961_v6  ;;  %v6693_v1 = vand.u32 4294901760, %v6526_v0  ;;  %v16347_v6 = vpop.f32.mrf.mxu2 }
 0x30f   : > { %5793 = vmatpush.msra.mxu3 %v5792_v14  ;;  %v16351_v40 = vpop.f32.mrf.mxu3 }
 0x310   : > { %5795 = vmatmul.f32.vlgmr.msra.gmra.mxu3 %v15866_v7  ;;  %5867 = vmatmul.f32.vlgmr.msrb.gmra.mxu2 %v15866_v7  ;;  %v6720_v10 = vsub.f32 %v6526_v0, %v6693_v1  ;;  %v16363_v37 = vpop.f32.mrf.mxu0 }
 0x311   : > { %5887 = vmatpush.msrb.mxu3 %v5762_v46  ;;  %6080 = vmatpush.msrb.mxu2 %v6079_v36 }
 0x312   : > { %v6721_v22 = vand.u32 4294901760, %v6720_v10 }
 0x313   : > { %6010 = vmatpush.msra.mxu3 %v5933_v2 }
 0x314   : > { %5843 = vmatmul.f32.vlgmr.msrb.gmra.mxu1 %v15873_v29  ;;  %5940 = vmatmul.f32.vlgmr.msra.gmra.mxu0 %v16305_v21  ;;  %v6722_v3 = vsub.f32 %v6720_v10, %v6721_v22 }
 0x315   : > { %6058 = vmatpush.msrb.mxu1 %v5933_v2  ;;  %6133 = vmatpush.msra.mxu0 %v6106_v49  ;;  %v6547_v2 = vand.u32 4294901760, %v6524_v25 }
 0x316   : > { %v16361_v19 = vpop.f32.mrf.mxu2  ;;  %v6723_v61 = vand.u32 4294901760, %v6722_v3 }
 0x317   : > { %v6574_v24 = vsub.f32 %v6524_v25, %v6547_v2  ;;  %v16365_v49 = vpop.f32.mrf.mxu3 }
 0x318   : > { %5889 = vmatmul.f32.vlgmr.msrb.gmra.mxu3 %v15866_v7  ;;  %5990 = vmatmul.f32.vlgmr.msra.gmra.mxu2 %v16292_v17  ;;  %v16379_v38 = vpop.f32.mrf.mxu0 }
 0x319   : > { %6110 = vmatpush.msrb.mxu3 %v6109_v42  ;;  %6182 = vmatpush.msra.mxu2 %v6107_v8  ;;  %v6575_v9 = vand.u32 4294901760, %v6574_v24 }
 0x31b   : > { %v6576_v59 = vsub.f32 %v6574_v24, %v6575_v9 }
 0x31c   : > { %5966 = vmatmul.f32.vlgmr.msra.gmra.mxu1 %v16284_v35  ;;  %6038 = vmatmul.f32.vlgmr.msrb.gmra.mxu0 %v16284_v35 }
 0x31d   : > { %6156 = vmatpush.msra.mxu1 %v6079_v36  ;;  %6226 = vmatpush.msrb.mxu0 %v6225_v48  ;;  %v6577_v46 = vand.u32 4294901760, %v6576_v59 }
 0x320   : > { %6014 = vmatmul.f32.vlgmr.msra.gmra.mxu3 %v16297_v23  ;;  %6086 = vmatmul.f32.vlgmr.msrb.gmra.mxu2 %v16305_v21  ;;  %v16393_v47 = vpop.f32.mrf.mxu0 }
 0x321   : > { %6204 = vmatpush.msra.mxu3 %v6079_v36  ;;  %6279 = vmatpush.msrb.mxu2 %v6252_v41  ;;  %v16359_v36 = vpop.f32.mrf.mxu1 }
 0x324   : > { %6060 = vmatmul.f32.vlgmr.msrb.gmra.mxu1 %v16284_v35  ;;  %6136 = vmatmul.f32.vlgmr.msra.gmra.mxu0 %v16292_v17 }
 0x325   : > { %6256 = vmatpush.msrb.mxu1 %v6255_v20  ;;  %6328 = vmatpush.msra.mxu0 %v6253_v26  ;;  %v4763_v26 = vadd.f32 %v16329_v45, %v16321_v11 }
 0x328   : > { %6112 = vmatmul.f32.vlgmr.msrb.gmra.mxu3 %v16284_v35  ;;  %6184 = vmatmul.f32.vlgmr.msra.gmra.mxu2 %v16284_v35 }
 0x329   : > { %6302 = vmatpush.msrb.mxu3 %v6225_v48  ;;  %6372 = vmatpush.msra.mxu2 %v6371_v55  ;;  %v16371_v14 = vpop.f32.mrf.mxu1 }
 0x32c   : > { %6160 = vmatmul.f32.vlgmr.msra.gmra.mxu1 %v16297_v23  ;;  %6232 = vmatmul.f32.vlgmr.msrb.gmra.mxu0 %v16305_v21 }
 0x32d   : > { %6350 = vmatpush.msra.mxu1 %v6225_v48  ;;  %6425 = vmatpush.msrb.mxu0 %v6398_v50  ;;  %v4787_v50 = vadd.f32 %v16331_v62, %v4763_v26 }
 0x32f   : > { %v4811_v11 = vadd.f32 %v16335_v60, %v4787_v50  ;;  %v4909_v60 = vadd.f32 %v16351_v40, %v16347_v6 }
 0x330   : > { %6206 = vmatmul.f32.vlgmr.msra.gmra.mxu3 %v16284_v35  ;;  %6282 = vmatmul.f32.vlgmr.msrb.gmra.mxu2 %v16292_v17 }
 0x331   : > { %6402 = vmatpush.msra.mxu3 %v6401_v57  ;;  %6474 = vmatpush.msrb.mxu2 %v6399_v30  ;;  %v4835_v57 = vadd.f32 %v16333_v51, %v4811_v11 }
 0x334   : > { %6258 = vmatmul.f32.vlgmr.msrb.gmra.mxu1 %v16284_v35  ;;  %6330 = vmatmul.f32.vlgmr.msra.gmra.mxu0 %v16284_v35 }
 0x335   : > { %6448 = vmatpush.msrb.mxu1 %v6371_v55  ;;  %6548 = vmatpush.msra.mxu0 %v6547_v2 }
 0x338   : > { %6306 = vmatmul.f32.vlgmr.msrb.gmra.mxu3 %v16297_v23  ;;  %6378 = vmatmul.f32.vlgmr.msra.gmra.mxu2 %v16305_v21  ;;  %v6530_v21 = vsel %vm431_vm1, %v15766_v16, 0  ;;  %v16387_v16 = vpop.f32.mrf.mxu1 }
 0x339   : > { %6496 = vmatpush.msrb.mxu3 %v6371_v55  ;;  %6601 = vmatpush.msra.mxu2 %v6574_v24  ;;  %v6985_v48 = vand.u32 4294901760, %v6530_v21  ;;  %v4857_v24 = vadd.f32 %v16343_v5, %v4835_v57 }
 0x33b   : > { %v7012_v41 = vsub.f32 %v6530_v21, %v6985_v48 }
 0x33c   : > { %6352 = vmatmul.f32.vlgmr.msra.gmra.mxu1 %v16284_v35  ;;  %6428 = vmatmul.f32.vlgmr.msrb.gmra.mxu0 %v16292_v17  ;;  %v6839_v17 = vand.u32 4294901760, %v6528_v54 }
 0x33d   : > { %6578 = vmatpush.msra.mxu1 %v6577_v46  ;;  %6650 = vmatpush.msrb.mxu0 %v6575_v9  ;;  %v7013_v20 = vand.u32 4294901760, %v7012_v41 }
 0x33e   : > { %v6866_v12 = vsub.f32 %v6528_v54, %v6839_v17 }
 0x33f   : > { %v7014_v30 = vsub.f32 %v7012_v41, %v7013_v20 }
 0x340   : > { %6404 = vmatmul.f32.vlgmr.msra.gmra.mxu3 %v16284_v35  ;;  %6476 = vmatmul.f32.vlgmr.msrb.gmra.mxu2 %v16284_v35  ;;  %v6867_v8 = vand.u32 4294901760, %v6866_v12  ;;  %v16403_v58 = vpop.f32.mrf.mxu1 }
 0x341   : > { %6624 = vmatpush.msra.mxu3 %v6547_v2  ;;  %6694 = vmatpush.msrb.mxu2 %v6693_v1  ;;  %v7015_v25 = vand.u32 4294901760, %v7014_v30 }
 0x342   : > { %v6868_v4 = vsub.f32 %v6866_v12, %v6867_v8 }
 0x344   : > { %6452 = vmatmul.f32.vlgmr.msrb.gmra.mxu1 %v16297_v23  ;;  %6554 = vmatmul.f32.vlgmr.msra.gmra.mxu0 %v15734_v31  ;;  %v16375_v23 = vpop.f32.mrf.mxu2  ;;  %v6869_v42 = vand.u32 4294901760, %v6868_v4 }
 0x345   : > { %6672 = vmatpush.msrb.mxu1 %v6547_v2  ;;  %6747 = vmatpush.msra.mxu0 %v6720_v10  ;;  %v4933_v10 = vadd.f32 %v16349_v63, %v4909_v60 }
 0x347   : > { %v4957_v6 = vadd.f32 %v16359_v36, %v4933_v10 }
 0x348   : > { %6498 = vmatmul.f32.vlgmr.msrb.gmra.mxu3 %v16284_v35  ;;  %6604 = vmatmul.f32.vlgmr.msra.gmra.mxu2 %v15696_v27  ;;  %v16381_v35 = vpop.f32.mrf.mxu3 }
 0x349   : > { %6724 = vmatpush.msrb.mxu3 %v6723_v61  ;;  %6796 = vmatpush.msra.mxu2 %v6721_v22 }
 0x34c   : > { %6580 = vmatmul.f32.vlgmr.msra.gmra.mxu1 %v15679_v18  ;;  %6652 = vmatmul.f32.vlgmr.msrb.gmra.mxu0 %v15679_v18  ;;  %v16391_v56 = vpop.f32.mrf.mxu2 }
 0x34d   : > { %6770 = vmatpush.msra.mxu1 %v6693_v1  ;;  %6840 = vmatpush.msrb.mxu0 %v6839_v17 }
 0x350   : > { %6628 = vmatmul.f32.vlgmr.msra.gmra.mxu3 %v15709_v34  ;;  %6700 = vmatmul.f32.vlgmr.msrb.gmra.mxu2 %v15734_v31  ;;  %v16395_v55 = vpop.f32.mrf.mxu3 }
 0x351   : > { %6818 = vmatpush.msra.mxu3 %v6693_v1  ;;  %6893 = vmatpush.msrb.mxu2 %v6866_v12  ;;  %v4981_v12 = vadd.f32 %v16361_v19, %v4957_v6 }
 0x353   : > { %v5003_v36 = vadd.f32 %v16365_v49, %v4981_v12 }
 0x354   : > { %6674 = vmatmul.f32.vlgmr.msrb.gmra.mxu1 %v15679_v18  ;;  %6750 = vmatmul.f32.vlgmr.msra.gmra.mxu0 %v15696_v27  ;;  %v16407_v2 = vpop.f32.mrf.mxu2 }
 0x355   : > { %6870 = vmatpush.msrb.mxu1 %v6869_v42  ;;  %6942 = vmatpush.msra.mxu0 %v6867_v8 }
 0x358   : > { %6726 = vmatmul.f32.vlgmr.msrb.gmra.mxu3 %v15679_v18  ;;  %6798 = vmatmul.f32.vlgmr.msra.gmra.mxu2 %v15679_v18  ;;  %v16409_v62 = vpop.f32.mrf.mxu3 }
 0x359   : > { %6916 = vmatpush.msrb.mxu3 %v6839_v17  ;;  %6986 = vmatpush.msra.mxu2 %v6985_v48 }
 0x35c   : > { %6774 = vmatmul.f32.vlgmr.msra.gmra.mxu1 %v15709_v34  ;;  %6846 = vmatmul.f32.vlgmr.msrb.gmra.mxu0 %v15734_v31 }
 0x35d   : > { %6964 = vmatpush.msra.mxu1 %v6839_v17  ;;  %7039 = vmatpush.msrb.mxu0 %v7012_v41  ;;  %v5055_v17 = vadd.f32 %v16371_v14, %v16363_v37 }
 0x35f   : > { %v5079_v8 = vadd.f32 %v16375_v23, %v5055_v17 }
 0x360   : > { %6820 = vmatmul.f32.vlgmr.msra.gmra.mxu3 %v15679_v18  ;;  %6896 = vmatmul.f32.vlgmr.msrb.gmra.mxu2 %v15696_v27 }
 0x361   : > { %7016 = vmatpush.msra.mxu3 %v7015_v25  ;;  %7088 = vmatpush.msrb.mxu2 %v7013_v20  ;;  %v5332_v45 = vpop.f32.mrf.mxu0  ;;  %v5201_v20 = vadd.f32 %v16395_v55, %v16391_v56 }
 0x362   : > { %v5333_v9 = vadd.f32 %v5332_v45, %v4857_v24 }
 0x364   : > { %6872 = vmatmul.f32.vlgmr.msrb.gmra.mxu1 %v15679_v18  ;;  %6944 = vmatmul.f32.vlgmr.msra.gmra.mxu0 %v15679_v18 }
 0x365   : > { %7062 = vmatpush.msrb.mxu1 %v6985_v48 }
 0x367   : > { %v5406_v46 = vpop.f32.mrf.mxu3 }
 0x368   : > { %6920 = vmatmul.f32.vlgmr.msrb.gmra.mxu3 %v15709_v34  ;;  %6992 = vmatmul.f32.vlgmr.msra.gmra.mxu2 %v15734_v31 }
 0x369   : > { %7110 = vmatpush.msrb.mxu3 %v6985_v48  ;;  %v5358_v0 = vpop.f32.mrf.mxu1  ;;  %v5430_v59 = vpop.f32.mrf.mxu0  ;;  %v5103_v48 = vadd.f32 %v16381_v35, %v5079_v8  ;;  %v5225_v35 = vadd.f32 %v16393_v47, %v5201_v20 }
 0x36a   : > { %v5359_v1 = vadd.f32 %v5358_v0, %v5333_v9  ;;  %v5382_v51 = vpop.f32.mrf.mxu2 }
 0x36b   : > { %v5127_v19 = vadd.f32 %v16379_v38, %v5103_v48  ;;  %v5249_v38 = vadd.f32 %v16403_v58, %v5225_v35 }
 0x36c   : > { %v5383_v22 = vadd.f32 %v5382_v51, %v5359_v1  ;;  %6966 = vmatmul.f32.vlgmr.msra.gmra.mxu1 %v15679_v18  ;;  %7042 = vmatmul.f32.vlgmr.msrb.gmra.mxu0 %v15696_v27 }
 0x36d   : > { %v5149_v30 = vadd.f32 %v16387_v16, %v5127_v19  ;;  %v5273_v1 = vadd.f32 %v16407_v2, %v5249_v38 }
 0x36e   : > { %v5407_v5 = vadd.f32 %v5406_v46, %v5383_v22 }
 0x36f   : > { %v5295_v46 = vadd.f32 %v16409_v62, %v5273_v1 }
 0x370   : > { %v5431_v40 = vadd.f32 %v5430_v59, %v5407_v5  ;;  %7018 = vmatmul.f32.vlgmr.msra.gmra.mxu3 %v15679_v18  ;;  %7090 = vmatmul.f32.vlgmr.msrb.gmra.mxu2 %v15679_v18 }
 0x371   : > { %v5452_v54 = vpop.f32.mrf.mxu1  ;;  %v5528_v3 = vpop.f32.mrf.mxu0 }
 0x372   : > { %v5453_v61 = vadd.f32 %v5452_v54, %v5431_v40 }
 0x373   : > { %v5478_v63 = vpop.f32.mrf.mxu2 }
 0x374   : > { %15138 = vst [vmem:[%s16050_s26 + $0x40] sm:$0xff] %v5453_v61  ;;  %7066 = vmatmul.f32.vlgmr.msrb.gmra.mxu1 %v15709_v34  ;;  %v5479_v42 = vadd.f32 %v5478_v63, %v5003_v36 }
 0x378   : > { %7112 = vmatmul.f32.vlgmr.msrb.gmra.mxu3 %v15679_v18 }
 0x379   : > { %v5552_v21 = vpop.f32.mrf.mxu1  ;;  %v5624_v4 = vpop.f32.mrf.mxu0 }
 0x37a   : > { %v5625_v57 = vadd.f32 %v5624_v4, %v5149_v30 }
 0x37b   : > { %v5504_v41 = vpop.f32.mrf.mxu3  ;;  %v5576_v37 = vpop.f32.mrf.mxu2 }
 0x37c   : > { %v5505_v14 = vadd.f32 %v5504_v41, %v5479_v42 }
 0x37e   : > { %v5529_v26 = vadd.f32 %v5528_v3, %v5505_v14 }
 0x380   : > { %v5553_v23 = vadd.f32 %v5552_v21, %v5529_v26 }
 0x381   : > { %v5650_v50 = vpop.f32.mrf.mxu1  ;;  %v5722_v49 = vpop.f32.mrf.mxu0 }
 0x382   : > { %v5577_v11 = vadd.f32 %v5576_v37, %v5553_v23  ;;  %v5651_v60 = vadd.f32 %v5650_v50, %v5625_v57 }
 0x383   : > { %v5598_v25 = vpop.f32.mrf.mxu3  ;;  %v5674_v45 = vpop.f32.mrf.mxu2 }
 0x384   : > { %v5599_v24 = vadd.f32 %v5598_v25, %v5577_v11  ;;  %v5675_v56 = vadd.f32 %v5674_v45, %v5651_v60 }
 0x386   : > { %15139 = vst [vmem:[%s16050_s26 + $0x48] sm:$0xff] %v5599_v24 }
 0x389   : > { %v5744_v9 = vpop.f32.mrf.mxu1  ;;  %v5820_v0 = vpop.f32.mrf.mxu0 }
 0x38b   : > { %v5698_v55 = vpop.f32.mrf.mxu3  ;;  %v5770_v59 = vpop.f32.mrf.mxu2 }
 0x38c   : > { %v5699_v16 = vadd.f32 %v5698_v55, %v5675_v56  ;;  %v5771_v22 = vadd.f32 %v5770_v59, %v5295_v46 }
 0x38e   : > { %v5723_v51 = vadd.f32 %v5722_v49, %v5699_v16 }
 0x390   : > { %v5745_v10 = vadd.f32 %v5744_v9, %v5723_v51 }
 0x391   : > { %v5844_v47 = vpop.f32.mrf.mxu1  ;;  %v5941_v5 = vpop.f32.mrf.mxu0 }
 0x392   : > { %15140 = vst [vmem:[%s16050_s26 + $0x50] sm:$0xff] %v5745_v10  ;;  %v5942_v2 = vadd.f32 %v5941_v5, %v15864_v53 }
 0x393   : > { %v5796_v6 = vpop.f32.mrf.mxu3  ;;  %v5868_v40 = vpop.f32.mrf.mxu2 }
 0x394   : > { %v5797_v58 = vadd.f32 %v5796_v6, %v5771_v22 }
 0x396   : > { %v5821_v54 = vadd.f32 %v5820_v0, %v5797_v58 }
 0x398   : > { %v5845_v3 = vadd.f32 %v5844_v47, %v5821_v54 }
 0x399   : > { %v5967_v17 = vpop.f32.mrf.mxu1  ;;  %v6039_v36 = vpop.f32.mrf.mxu0 }
 0x39a   : > { %v5869_v61 = vadd.f32 %v5868_v40, %v5845_v3  ;;  %v5968_v62 = vadd.f32 %v5967_v17, %v5942_v2 }
 0x39b   : > { %v5890_v63 = vpop.f32.mrf.mxu3  ;;  %v5991_v12 = vpop.f32.mrf.mxu2 }
 0x39c   : > { %v5891_v8 = vadd.f32 %v5890_v63, %v5869_v61  ;;  %v5992_v4 = vadd.f32 %v5991_v12, %v5968_v62 }
 0x39e   : > { %15141 = vst [vmem:[%s16050_s26 + $0x58] sm:$0xff] %v5891_v8 }
 0x3a1   : > { %v6061_v21 = vpop.f32.mrf.mxu1  ;;  %v6137_v14 = vpop.f32.mrf.mxu0 }
 0x3a3   : > { %v6015_v48 = vpop.f32.mrf.mxu3  ;;  %v6087_v42 = vpop.f32.mrf.mxu2 }
 0x3a4   : > { %v6016_v41 = vadd.f32 %v6015_v48, %v5992_v4  ;;  %v6088_v23 = vadd.f32 %v6087_v42, %v15864_v53  ;;  %v7729_v42 = vsel %vm431_vm1, %v15771_v28, 0 }
 0x3a6   : > { %v6040_v37 = vadd.f32 %v6039_v36, %v6016_v41 }
 0x3a8   : > { %v6062_v19 = vadd.f32 %v6061_v21, %v6040_v37 }
 0x3a9   : > { %v6161_v26 = vpop.f32.mrf.mxu1  ;;  %v6233_v24 = vpop.f32.mrf.mxu0 }
 0x3aa   : > { %v6502_v20 = vmax.f32 %v6062_v19, 0.0  ;;  %v6234_v55 = vadd.f32 %v6233_v24, %v15864_v53  ;;  %v15149_v19 = vld [vmem:[%s17271_s3 + $0x10] sm:$0xf] }
 0x3ab   : > { %v6113_v50 = vpop.f32.mrf.mxu3  ;;  %v6185_v49 = vpop.f32.mrf.mxu2 }
 0x3ac   : > { %v7117_v30 = vsel %vm431_vm1, %v6502_v20, 0  ;;  %v6114_v11 = vadd.f32 %v6113_v50, %v6088_v23  ;;  %v7752_v23 = vand.u32 4294901760, %v7729_v42 }
 0x3ad   : > { %v7143_v25 = vand.u32 4294901760, %v7117_v30 }
 0x3ae   : > { %v6138_v45 = vadd.f32 %v6137_v14, %v6114_v11 }
 0x3af   : > { %7144 = vmatpush.msra.mxu0 %v7143_v25  ;;  %7220 = vmatpush.msra.mxu3 %v7143_v25  ;;  %v7170_v35 = vsub.f32 %v7117_v30, %v7143_v25 }
 0x3b0   : > { %v6162_v57 = vadd.f32 %v6161_v26, %v6138_v45  ;;  %7150 = vmatmul.f32.vlgmr.msra.gmra.mxu0 %v15879_v52  ;;  %7224 = vmatmul.f32.vlgmr.msra.gmra.mxu3 %v15873_v29  ;;  %v7779_v45 = vsub.f32 %v7729_v42, %v7752_v23 }
 0x3b1   : > { %7197 = vmatpush.msra.mxu2 %v7170_v35  ;;  %v7171_v60 = vand.u32 4294901760, %v7170_v35  ;;  %v6259_v9 = vpop.f32.mrf.mxu1  ;;  %v6331_v22 = vpop.f32.mrf.mxu0 }
 0x3b2   : > { %v6186_v38 = vadd.f32 %v6185_v49, %v6162_v57  ;;  %7200 = vmatmul.f32.vlgmr.msra.gmra.mxu2 %v15870_v39  ;;  %v6260_v51 = vadd.f32 %v6259_v9, %v6234_v55  ;;  %v7727_v49 = vsel %vm427_vm0, %v15149_v19, 0 }
 0x3b3   : > { %v6207_v0 = vpop.f32.mrf.mxu3  ;;  %7246 = vmatpush.msrb.mxu0 %v7171_v60  ;;  %v7172_v56 = vsub.f32 %v7170_v35, %v7171_v60  ;;  %v6283_v1 = vpop.f32.mrf.mxu2  ;;  %v16472_v57 = vand.u32 4294901760, %v7727_v49 }
 0x3b4   : > { %v6208_v59 = vadd.f32 %v6207_v0, %v6186_v38  ;;  %v6284_v5 = vadd.f32 %v6283_v1, %v6260_v51  ;;  %v7780_v38 = vand.u32 4294901760, %v7779_v45  ;;  %v7731_v0 = vsel %vm431_vm1, %v15773_v15, 0 }
 0x3b5   : > { %v7173_v16 = vand.u32 4294901760, %v7172_v56  ;;  %v16480_v56 = vsub.f32 %v7727_v49, %v16472_v57 }
 0x3b6   : > { %v6503_v46 = vmax.f32 %v6208_v59, 0.0  ;;  %v7781_v1 = vsub.f32 %v7779_v45, %v7780_v38 }
 0x3b7   : > { %7174 = vmatpush.msra.mxu1 %v7173_v16  ;;  %v7898_v16 = vand.u32 4294901760, %v7731_v0  ;;  %v16485_v51 = vand.u32 4294901760, %v16480_v56 }
 0x3b8   : > { %v7120_v10 = vsel %vm431_vm1, %v6503_v46, 0  ;;  %7176 = vmatmul.f32.vlgmr.msra.gmra.mxu1 %v15866_v7  ;;  %7248 = vmatmul.f32.vlgmr.msrb.gmra.mxu0 %v15866_v7  ;;  %v7782_v15 = vand.u32 4294901760, %v7781_v1 }
 0x3b9   : > { %v7289_v47 = vand.u32 4294901760, %v7120_v10  ;;  %7268 = vmatpush.msrb.mxu1 %v7143_v25  ;;  %v6353_v58 = vpop.f32.mrf.mxu1  ;;  %v6429_v21 = vpop.f32.mrf.mxu0 }
 0x3bb   : > { %v7316_v6 = vsub.f32 %v7120_v10, %v7289_v47  ;;  %v6307_v40 = vpop.f32.mrf.mxu3  ;;  %7290 = vmatpush.msrb.mxu2 %v7289_v47  ;;  %7366 = vmatpush.msra.mxu1 %v7289_v47  ;;  %v6379_v61 = vpop.f32.mrf.mxu2 }
 0x3bc   : > { %v6308_v54 = vadd.f32 %v6307_v40, %v6284_v5  ;;  %7296 = vmatmul.f32.vlgmr.msrb.gmra.mxu2 %v15879_v52  ;;  %v6380_v8 = vadd.f32 %v6379_v61, %v15864_v53 }
 0x3bd   : > { %7343 = vmatpush.msra.mxu0 %v7316_v6  ;;  %v7317_v3 = vand.u32 4294901760, %v7316_v6 }
 0x3be   : > { %v6332_v17 = vadd.f32 %v6331_v22, %v6308_v54  ;;  %v7757_v22 = vsub.f32 %v16480_v56, %v16485_v51 }
 0x3bf   : > { %7392 = vmatpush.msra.mxu2 %v7317_v3  ;;  %v7318_v63 = vsub.f32 %v7316_v6, %v7317_v3 }
 0x3c0   : > { %v6354_v12 = vadd.f32 %v6353_v58, %v6332_v17  ;;  %7270 = vmatmul.f32.vlgmr.msrb.gmra.mxu1 %v15866_v7  ;;  %7346 = vmatmul.f32.vlgmr.msra.gmra.mxu0 %v15870_v39  ;;  %v16493_v40 = vand.u32 4294901760, %v7757_v22  ;;  %v7733_v58 = vsel %vm431_vm1, %v15779_v43, 0 }
 0x3c1   : > { %v7319_v2 = vand.u32 4294901760, %v7318_v63  ;;  %v6453_v37 = vpop.f32.mrf.mxu1  ;;  %v8044_v3 = vand.u32 4294901760, %v7733_v58  ;;  %v7735_v63 = vsel %vm431_vm1, %v15781_v32, 0 }
 0x3c2   : > { %v6504_v36 = vmax.f32 %v6354_v12, 0.0 }
 0x3c3   : > { %v6405_v62 = vpop.f32.mrf.mxu3  ;;  %7320 = vmatpush.msrb.mxu3 %v7319_v2  ;;  %v6477_v20 = vpop.f32.mrf.mxu2  ;;  %v8071_v61 = vsub.f32 %v7733_v58, %v8044_v3  ;;  %v8190_v2 = vand.u32 4294901760, %v7735_v63 }
 0x3c4   : > { %v7123_v4 = vsel %vm431_vm1, %v6504_v36, 0  ;;  %v6406_v48 = vadd.f32 %v6405_v62, %v6380_v8  ;;  %7322 = vmatmul.f32.vlgmr.msrb.gmra.mxu3 %v15866_v7  ;;  %7394 = vmatmul.f32.vlgmr.msra.gmra.mxu2 %v15866_v7  ;;  %v16509_v62 = vpop.f32.mrf.mxu0 }
 0x3c5   : > { %v7435_v41 = vand.u32 4294901760, %v7123_v4  ;;  %7414 = vmatpush.msra.mxu3 %v7289_v47  ;;  %v7925_v47 = vsub.f32 %v7731_v0, %v7898_v16  ;;  %v8072_v43 = vand.u32 4294901760, %v8071_v61  ;;  %v8217_v36 = vsub.f32 %v7735_v63, %v8190_v2 }
 0x3c6   : > { %v6430_v14 = vadd.f32 %v6429_v21, %v6406_v48  ;;  %v8343_v21 = vsel %vm431_vm1, %v15785_v44, 0 }
 0x3c7   : > { %v7462_v26 = vsub.f32 %v7123_v4, %v7435_v41  ;;  %7436 = vmatpush.msrb.mxu0 %v7435_v41  ;;  %7512 = vmatpush.msrb.mxu3 %v7435_v41  ;;  %v7926_v6 = vand.u32 4294901760, %v7925_v47  ;;  %v8073_v12 = vsub.f32 %v8071_v61, %v8072_v43  ;;  %v8218_v32 = vand.u32 4294901760, %v8217_v36 }
 0x3c8   : > { %v6454_v50 = vadd.f32 %v6453_v37, %v6430_v14  ;;  %7370 = vmatmul.f32.vlgmr.msra.gmra.mxu1 %v15873_v29  ;;  %7442 = vmatmul.f32.vlgmr.msrb.gmra.mxu0 %v15879_v52  ;;  %v8366_v48 = vand.u32 4294901760, %v8343_v21 }
 0x3c9   : > { %7489 = vmatpush.msrb.mxu2 %v7462_v26  ;;  %v7463_v28 = vand.u32 4294901760, %v7462_v26  ;;  %v7927_v54 = vsub.f32 %v7925_v47, %v7926_v6  ;;  %v8074_v8 = vand.u32 4294901760, %v8073_v12  ;;  %v8219_v4 = vsub.f32 %v8217_v36, %v8218_v32  ;;  %v16517_v42 = vpop.f32.mrf.mxu1 }
 0x3ca   : > { %v6478_v30 = vadd.f32 %v6477_v20, %v6454_v50  ;;  %v8393_v14 = vsub.f32 %v8343_v21, %v8366_v48  ;;  %v8345_v20 = vsel %vm431_vm1, %v15787_v33, 0 }
 0x3cb   : > { %v6499_v11 = vpop.f32.mrf.mxu3  ;;  %7538 = vmatpush.msra.mxu0 %v7463_v28  ;;  %v7464_v25 = vsub.f32 %v7462_v26, %v7463_v28  ;;  %v7928_v17 = vand.u32 4294901760, %v7927_v54  ;;  %v8220_v37 = vand.u32 4294901760, %v8219_v4  ;;  %v8512_v50 = vand.u32 4294901760, %v8345_v20 }
 0x3cc   : > { %v6500_v35 = vadd.f32 %v6499_v11, %v6478_v30  ;;  %7416 = vmatmul.f32.vlgmr.msra.gmra.mxu3 %v15866_v7  ;;  %7492 = vmatmul.f32.vlgmr.msrb.gmra.mxu2 %v15870_v39  ;;  %v16521_v19 = vpop.f32.mrf.mxu0  ;;  %v8394_v44 = vand.u32 4294901760, %v8393_v14 }
 0x3cd   : > { %v7465_v24 = vand.u32 4294901760, %v7464_v25  ;;  %v8539_v33 = vsub.f32 %v8345_v20, %v8512_v50 }
 0x3ce   : > { %v6505_v60 = vmax.f32 %v6500_v35, 0.0  ;;  %v8347_v35 = vsel %vm431_vm1, %v15794_v13, 0 }
 0x3cf   : > { %7466 = vmatpush.msrb.mxu1 %v7465_v24  ;;  %v8658_v0 = vand.u32 4294901760, %v8347_v35 }
 0x3d0   : > { %v7126_v9 = vsel %vm431_vm1, %v6505_v60, 0  ;;  %7468 = vmatmul.f32.vlgmr.msrb.gmra.mxu1 %v15866_v7  ;;  %7540 = vmatmul.f32.vlgmr.msra.gmra.mxu0 %v15866_v7 }
 0x3d1   : > { %v7581_v55 = vand.u32 4294901760, %v7126_v9  ;;  %7560 = vmatpush.msra.mxu1 %v7435_v41  ;;  %v16519_v41 = vpop.f32.mrf.mxu2  ;;  %v16531_v28 = vpop.f32.mrf.mxu1  ;;  %v8685_v13 = vsub.f32 %v8347_v35, %v8658_v0 }
 0x3d3   : > { %v7608_v59 = vsub.f32 %v7126_v9, %v7581_v55  ;;  %7582 = vmatpush.msra.mxu2 %v7581_v55  ;;  %7658 = vmatpush.msrb.mxu1 %v7581_v55  ;;  %v16523_v26 = vpop.f32.mrf.mxu3  ;;  %v8686_v1 = vand.u32 4294901760, %v8685_v13 }
 0x3d4   : > { %7516 = vmatmul.f32.vlgmr.msrb.gmra.mxu3 %v15873_v29  ;;  %7588 = vmatmul.f32.vlgmr.msra.gmra.mxu2 %v15879_v52  ;;  %v16537_v30 = vpop.f32.mrf.mxu0 }
 0x3d5   : > { %7635 = vmatpush.msrb.mxu0 %v7608_v59  ;;  %v7609_v46 = vand.u32 4294901760, %v7608_v59 }
 0x3d7   : > { %7753 = vmatpush.msra.mxu0 %v7752_v23  ;;  %7684 = vmatpush.msrb.mxu2 %v7609_v46  ;;  %v7610_v10 = vsub.f32 %v7608_v59, %v7609_v46 }
 0x3d8   : > { %7562 = vmatmul.f32.vlgmr.msra.gmra.mxu1 %v15866_v7  ;;  %7638 = vmatmul.f32.vlgmr.msrb.gmra.mxu0 %v15870_v39 }
 0x3d9   : > { %7783 = vmatpush.msra.mxu1 %v7782_v15  ;;  %7806 = vmatpush.msra.mxu2 %v7779_v45  ;;  %v7611_v5 = vand.u32 4294901760, %v7610_v10  ;;  %v16535_v49 = vpop.f32.mrf.mxu2  ;;  %v8540_v45 = vand.u32 4294901760, %v8539_v33  ;;  %v16547_v24 = vpop.f32.mrf.mxu1  ;;  %v8687_v10 = vsub.f32 %v8685_v13, %v8686_v1 }
 0x3da   : > { %7855 = vmatpush.msrb.mxu0 %v7780_v38 }
 0x3db   : > { %7612 = vmatpush.msra.mxu3 %v7611_v5  ;;  %v16539_v11 = vpop.f32.mrf.mxu3  ;;  %v8541_v38 = vsub.f32 %v8539_v33, %v8540_v45  ;;  %v8688_v22 = vand.u32 4294901760, %v8687_v10 }
 0x3dc   : > { %7614 = vmatmul.f32.vlgmr.msra.gmra.mxu3 %v15866_v7  ;;  %7686 = vmatmul.f32.vlgmr.msrb.gmra.mxu2 %v15866_v7  ;;  %v16551_v9 = vpop.f32.mrf.mxu0  ;;  %v6728_v4 = vadd.f32 %v16539_v11, %v16535_v49 }
 0x3dd   : > { %7706 = vmatpush.msrb.mxu3 %v7581_v55  ;;  %7899 = vmatpush.msrb.mxu2 %v7898_v16  ;;  %v8542_v55 = vand.u32 4294901760, %v8541_v38 }
 0x3df   : > { %7829 = vmatpush.msra.mxu3 %v7752_v23 }
 0x3e0   : > { %7662 = vmatmul.f32.vlgmr.msrb.gmra.mxu1 %v15873_v29  ;;  %7759 = vmatmul.f32.vlgmr.msra.gmra.mxu0 %v16493_v40 }
 0x3e1   : > { %7877 = vmatpush.msrb.mxu1 %v7752_v23  ;;  %7952 = vmatpush.msra.mxu0 %v7925_v47  ;;  %v8395_v23 = vsub.f32 %v8393_v14, %v8394_v44  ;;  %v16549_v60 = vpop.f32.mrf.mxu2  ;;  %v16559_v59 = vpop.f32.mrf.mxu1 }
 0x3e2   : > { %v6874_v11 = vadd.f32 %v16559_v59, %v16551_v9 }
 0x3e3   : > { %v8396_v25 = vand.u32 4294901760, %v8395_v23 }
 0x3e4   : > { %7708 = vmatmul.f32.vlgmr.msrb.gmra.mxu3 %v15866_v7  ;;  %7809 = vmatmul.f32.vlgmr.msra.gmra.mxu2 %v16480_v56  ;;  %v16567_v15 = vpop.f32.mrf.mxu0 }
 0x3e5   : > { %7929 = vmatpush.msrb.mxu3 %v7928_v17  ;;  %8001 = vmatpush.msra.mxu2 %v7926_v6 }
 0x3e8   : > { %7785 = vmatmul.f32.vlgmr.msra.gmra.mxu1 %v16472_v57  ;;  %7857 = vmatmul.f32.vlgmr.msrb.gmra.mxu0 %v16472_v57 }
 0x3e9   : > { %7975 = vmatpush.msra.mxu1 %v7898_v16  ;;  %8045 = vmatpush.msrb.mxu0 %v8044_v3  ;;  %v16575_v6 = vpop.f32.mrf.mxu1 }
 0x3ec   : > { %7833 = vmatmul.f32.vlgmr.msra.gmra.mxu3 %v16485_v51  ;;  %7905 = vmatmul.f32.vlgmr.msrb.gmra.mxu2 %v16493_v40  ;;  %v16581_v54 = vpop.f32.mrf.mxu0 }
 0x3ed   : > { %8023 = vmatpush.msra.mxu3 %v7898_v16  ;;  %8098 = vmatpush.msrb.mxu2 %v8071_v61  ;;  %v16563_v16 = vpop.f32.mrf.mxu2 }
 0x3f0   : > { %7879 = vmatmul.f32.vlgmr.msrb.gmra.mxu1 %v16472_v57  ;;  %7955 = vmatmul.f32.vlgmr.msra.gmra.mxu0 %v16480_v56 }
 0x3f1   : > { %8075 = vmatpush.msrb.mxu1 %v8074_v8  ;;  %8147 = vmatpush.msra.mxu0 %v8072_v43 }
 0x3f4   : > { %7931 = vmatmul.f32.vlgmr.msrb.gmra.mxu3 %v16472_v57  ;;  %8003 = vmatmul.f32.vlgmr.msra.gmra.mxu2 %v16472_v57 }
 0x3f5   : > { %8121 = vmatpush.msrb.mxu3 %v8044_v3  ;;  %8191 = vmatpush.msra.mxu2 %v8190_v2  ;;  %v16579_v58 = vpop.f32.mrf.mxu2 }
 0x3f8   : > { %7979 = vmatmul.f32.vlgmr.msra.gmra.mxu1 %v16485_v51  ;;  %8051 = vmatmul.f32.vlgmr.msrb.gmra.mxu0 %v16493_v40 }
 0x3f9   : > { %8169 = vmatpush.msra.mxu1 %v8044_v3  ;;  %8244 = vmatpush.msrb.mxu0 %v8217_v36 }
 0x3fc   : > { %8025 = vmatmul.f32.vlgmr.msra.gmra.mxu3 %v16472_v57  ;;  %8101 = vmatmul.f32.vlgmr.msrb.gmra.mxu2 %v16480_v56 }
 0x3fd   : > { %8221 = vmatpush.msra.mxu3 %v8220_v37  ;;  %8293 = vmatpush.msrb.mxu2 %v8218_v32  ;;  %v16595_v8 = vpop.f32.mrf.mxu2 }
 0x400   : > { %8077 = vmatmul.f32.vlgmr.msrb.gmra.mxu1 %v16472_v57  ;;  %8149 = vmatmul.f32.vlgmr.msra.gmra.mxu0 %v16472_v57 }
 0x401   : > { %8267 = vmatpush.msrb.mxu1 %v8190_v2  ;;  %8367 = vmatpush.msra.mxu0 %v8366_v48 }
 0x404   : > { %8125 = vmatmul.f32.vlgmr.msrb.gmra.mxu3 %v16485_v51  ;;  %8197 = vmatmul.f32.vlgmr.msra.gmra.mxu2 %v16493_v40  ;;  %v6582_v40 = vadd.f32 %v16517_v42, %v16509_v62 }
 0x405   : > { %8315 = vmatpush.msrb.mxu3 %v8190_v2  ;;  %8420 = vmatpush.msra.mxu2 %v8393_v14  ;;  %v16591_v2 = vpop.f32.mrf.mxu1 }
 0x406   : > { %v6606_v61 = vadd.f32 %v16519_v41, %v6582_v40 }
 0x408   : > { %8171 = vmatmul.f32.vlgmr.msra.gmra.mxu1 %v16472_v57  ;;  %8247 = vmatmul.f32.vlgmr.msrb.gmra.mxu0 %v16480_v56  ;;  %v16553_v56 = vpop.f32.mrf.mxu3  ;;  %v6630_v63 = vadd.f32 %v16523_v26, %v6606_v61  ;;  %v6752_v26 = vadd.f32 %v16537_v30, %v6728_v4 }
 0x409   : > { %8397 = vmatpush.msra.mxu1 %v8396_v25  ;;  %8469 = vmatpush.msrb.mxu0 %v8394_v44 }
 0x40a   : > { %v6654_v32 = vadd.f32 %v16521_v19, %v6630_v63  ;;  %v6776_v23 = vadd.f32 %v16547_v24, %v6752_v26 }
 0x40c   : > { %8223 = vmatmul.f32.vlgmr.msra.gmra.mxu3 %v16472_v57  ;;  %8295 = vmatmul.f32.vlgmr.msrb.gmra.mxu2 %v16472_v57  ;;  %v6676_v21 = vadd.f32 %v16531_v28, %v6654_v32 }
 0x40d   : > { %8443 = vmatpush.msra.mxu3 %v8366_v48  ;;  %8513 = vmatpush.msrb.mxu2 %v8512_v50 }
 0x410   : > { %8271 = vmatmul.f32.vlgmr.msrb.gmra.mxu1 %v16485_v51  ;;  %8373 = vmatmul.f32.vlgmr.msra.gmra.mxu0 %v15734_v31  ;;  %v17307_v51 = vld [vmem:[#allocation11_spill] sm:$0xff] }
 0x411   : > { %8491 = vmatpush.msrb.mxu1 %v8366_v48  ;;  %8566 = vmatpush.msra.mxu0 %v8539_v33  ;;  %v8349_v46 = vsel %vm431_vm1, %v17307_v51, 0  ;;  %v6800_v33 = vadd.f32 %v16549_v60, %v6776_v23 }
 0x412   : > { %v8804_v47 = vand.u32 4294901760, %v8349_v46 }
 0x413   : > { %v6822_v35 = vadd.f32 %v16553_v56, %v6800_v33 }
 0x414   : > { %8317 = vmatmul.f32.vlgmr.msrb.gmra.mxu3 %v16472_v57  ;;  %8423 = vmatmul.f32.vlgmr.msra.gmra.mxu2 %v15696_v27  ;;  %v16569_v57 = vpop.f32.mrf.mxu3  ;;  %v8831_v5 = vsub.f32 %v8349_v46, %v8804_v47 }
 0x415   : > { %8543 = vmatpush.msrb.mxu3 %v8542_v55  ;;  %8615 = vmatpush.msra.mxu2 %v8540_v45  ;;  %v6898_v45 = vadd.f32 %v16563_v16, %v6874_v11 }
 0x416   : > { %v8832_v17 = vand.u32 4294901760, %v8831_v5 }
 0x418   : > { %8399 = vmatmul.f32.vlgmr.msra.gmra.mxu1 %v15679_v18  ;;  %8471 = vmatmul.f32.vlgmr.msrb.gmra.mxu0 %v15679_v18  ;;  %v8833_v43 = vsub.f32 %v8831_v5, %v8832_v17 }
 0x419   : > { %8589 = vmatpush.msra.mxu1 %v8512_v50  ;;  %8659 = vmatpush.msrb.mxu0 %v8658_v0 }
 0x41a   : > { %v8834_v12 = vand.u32 4294901760, %v8833_v43 }
 0x41c   : > { %8447 = vmatmul.f32.vlgmr.msra.gmra.mxu3 %v15709_v34  ;;  %8519 = vmatmul.f32.vlgmr.msrb.gmra.mxu2 %v15734_v31  ;;  %v16583_v3 = vpop.f32.mrf.mxu3 }
 0x41d   : > { %8637 = vmatpush.msra.mxu3 %v8512_v50  ;;  %8712 = vmatpush.msrb.mxu2 %v8685_v13  ;;  %v7020_v51 = vadd.f32 %v16583_v3, %v16579_v58 }
 0x420   : > { %8493 = vmatmul.f32.vlgmr.msrb.gmra.mxu1 %v15679_v18  ;;  %8569 = vmatmul.f32.vlgmr.msra.gmra.mxu0 %v15696_v27 }
 0x421   : > { %8689 = vmatpush.msrb.mxu1 %v8688_v22  ;;  %8761 = vmatpush.msra.mxu0 %v8686_v1 }
 0x424   : > { %8545 = vmatmul.f32.vlgmr.msrb.gmra.mxu3 %v15679_v18  ;;  %8617 = vmatmul.f32.vlgmr.msra.gmra.mxu2 %v15679_v18  ;;  %v16597_v62 = vpop.f32.mrf.mxu3 }
 0x425   : > { %8735 = vmatpush.msrb.mxu3 %v8658_v0  ;;  %8805 = vmatpush.msra.mxu2 %v8804_v47 }
 0x428   : > { %8593 = vmatmul.f32.vlgmr.msra.gmra.mxu1 %v15709_v34  ;;  %8665 = vmatmul.f32.vlgmr.msrb.gmra.mxu0 %v15734_v31 }
 0x429   : > { %8783 = vmatpush.msra.mxu1 %v8658_v0  ;;  %8858 = vmatpush.msrb.mxu0 %v8831_v5  ;;  %v6922_v0 = vadd.f32 %v16569_v57, %v6898_v45  ;;  %v7044_v57 = vadd.f32 %v16581_v54, %v7020_v51 }
 0x42b   : > { %v6946_v60 = vadd.f32 %v16567_v15, %v6922_v0  ;;  %v7068_v15 = vadd.f32 %v16591_v2, %v7044_v57 }
 0x42c   : > { %8639 = vmatmul.f32.vlgmr.msra.gmra.mxu3 %v15679_v18  ;;  %8715 = vmatmul.f32.vlgmr.msrb.gmra.mxu2 %v15696_v27 }
 0x42d   : > { %8835 = vmatpush.msra.mxu3 %v8834_v12  ;;  %8907 = vmatpush.msrb.mxu2 %v8832_v17  ;;  %v7151_v36 = vpop.f32.mrf.mxu0  ;;  %v6968_v10 = vadd.f32 %v16575_v6, %v6946_v60 }
 0x42e   : > { %v7152_v48 = vadd.f32 %v7151_v36, %v6676_v21  ;;  %v7092_v36 = vadd.f32 %v16595_v8, %v7068_v15 }
 0x430   : > { %8691 = vmatmul.f32.vlgmr.msrb.gmra.mxu1 %v15679_v18  ;;  %8763 = vmatmul.f32.vlgmr.msra.gmra.mxu0 %v15679_v18  ;;  %v7114_v21 = vadd.f32 %v16597_v62, %v7092_v36 }
 0x431   : > { %8881 = vmatpush.msrb.mxu1 %v8804_v47 }
 0x433   : > { %v7225_v19 = vpop.f32.mrf.mxu3 }
 0x434   : > { %8739 = vmatmul.f32.vlgmr.msrb.gmra.mxu3 %v15709_v34  ;;  %8811 = vmatmul.f32.vlgmr.msra.gmra.mxu2 %v15734_v31 }
 0x435   : > { %8929 = vmatpush.msrb.mxu3 %v8804_v47  ;;  %v7177_v42 = vpop.f32.mrf.mxu1  ;;  %v7249_v41 = vpop.f32.mrf.mxu0 }
 0x436   : > { %v7178_v37 = vadd.f32 %v7177_v42, %v7152_v48  ;;  %v7201_v14 = vpop.f32.mrf.mxu2 }
 0x438   : > { %v7202_v44 = vadd.f32 %v7201_v14, %v7178_v37  ;;  %8785 = vmatmul.f32.vlgmr.msra.gmra.mxu1 %v15679_v18  ;;  %8861 = vmatmul.f32.vlgmr.msrb.gmra.mxu0 %v15696_v27 }
 0x43a   : > { %v7226_v20 = vadd.f32 %v7225_v19, %v7202_v44 }
 0x43c   : > { %v7250_v50 = vadd.f32 %v7249_v41, %v7226_v20  ;;  %8837 = vmatmul.f32.vlgmr.msra.gmra.mxu3 %v15679_v18  ;;  %8909 = vmatmul.f32.vlgmr.msrb.gmra.mxu2 %v15679_v18 }
 0x43d   : > { %v7271_v28 = vpop.f32.mrf.mxu1  ;;  %v7347_v49 = vpop.f32.mrf.mxu0 }
 0x43e   : > { %v7272_v25 = vadd.f32 %v7271_v28, %v7250_v50 }
 0x43f   : > { %v7297_v30 = vpop.f32.mrf.mxu2 }
 0x440   : > { %15145 = vst [vmem:[%s16050_s26 + $0x60] sm:$0xff] %v7272_v25  ;;  %8885 = vmatmul.f32.vlgmr.msrb.gmra.mxu1 %v15709_v34  ;;  %v7298_v55 = vadd.f32 %v7297_v30, %v6822_v35 }
 0x444   : > { %8931 = vmatmul.f32.vlgmr.msrb.gmra.mxu3 %v15679_v18 }
 0x445   : > { %v7371_v24 = vpop.f32.mrf.mxu1  ;;  %v7443_v38 = vpop.f32.mrf.mxu0 }
 0x446   : > { %v7444_v40 = vadd.f32 %v7443_v38, %v6968_v10 }
 0x447   : > { %v7323_v13 = vpop.f32.mrf.mxu3  ;;  %v7395_v9 = vpop.f32.mrf.mxu2 }
 0x448   : > { %v7324_v59 = vadd.f32 %v7323_v13, %v7298_v55 }
 0x44a   : > { %v7348_v1 = vadd.f32 %v7347_v49, %v7324_v59 }
 0x44c   : > { %v7372_v16 = vadd.f32 %v7371_v24, %v7348_v1 }
 0x44d   : > { %v7469_v46 = vpop.f32.mrf.mxu1  ;;  %v7541_v56 = vpop.f32.mrf.mxu0 }
 0x44e   : > { %v7396_v47 = vadd.f32 %v7395_v9, %v7372_v16  ;;  %v7470_v61 = vadd.f32 %v7469_v46, %v7444_v40 }
 0x44f   : > { %v7417_v22 = vpop.f32.mrf.mxu3  ;;  %v7493_v5 = vpop.f32.mrf.mxu2 }
 0x450   : > { %v7418_v17 = vadd.f32 %v7417_v22, %v7396_v47  ;;  %v7494_v58 = vadd.f32 %v7493_v5, %v7470_v61 }
 0x452   : > { %15146 = vst [vmem:[%s16050_s26 + $0x68] sm:$0xff] %v7418_v17 }
 0x455   : > { %v7563_v43 = vpop.f32.mrf.mxu1  ;;  %v7639_v63 = vpop.f32.mrf.mxu0 }
 0x457   : > { %v7517_v3 = vpop.f32.mrf.mxu3  ;;  %v7589_v12 = vpop.f32.mrf.mxu2 }
 0x458   : > { %v7518_v6 = vadd.f32 %v7517_v3, %v7494_v58  ;;  %v7590_v48 = vadd.f32 %v7589_v12, %v7114_v21 }
 0x45a   : > { %v7542_v32 = vadd.f32 %v7541_v56, %v7518_v6 }
 0x45c   : > { %v7564_v4 = vadd.f32 %v7563_v43, %v7542_v32 }
 0x45d   : > { %v7663_v54 = vpop.f32.mrf.mxu1  ;;  %v7760_v42 = vpop.f32.mrf.mxu0 }
 0x45e   : > { %15147 = vst [vmem:[%s16050_s26 + $0x70] sm:$0xff] %v7564_v4  ;;  %v7761_v8 = vadd.f32 %v7760_v42, %v15864_v53 }
 0x45f   : > { %v7615_v41 = vpop.f32.mrf.mxu3  ;;  %v7687_v37 = vpop.f32.mrf.mxu2 }
 0x460   : > { %v7616_v2 = vadd.f32 %v7615_v41, %v7590_v48 }
 0x462   : > { %v7640_v14 = vadd.f32 %v7639_v63, %v7616_v2 }
 0x464   : > { %v7664_v19 = vadd.f32 %v7663_v54, %v7640_v14 }
 0x465   : > { %v7786_v26 = vpop.f32.mrf.mxu1  ;;  %v7858_v28 = vpop.f32.mrf.mxu0 }
 0x466   : > { %v7688_v44 = vadd.f32 %v7687_v37, %v7664_v19  ;;  %v7787_v62 = vadd.f32 %v7786_v26, %v7761_v8  ;;  %v17308_v8 = vld [vmem:[#allocation12_spill] sm:$0xff] }
 0x467   : > { %v7709_v20 = vpop.f32.mrf.mxu3  ;;  %v7810_v23 = vpop.f32.mrf.mxu2 }
 0x468   : > { %v7710_v50 = vadd.f32 %v7709_v20, %v7688_v44  ;;  %v7811_v11 = vadd.f32 %v7810_v23, %v7787_v62 }
 0x46a   : > { %15148 = vst [vmem:[%s16050_s26 + $0x78] sm:$0xff] %v7710_v50  ;;  %v9548_v50 = vsel %vm431_vm1, %v17308_v8, 0 }
 0x46d   : > { %v7880_v49 = vpop.f32.mrf.mxu1  ;;  %v7956_v35 = vpop.f32.mrf.mxu0 }
 0x46f   : > { %v7834_v25 = vpop.f32.mrf.mxu3  ;;  %v7906_v30 = vpop.f32.mrf.mxu2 }
 0x470   : > { %v7835_v33 = vadd.f32 %v7834_v25, %v7811_v11  ;;  %v7907_v55 = vadd.f32 %v7906_v30, %v15864_v53  ;;  %v15156_v11 = vld [vmem:[%s17271_s3 + $0x14] sm:$0xf] }
 0x472   : > { %v7859_v45 = vadd.f32 %v7858_v28, %v7835_v33  ;;  %v9571_v33 = vand.u32 4294901760, %v9548_v50 }
 0x474   : > { %v7881_v24 = vadd.f32 %v7880_v49, %v7859_v45 }
 0x475   : > { %v7980_v38 = vpop.f32.mrf.mxu1  ;;  %v8052_v56 = vpop.f32.mrf.mxu0 }
 0x476   : > { %v8321_v0 = vmax.f32 %v7881_v24, 0.0  ;;  %v8053_v40 = vadd.f32 %v8052_v56, %v15864_v53  ;;  %v9546_v24 = vsel %vm427_vm0, %v15156_v11, 0 }
 0x477   : > { %v7932_v13 = vpop.f32.mrf.mxu3  ;;  %v8004_v9 = vpop.f32.mrf.mxu2 }
 0x478   : > { %v8936_v59 = vsel %vm431_vm1, %v8321_v0, 0  ;;  %v7933_v60 = vadd.f32 %v7932_v13, %v7907_v55  ;;  %v9598_v13 = vsub.f32 %v9548_v50, %v9571_v33 }
 0x479   : > { %v8962_v1 = vand.u32 4294901760, %v8936_v59 }
 0x47a   : > { %v7957_v51 = vadd.f32 %v7956_v35, %v7933_v60 }
 0x47b   : > { %8963 = vmatpush.msra.mxu0 %v8962_v1  ;;  %9039 = vmatpush.msra.mxu3 %v8962_v1  ;;  %v8989_v16 = vsub.f32 %v8936_v59, %v8962_v1  ;;  %v16660_v59 = vand.u32 4294901760, %v9546_v24 }
 0x47c   : > { %v7981_v46 = vadd.f32 %v7980_v38, %v7957_v51  ;;  %8969 = vmatmul.f32.vlgmr.msra.gmra.mxu0 %v15879_v52  ;;  %9043 = vmatmul.f32.vlgmr.msra.gmra.mxu3 %v15873_v29  ;;  %v9599_v51 = vand.u32 4294901760, %v9598_v13 }
 0x47d   : > { %9016 = vmatpush.msra.mxu2 %v8989_v16  ;;  %v8990_v10 = vand.u32 4294901760, %v8989_v16  ;;  %v8078_v22 = vpop.f32.mrf.mxu1  ;;  %v8150_v12 = vpop.f32.mrf.mxu0 }
 0x47e   : > { %v8005_v47 = vadd.f32 %v8004_v9, %v7981_v46  ;;  %9019 = vmatmul.f32.vlgmr.msra.gmra.mxu2 %v15870_v39  ;;  %v8079_v43 = vadd.f32 %v8078_v22, %v8053_v40  ;;  %v17309_v46 = vld [vmem:[#allocation13_spill] sm:$0xff] }
 0x47f   : > { %v8026_v5 = vpop.f32.mrf.mxu3  ;;  %9065 = vmatpush.msrb.mxu0 %v8990_v10  ;;  %v8991_v57 = vsub.f32 %v8989_v16, %v8990_v10  ;;  %v8102_v61 = vpop.f32.mrf.mxu2  ;;  %v9550_v56 = vsel %vm431_vm1, %v17309_v46, 0  ;;  %v16668_v10 = vsub.f32 %v9546_v24, %v16660_v59 }
 0x480   : > { %v8027_v17 = vadd.f32 %v8026_v5, %v8005_v47  ;;  %v8103_v36 = vadd.f32 %v8102_v61, %v8079_v43  ;;  %v9600_v5 = vsub.f32 %v9598_v13, %v9599_v51 }
 0x481   : > { %v8992_v15 = vand.u32 4294901760, %v8991_v57  ;;  %v9717_v57 = vand.u32 4294901760, %v9550_v56  ;;  %v16673_v40 = vand.u32 4294901760, %v16668_v10 }
 0x482   : > { %v8322_v63 = vmax.f32 %v8027_v17, 0.0  ;;  %v9601_v61 = vand.u32 4294901760, %v9600_v5 }
 0x483   : > { %8993 = vmatpush.msra.mxu1 %v8992_v15  ;;  %v9744_v43 = vsub.f32 %v9550_v56, %v9717_v57 }
 0x484   : > { %v8939_v58 = vsel %vm431_vm1, %v8322_v63, 0  ;;  %8995 = vmatmul.f32.vlgmr.msra.gmra.mxu1 %v15866_v7  ;;  %9067 = vmatmul.f32.vlgmr.msrb.gmra.mxu0 %v15866_v7  ;;  %v9576_v63 = vsub.f32 %v16668_v10, %v16673_v40 }
 0x485   : > { %v9108_v3 = vand.u32 4294901760, %v8939_v58  ;;  %9087 = vmatpush.msrb.mxu1 %v8962_v1  ;;  %v8172_v21 = vpop.f32.mrf.mxu1  ;;  %v8248_v44 = vpop.f32.mrf.mxu0 }
 0x487   : > { %v9135_v6 = vsub.f32 %v8939_v58, %v9108_v3  ;;  %v8126_v32 = vpop.f32.mrf.mxu3  ;;  %9109 = vmatpush.msrb.mxu2 %v9108_v3  ;;  %9185 = vmatpush.msra.mxu1 %v9108_v3  ;;  %v8198_v42 = vpop.f32.mrf.mxu2 }
 0x488   : > { %v8127_v4 = vadd.f32 %v8126_v32, %v8103_v36  ;;  %9115 = vmatmul.f32.vlgmr.msrb.gmra.mxu2 %v15879_v52  ;;  %v8199_v14 = vadd.f32 %v8198_v42, %v15864_v53  ;;  %v17310_v36 = vld [vmem:[#allocation14_spill] sm:$0xff]  ;;  %v17311_v42 = vld [vmem:[#allocation15_spill] sm:$0xff] }
 0x489   : > { %9162 = vmatpush.msra.mxu0 %v9135_v6  ;;  %v9136_v54 = vand.u32 4294901760, %v9135_v6 }
 0x48a   : > { %v8151_v48 = vadd.f32 %v8150_v12, %v8127_v4  ;;  %v16681_v12 = vand.u32 4294901760, %v9576_v63  ;;  %v17315_v63 = vld [vmem:[#allocation19_spill] sm:$0xff] }
 0x48b   : > { %9211 = vmatpush.msra.mxu2 %v9136_v54  ;;  %v9137_v41 = vsub.f32 %v9135_v6, %v9136_v54  ;;  %v9552_v6 = vsel %vm431_vm1, %v17310_v36, 0 }
 0x48c   : > { %v8173_v37 = vadd.f32 %v8172_v21, %v8151_v48  ;;  %9089 = vmatmul.f32.vlgmr.msrb.gmra.mxu1 %v15866_v7  ;;  %9165 = vmatmul.f32.vlgmr.msra.gmra.mxu0 %v15870_v39  ;;  %v9863_v21 = vand.u32 4294901760, %v9552_v6 }
 0x48d   : > { %v9138_v2 = vand.u32 4294901760, %v9137_v41  ;;  %v8272_v62 = vpop.f32.mrf.mxu1  ;;  %v9554_v41 = vsel %vm431_vm1, %v17311_v42, 0 }
 0x48e   : > { %v8323_v19 = vmax.f32 %v8173_v37, 0.0  ;;  %v9890_v54 = vsub.f32 %v9552_v6, %v9863_v21 }
 0x48f   : > { %v8224_v26 = vpop.f32.mrf.mxu3  ;;  %9139 = vmatpush.msrb.mxu3 %v9138_v2  ;;  %v8296_v30 = vpop.f32.mrf.mxu2  ;;  %v10009_v2 = vand.u32 4294901760, %v9554_v41 }
 0x490   : > { %v8942_v20 = vsel %vm431_vm1, %v8323_v19, 0  ;;  %v8225_v23 = vadd.f32 %v8224_v26, %v8199_v14  ;;  %9141 = vmatmul.f32.vlgmr.msrb.gmra.mxu3 %v15866_v7  ;;  %9213 = vmatmul.f32.vlgmr.msra.gmra.mxu2 %v15866_v7  ;;  %v9891_v48 = vand.u32 4294901760, %v9890_v54  ;;  %v16697_v26 = vpop.f32.mrf.mxu0 }
 0x491   : > { %v9254_v28 = vand.u32 4294901760, %v8942_v20  ;;  %9233 = vmatpush.msra.mxu3 %v9108_v3  ;;  %v9745_v3 = vand.u32 4294901760, %v9744_v43  ;;  %v10036_v19 = vsub.f32 %v9554_v41, %v10009_v2 }
 0x492   : > { %v8249_v49 = vadd.f32 %v8248_v44, %v8225_v23  ;;  %v9892_v37 = vsub.f32 %v9890_v54, %v9891_v48 }
 0x493   : > { %v9281_v25 = vsub.f32 %v8942_v20, %v9254_v28  ;;  %9255 = vmatpush.msrb.mxu0 %v9254_v28  ;;  %9331 = vmatpush.msrb.mxu3 %v9254_v28  ;;  %v9746_v32 = vsub.f32 %v9744_v43, %v9745_v3  ;;  %v10037_v44 = vand.u32 4294901760, %v10036_v19  ;;  %v17312_v20 = vld [vmem:[#allocation16_spill] sm:$0xff] }
 0x494   : > { %v8273_v45 = vadd.f32 %v8272_v62, %v8249_v49  ;;  %9189 = vmatmul.f32.vlgmr.msra.gmra.mxu1 %v15873_v29  ;;  %9261 = vmatmul.f32.vlgmr.msrb.gmra.mxu0 %v15879_v52  ;;  %v9893_v14 = vand.u32 4294901760, %v9892_v37  ;;  %v10162_v23 = vsel %vm431_vm1, %v17312_v20, 0 }
 0x495   : > { %9308 = vmatpush.msrb.mxu2 %v9281_v25  ;;  %v9282_v35 = vand.u32 4294901760, %v9281_v25  ;;  %v9747_v4 = vand.u32 4294901760, %v9746_v32  ;;  %v10038_v8 = vsub.f32 %v10036_v19, %v10037_v44  ;;  %v10185_v50 = vand.u32 4294901760, %v10162_v23 }
 0x496   : > { %v8297_v38 = vadd.f32 %v8296_v30, %v8273_v45  ;;  %v17313_v45 = vld [vmem:[#allocation17_spill] sm:$0xff] }
 0x497   : > { %v8318_v0 = vpop.f32.mrf.mxu3  ;;  %9357 = vmatpush.msra.mxu0 %v9282_v35  ;;  %v9283_v55 = vsub.f32 %v9281_v25, %v9282_v35  ;;  %v16707_v62 = vpop.f32.mrf.mxu2  ;;  %v10039_v49 = vand.u32 4294901760, %v10038_v8  ;;  %v10212_v11 = vsub.f32 %v10162_v23, %v10185_v50  ;;  %v10164_v35 = vsel %vm431_vm1, %v17313_v45, 0 }
 0x498   : > { %v8319_v9 = vadd.f32 %v8318_v0, %v8297_v38  ;;  %9235 = vmatmul.f32.vlgmr.msra.gmra.mxu3 %v15866_v7  ;;  %9311 = vmatmul.f32.vlgmr.msrb.gmra.mxu2 %v15870_v39  ;;  %v16709_v25 = vpop.f32.mrf.mxu0  ;;  %v10331_v38 = vand.u32 4294901760, %v10164_v35 }
 0x499   : > { %v9284_v60 = vand.u32 4294901760, %v9283_v55 }
 0x49a   : > { %v8324_v1 = vmax.f32 %v8319_v9, 0.0 }
 0x49b   : > { %9285 = vmatpush.msrb.mxu1 %v9284_v60 }
 0x49c   : > { %v8945_v16 = vsel %vm431_vm1, %v8324_v1, 0  ;;  %9287 = vmatmul.f32.vlgmr.msrb.gmra.mxu1 %v15866_v7  ;;  %9359 = vmatmul.f32.vlgmr.msra.gmra.mxu0 %v15866_v7  ;;  %v10358_v1 = vsub.f32 %v10164_v35, %v10331_v38 }
 0x49d   : > { %v9400_v47 = vand.u32 4294901760, %v8945_v16  ;;  %9379 = vmatpush.msra.mxu1 %v9254_v28  ;;  %v16705_v28 = vpop.f32.mrf.mxu1 }
 0x49f   : > { %v9427_v22 = vsub.f32 %v8945_v16, %v9400_v47  ;;  %9401 = vmatpush.msra.mxu2 %v9400_v47  ;;  %9477 = vmatpush.msrb.mxu1 %v9400_v47  ;;  %v16711_v30 = vpop.f32.mrf.mxu3  ;;  %v16723_v55 = vpop.f32.mrf.mxu2  ;;  %v17314_v16 = vld [vmem:[#allocation18_spill] sm:$0xff] }
 0x4a0   : > { %9335 = vmatmul.f32.vlgmr.msrb.gmra.mxu3 %v15873_v29  ;;  %9407 = vmatmul.f32.vlgmr.msra.gmra.mxu2 %v15879_v52  ;;  %v10166_v46 = vsel %vm431_vm1, %v17314_v16, 0 }
 0x4a1   : > { %9454 = vmatpush.msrb.mxu0 %v9427_v22  ;;  %v9428_v17 = vand.u32 4294901760, %v9427_v22 }
 0x4a3   : > { %9572 = vmatpush.msra.mxu0 %v9571_v33  ;;  %9503 = vmatpush.msrb.mxu2 %v9428_v17  ;;  %v9429_v15 = vsub.f32 %v9427_v22, %v9428_v17 }
 0x4a4   : > { %9381 = vmatmul.f32.vlgmr.msra.gmra.mxu1 %v15866_v7  ;;  %9457 = vmatmul.f32.vlgmr.msrb.gmra.mxu0 %v15870_v39 }
 0x4a5   : > { %9602 = vmatpush.msra.mxu1 %v9601_v61  ;;  %9625 = vmatpush.msra.mxu2 %v9598_v13  ;;  %v9430_v58 = vand.u32 4294901760, %v9429_v15  ;;  %v16719_v0 = vpop.f32.mrf.mxu1  ;;  %v16725_v13 = vpop.f32.mrf.mxu0 }
 0x4a6   : > { %9674 = vmatpush.msrb.mxu0 %v9599_v51  ;;  %v10359_v51 = vand.u32 4294901760, %v10358_v1 }
 0x4a7   : > { %9431 = vmatpush.msra.mxu3 %v9430_v58  ;;  %v16727_v9 = vpop.f32.mrf.mxu3  ;;  %v10168_v58 = vsel %vm431_vm1, %v17315_v63, 0 }
 0x4a8   : > { %9433 = vmatmul.f32.vlgmr.msra.gmra.mxu3 %v15866_v7  ;;  %9505 = vmatmul.f32.vlgmr.msrb.gmra.mxu2 %v15866_v7  ;;  %v10360_v22 = vsub.f32 %v10358_v1, %v10359_v51  ;;  %v10623_v36 = vand.u32 4294901760, %v10168_v58 }
 0x4a9   : > { %9525 = vmatpush.msrb.mxu3 %v9400_v47  ;;  %9718 = vmatpush.msrb.mxu2 %v9717_v57  ;;  %v16737_v47 = vpop.f32.mrf.mxu2 }
 0x4aa   : > { %v10361_v17 = vand.u32 4294901760, %v10360_v22  ;;  %v10650_v32 = vsub.f32 %v10168_v58, %v10623_v36 }
 0x4ab   : > { %9648 = vmatpush.msra.mxu3 %v9571_v33 }
 0x4ac   : > { %9481 = vmatmul.f32.vlgmr.msrb.gmra.mxu1 %v15873_v29  ;;  %9578 = vmatmul.f32.vlgmr.msra.gmra.mxu0 %v16681_v12  ;;  %v10651_v41 = vand.u32 4294901760, %v10650_v32 }
 0x4ad   : > { %9696 = vmatpush.msrb.mxu1 %v9571_v33  ;;  %9771 = vmatpush.msra.mxu0 %v9744_v43  ;;  %v10213_v33 = vand.u32 4294901760, %v10212_v11  ;;  %v16735_v56 = vpop.f32.mrf.mxu1  ;;  %v16739_v5 = vpop.f32.mrf.mxu0 }
 0x4af   : > { %v10214_v24 = vsub.f32 %v10212_v11, %v10213_v33 }
 0x4b0   : > { %9527 = vmatmul.f32.vlgmr.msrb.gmra.mxu3 %v15866_v7  ;;  %9628 = vmatmul.f32.vlgmr.msra.gmra.mxu2 %v16668_v10 }
 0x4b1   : > { %9748 = vmatpush.msrb.mxu3 %v9747_v4  ;;  %9820 = vmatpush.msra.mxu2 %v9745_v3  ;;  %v10215_v60 = vand.u32 4294901760, %v10214_v24  ;;  %v8401_v4 = vadd.f32 %v16705_v28, %v16697_v26  ;;  %v8547_v28 = vadd.f32 %v16727_v9, %v16723_v55 }
 0x4b3   : > { %v8425_v37 = vadd.f32 %v16707_v62, %v8401_v4  ;;  %v8571_v45 = vadd.f32 %v16725_v13, %v8547_v28 }
 0x4b4   : > { %9604 = vmatmul.f32.vlgmr.msra.gmra.mxu1 %v16660_v59  ;;  %9676 = vmatmul.f32.vlgmr.msrb.gmra.mxu0 %v16660_v59 }
 0x4b5   : > { %9794 = vmatpush.msra.mxu1 %v9717_v57  ;;  %9864 = vmatpush.msrb.mxu0 %v9863_v21  ;;  %v16747_v15 = vpop.f32.mrf.mxu1  ;;  %v16755_v3 = vpop.f32.mrf.mxu0 }
 0x4b8   : > { %9652 = vmatmul.f32.vlgmr.msra.gmra.mxu3 %v16673_v40  ;;  %9724 = vmatmul.f32.vlgmr.msrb.gmra.mxu2 %v16681_v12 }
 0x4b9   : > { %9842 = vmatpush.msra.mxu3 %v9717_v57  ;;  %9917 = vmatpush.msrb.mxu2 %v9890_v54  ;;  %v16741_v57 = vpop.f32.mrf.mxu3 }
 0x4bc   : > { %9698 = vmatmul.f32.vlgmr.msrb.gmra.mxu1 %v16660_v59  ;;  %9774 = vmatmul.f32.vlgmr.msra.gmra.mxu0 %v16668_v10 }
 0x4bd   : > { %9894 = vmatpush.msrb.mxu1 %v9893_v14  ;;  %9966 = vmatpush.msra.mxu0 %v9891_v48  ;;  %v16769_v48 = vpop.f32.mrf.mxu0  ;;  %v8449_v14 = vadd.f32 %v16711_v30, %v8425_v37 }
 0x4bf   : > { %v8473_v8 = vadd.f32 %v16709_v25, %v8449_v14 }
 0x4c0   : > { %9750 = vmatmul.f32.vlgmr.msrb.gmra.mxu3 %v16660_v59  ;;  %9822 = vmatmul.f32.vlgmr.msra.gmra.mxu2 %v16660_v59 }
 0x4c1   : > { %9940 = vmatpush.msrb.mxu3 %v9863_v21  ;;  %10010 = vmatpush.msra.mxu2 %v10009_v2 }
 0x4c4   : > { %9798 = vmatmul.f32.vlgmr.msra.gmra.mxu1 %v16673_v40  ;;  %9870 = vmatmul.f32.vlgmr.msrb.gmra.mxu0 %v16681_v12 }
 0x4c5   : > { %9988 = vmatpush.msra.mxu1 %v9863_v21  ;;  %10063 = vmatpush.msrb.mxu0 %v10036_v19  ;;  %v16763_v21 = vpop.f32.mrf.mxu1 }
 0x4c8   : > { %9844 = vmatmul.f32.vlgmr.msra.gmra.mxu3 %v16660_v59  ;;  %9920 = vmatmul.f32.vlgmr.msrb.gmra.mxu2 %v16668_v10 }
 0x4c9   : > { %10040 = vmatpush.msra.mxu3 %v10039_v49  ;;  %10112 = vmatpush.msrb.mxu2 %v10037_v44 }
 0x4cc   : > { %9896 = vmatmul.f32.vlgmr.msrb.gmra.mxu1 %v16660_v59  ;;  %9968 = vmatmul.f32.vlgmr.msra.gmra.mxu0 %v16660_v59 }
 0x4cd   : > { %10086 = vmatpush.msrb.mxu1 %v10009_v2  ;;  %10186 = vmatpush.msra.mxu0 %v10185_v50  ;;  %v16779_v26 = vpop.f32.mrf.mxu1 }
 0x4d0   : > { %9944 = vmatmul.f32.vlgmr.msrb.gmra.mxu3 %v16673_v40  ;;  %10016 = vmatmul.f32.vlgmr.msra.gmra.mxu2 %v16681_v12 }
 0x4d1   : > { %10134 = vmatpush.msrb.mxu3 %v10009_v2  ;;  %10239 = vmatpush.msra.mxu2 %v10212_v11  ;;  %v10652_v2 = vsub.f32 %v10650_v32, %v10651_v41 }
 0x4d3   : > { %v10653_v19 = vand.u32 4294901760, %v10652_v2 }
 0x4d4   : > { %9990 = vmatmul.f32.vlgmr.msra.gmra.mxu1 %v16660_v59  ;;  %10066 = vmatmul.f32.vlgmr.msrb.gmra.mxu0 %v16668_v10  ;;  %v10477_v10 = vand.u32 4294901760, %v10166_v46 }
 0x4d5   : > { %10216 = vmatpush.msra.mxu1 %v10215_v60  ;;  %10288 = vmatpush.msrb.mxu0 %v10213_v33  ;;  %v8693_v60 = vadd.f32 %v16747_v15, %v16739_v5 }
 0x4d6   : > { %v10504_v61 = vsub.f32 %v10166_v46, %v10477_v10 }
 0x4d8   : > { %10042 = vmatmul.f32.vlgmr.msra.gmra.mxu3 %v16660_v59  ;;  %10114 = vmatmul.f32.vlgmr.msrb.gmra.mxu2 %v16660_v59  ;;  %v10505_v43 = vand.u32 4294901760, %v10504_v61 }
 0x4d9   : > { %10262 = vmatpush.msra.mxu3 %v10185_v50  ;;  %10332 = vmatpush.msrb.mxu2 %v10331_v38 }
 0x4da   : > { %v10506_v12 = vsub.f32 %v10504_v61, %v10505_v43 }
 0x4dc   : > { %10090 = vmatmul.f32.vlgmr.msrb.gmra.mxu1 %v16673_v40  ;;  %10192 = vmatmul.f32.vlgmr.msra.gmra.mxu0 %v15734_v31  ;;  %v16751_v40 = vpop.f32.mrf.mxu2  ;;  %v10507_v6 = vand.u32 4294901760, %v10506_v12 }
 0x4dd   : > { %10310 = vmatpush.msrb.mxu1 %v10185_v50  ;;  %10385 = vmatpush.msra.mxu0 %v10358_v1  ;;  %v8495_v50 = vadd.f32 %v16719_v0, %v8473_v8  ;;  %v8717_v16 = vadd.f32 %v16751_v40, %v8693_v60 }
 0x4e0   : > { %10136 = vmatmul.f32.vlgmr.msrb.gmra.mxu3 %v16660_v59  ;;  %10242 = vmatmul.f32.vlgmr.msra.gmra.mxu2 %v15696_v27  ;;  %v16757_v59 = vpop.f32.mrf.mxu3 }
 0x4e1   : > { %10362 = vmatpush.msrb.mxu3 %v10361_v17  ;;  %10434 = vmatpush.msra.mxu2 %v10359_v51 }
 0x4e4   : > { %10218 = vmatmul.f32.vlgmr.msra.gmra.mxu1 %v15679_v18  ;;  %10290 = vmatmul.f32.vlgmr.msrb.gmra.mxu0 %v15679_v18  ;;  %v16767_v54 = vpop.f32.mrf.mxu2 }
 0x4e5   : > { %10408 = vmatpush.msra.mxu1 %v10331_v38  ;;  %10478 = vmatpush.msrb.mxu0 %v10477_v10 }
 0x4e8   : > { %10266 = vmatmul.f32.vlgmr.msra.gmra.mxu3 %v15709_v34  ;;  %10338 = vmatmul.f32.vlgmr.msrb.gmra.mxu2 %v15734_v31  ;;  %v16771_v42 = vpop.f32.mrf.mxu3 }
 0x4e9   : > { %10456 = vmatpush.msra.mxu3 %v10331_v38  ;;  %10531 = vmatpush.msrb.mxu2 %v10504_v61  ;;  %v8595_v38 = vadd.f32 %v16735_v56, %v8571_v45  ;;  %v8839_v63 = vadd.f32 %v16771_v42, %v16767_v54 }
 0x4eb   : > { %v8619_v51 = vadd.f32 %v16737_v47, %v8595_v38 }
 0x4ec   : > { %10312 = vmatmul.f32.vlgmr.msrb.gmra.mxu1 %v15679_v18  ;;  %10388 = vmatmul.f32.vlgmr.msra.gmra.mxu0 %v15696_v27  ;;  %v16783_v44 = vpop.f32.mrf.mxu2 }
 0x4ed   : > { %10508 = vmatpush.msrb.mxu1 %v10507_v6  ;;  %10580 = vmatpush.msra.mxu0 %v10505_v43  ;;  %v8641_v46 = vadd.f32 %v16741_v57, %v8619_v51 }
 0x4f0   : > { %10364 = vmatmul.f32.vlgmr.msrb.gmra.mxu3 %v15679_v18  ;;  %10436 = vmatmul.f32.vlgmr.msra.gmra.mxu2 %v15679_v18  ;;  %v16785_v23 = vpop.f32.mrf.mxu3 }
 0x4f1   : > { %10554 = vmatpush.msrb.mxu3 %v10477_v10  ;;  %10624 = vmatpush.msra.mxu2 %v10623_v36 }
 0x4f4   : > { %10412 = vmatmul.f32.vlgmr.msra.gmra.mxu1 %v15709_v34  ;;  %10484 = vmatmul.f32.vlgmr.msrb.gmra.mxu0 %v15734_v31 }
 0x4f5   : > { %10602 = vmatpush.msra.mxu1 %v10477_v10  ;;  %10677 = vmatpush.msrb.mxu0 %v10650_v32  ;;  %v8741_v10 = vadd.f32 %v16757_v59, %v8717_v16  ;;  %v8863_v59 = vadd.f32 %v16769_v48, %v8839_v63 }
 0x4f7   : > { %v8765_v47 = vadd.f32 %v16755_v3, %v8741_v10  ;;  %v8887_v3 = vadd.f32 %v16779_v26, %v8863_v59 }
 0x4f8   : > { %10458 = vmatmul.f32.vlgmr.msra.gmra.mxu3 %v15679_v18  ;;  %10534 = vmatmul.f32.vlgmr.msrb.gmra.mxu2 %v15696_v27 }
 0x4f9   : > { %10654 = vmatpush.msra.mxu3 %v10653_v19  ;;  %10726 = vmatpush.msrb.mxu2 %v10651_v41  ;;  %v8970_v20 = vpop.f32.mrf.mxu0  ;;  %v8787_v12 = vadd.f32 %v16763_v21, %v8765_v47 }
 0x4fa   : > { %v8971_v62 = vadd.f32 %v8970_v20, %v8495_v50  ;;  %v8911_v20 = vadd.f32 %v16783_v44, %v8887_v3 }
 0x4fc   : > { %10510 = vmatmul.f32.vlgmr.msrb.gmra.mxu1 %v15679_v18  ;;  %10582 = vmatmul.f32.vlgmr.msra.gmra.mxu0 %v15679_v18  ;;  %v8933_v50 = vadd.f32 %v16785_v23, %v8911_v20 }
 0x4fd   : > { %10700 = vmatpush.msrb.mxu1 %v10623_v36 }
 0x4ff   : > { %v9044_v33 = vpop.f32.mrf.mxu3 }
 0x500   : > { %10558 = vmatmul.f32.vlgmr.msrb.gmra.mxu3 %v15709_v34  ;;  %10630 = vmatmul.f32.vlgmr.msra.gmra.mxu2 %v15734_v31 }
 0x501   : > { %10748 = vmatpush.msrb.mxu3 %v10623_v36  ;;  %v8996_v49 = vpop.f32.mrf.mxu1  ;;  %v9068_v11 = vpop.f32.mrf.mxu0 }
 0x502   : > { %v8997_v30 = vadd.f32 %v8996_v49, %v8971_v62  ;;  %v9020_v25 = vpop.f32.mrf.mxu2 }
 0x504   : > { %v9021_v35 = vadd.f32 %v9020_v25, %v8997_v30  ;;  %10604 = vmatmul.f32.vlgmr.msra.gmra.mxu1 %v15679_v18  ;;  %10680 = vmatmul.f32.vlgmr.msrb.gmra.mxu0 %v15696_v27 }
 0x506   : > { %v9045_v24 = vadd.f32 %v9044_v33, %v9021_v35 }
 0x508   : > { %v9069_v0 = vadd.f32 %v9068_v11, %v9045_v24  ;;  %10656 = vmatmul.f32.vlgmr.msra.gmra.mxu3 %v15679_v18  ;;  %10728 = vmatmul.f32.vlgmr.msrb.gmra.mxu2 %v15679_v18 }
 0x509   : > { %v9090_v55 = vpop.f32.mrf.mxu1  ;;  %v9166_v9 = vpop.f32.mrf.mxu0 }
 0x50a   : > { %v9091_v1 = vadd.f32 %v9090_v55, %v9069_v0 }
 0x50b   : > { %v9116_v13 = vpop.f32.mrf.mxu2 }
 0x50c   : > { %15152 = vst [vmem:[%s16050_s26 + $0x80] sm:$0xff] %v9091_v1  ;;  %10704 = vmatmul.f32.vlgmr.msrb.gmra.mxu1 %v15709_v34  ;;  %v9117_v17 = vadd.f32 %v9116_v13, %v8641_v46 }
 0x510   : > { %10750 = vmatmul.f32.vlgmr.msrb.gmra.mxu3 %v15679_v18 }
 0x511   : > { %v9190_v56 = vpop.f32.mrf.mxu1  ;;  %v9262_v22 = vpop.f32.mrf.mxu0 }
 0x512   : > { %v9263_v4 = vadd.f32 %v9262_v22, %v8787_v12 }
 0x513   : > { %v9142_v61 = vpop.f32.mrf.mxu3  ;;  %v9214_v5 = vpop.f32.mrf.mxu2 }
 0x514   : > { %v9143_v15 = vadd.f32 %v9142_v61, %v9117_v17 }
 0x516   : > { %v9167_v43 = vadd.f32 %v9166_v9, %v9143_v15 }
 0x518   : > { %v9191_v40 = vadd.f32 %v9190_v56, %v9167_v43 }
 0x519   : > { %v9288_v58 = vpop.f32.mrf.mxu1  ;;  %v9360_v57 = vpop.f32.mrf.mxu0 }
 0x51a   : > { %v9215_v36 = vadd.f32 %v9214_v5, %v9191_v40  ;;  %v9289_v37 = vadd.f32 %v9288_v58, %v9263_v4 }
 0x51b   : > { %v9236_v6 = vpop.f32.mrf.mxu3  ;;  %v9312_v32 = vpop.f32.mrf.mxu2 }
 0x51c   : > { %v9237_v41 = vadd.f32 %v9236_v6, %v9215_v36  ;;  %v9313_v54 = vadd.f32 %v9312_v32, %v9289_v37 }
 0x51e   : > { %15153 = vst [vmem:[%s16050_s26 + $0x88] sm:$0xff] %v9237_v41 }
 0x521   : > { %v9382_v2 = vpop.f32.mrf.mxu1  ;;  %v9458_v14 = vpop.f32.mrf.mxu0 }
 0x523   : > { %v9336_v42 = vpop.f32.mrf.mxu3  ;;  %v9408_v19 = vpop.f32.mrf.mxu2 }
 0x524   : > { %v9337_v21 = vadd.f32 %v9336_v42, %v9313_v54  ;;  %v9409_v62 = vadd.f32 %v9408_v19, %v8933_v50 }
 0x526   : > { %v9361_v8 = vadd.f32 %v9360_v57, %v9337_v21 }
 0x528   : > { %v9383_v28 = vadd.f32 %v9382_v2, %v9361_v8 }
 0x529   : > { %v9482_v48 = vpop.f32.mrf.mxu1  ;;  %v9579_v49 = vpop.f32.mrf.mxu0 }
 0x52a   : > { %15154 = vst [vmem:[%s16050_s26 + $0x90] sm:$0xff] %v9383_v28  ;;  %v9580_v44 = vadd.f32 %v9579_v49, %v15864_v53 }
 0x52b   : > { %v9434_v11 = vpop.f32.mrf.mxu3  ;;  %v9506_v30 = vpop.f32.mrf.mxu2 }
 0x52c   : > { %v9435_v26 = vadd.f32 %v9434_v11, %v9409_v62 }
 0x52e   : > { %v9459_v25 = vadd.f32 %v9458_v14, %v9435_v26 }
 0x530   : > { %v9483_v33 = vadd.f32 %v9482_v48, %v9459_v25 }
 0x531   : > { %v9605_v45 = vpop.f32.mrf.mxu1  ;;  %v9677_v55 = vpop.f32.mrf.mxu0 }
 0x532   : > { %v9507_v35 = vadd.f32 %v9506_v30, %v9483_v33  ;;  %v9606_v23 = vadd.f32 %v9605_v45, %v9580_v44  ;;  %v17316_v44 = vld [vmem:[#allocation20_spill] sm:$0xff] }
 0x533   : > { %v9528_v24 = vpop.f32.mrf.mxu3  ;;  %v9629_v38 = vpop.f32.mrf.mxu2 }
 0x534   : > { %v9529_v0 = vadd.f32 %v9528_v24, %v9507_v35  ;;  %v9630_v60 = vadd.f32 %v9629_v38, %v9606_v23 }
 0x536   : > { %15155 = vst [vmem:[%s16050_s26 + $0x98] sm:$0xff] %v9529_v0  ;;  %v11367_v0 = vsel %vm431_vm1, %v17316_v44, 0 }
 0x539   : > { %v9699_v9 = vpop.f32.mrf.mxu1  ;;  %v9775_v46 = vpop.f32.mrf.mxu0 }
 0x53b   : > { %v9653_v1 = vpop.f32.mrf.mxu3  ;;  %v9725_v13 = vpop.f32.mrf.mxu2 }
 0x53c   : > { %v9654_v51 = vadd.f32 %v9653_v1, %v9630_v60  ;;  %v9726_v17 = vadd.f32 %v9725_v13, %v15864_v53  ;;  %v15163_v60 = vld [vmem:[%s17271_s3 + $0x18] sm:$0xf] }
 0x53e   : > { %v9678_v16 = vadd.f32 %v9677_v55, %v9654_v51  ;;  %v11390_v51 = vand.u32 4294901760, %v11367_v0 }
 0x540   : > { %v9700_v56 = vadd.f32 %v9699_v9, %v9678_v16 }
 0x541   : > { %v9799_v22 = vpop.f32.mrf.mxu1  ;;  %v9871_v57 = vpop.f32.mrf.mxu0 }
 0x542   : > { %v10140_v10 = vmax.f32 %v9700_v56, 0.0  ;;  %v9872_v4 = vadd.f32 %v9871_v57, %v15864_v53  ;;  %v11365_v56 = vsel %vm427_vm0, %v15163_v60, 0 }
 0x543   : > { %v9751_v61 = vpop.f32.mrf.mxu3  ;;  %v9823_v5 = vpop.f32.mrf.mxu2 }
 0x544   : > { %v10755_v15 = vsel %vm431_vm1, %v10140_v10, 0  ;;  %v9752_v47 = vadd.f32 %v9751_v61, %v9726_v17  ;;  %v11417_v61 = vsub.f32 %v11367_v0, %v11390_v51 }
 0x545   : > { %v10781_v43 = vand.u32 4294901760, %v10755_v15 }
 0x546   : > { %v9776_v63 = vadd.f32 %v9775_v46, %v9752_v47 }
 0x547   : > { %10782 = vmatpush.msra.mxu0 %v10781_v43  ;;  %10858 = vmatpush.msra.mxu3 %v10781_v43  ;;  %v10808_v40 = vsub.f32 %v10755_v15, %v10781_v43  ;;  %v16848_v15 = vand.u32 4294901760, %v11365_v56 }
 0x548   : > { %v9800_v58 = vadd.f32 %v9799_v22, %v9776_v63  ;;  %10788 = vmatmul.f32.vlgmr.msra.gmra.mxu0 %v15879_v52  ;;  %10862 = vmatmul.f32.vlgmr.msra.gmra.mxu3 %v15873_v29  ;;  %v11418_v63 = vand.u32 4294901760, %v11417_v61 }
 0x549   : > { %10835 = vmatpush.msra.mxu2 %v10808_v40  ;;  %v10809_v12 = vand.u32 4294901760, %v10808_v40  ;;  %v9897_v6 = vpop.f32.mrf.mxu1  ;;  %v9969_v19 = vpop.f32.mrf.mxu0 }
 0x54a   : > { %v9824_v36 = vadd.f32 %v9823_v5, %v9800_v58  ;;  %10838 = vmatmul.f32.vlgmr.msra.gmra.mxu2 %v15870_v39  ;;  %v9898_v2 = vadd.f32 %v9897_v6, %v9872_v4  ;;  %v17317_v58 = vld [vmem:[#allocation21_spill] sm:$0xff] }
 0x54b   : > { %v9845_v32 = vpop.f32.mrf.mxu3  ;;  %10884 = vmatpush.msrb.mxu0 %v10809_v12  ;;  %v10810_v59 = vsub.f32 %v10808_v40, %v10809_v12  ;;  %v9921_v37 = vpop.f32.mrf.mxu2  ;;  %v11369_v57 = vsel %vm431_vm1, %v17317_v58, 0  ;;  %v16856_v12 = vsub.f32 %v11365_v56, %v16848_v15 }
 0x54c   : > { %v9846_v41 = vadd.f32 %v9845_v32, %v9824_v36  ;;  %v9922_v20 = vadd.f32 %v9921_v37, %v9898_v2  ;;  %v11419_v32 = vsub.f32 %v11417_v61, %v11418_v63 }
 0x54d   : > { %v10811_v3 = vand.u32 4294901760, %v10810_v59  ;;  %v11536_v59 = vand.u32 4294901760, %v11369_v57  ;;  %v16861_v4 = vand.u32 4294901760, %v16856_v12 }
 0x54e   : > { %v10141_v14 = vmax.f32 %v9846_v41, 0.0  ;;  %v11420_v37 = vand.u32 4294901760, %v11419_v32 }
 0x54f   : > { %10812 = vmatpush.msra.mxu1 %v10811_v3  ;;  %v11563_v2 = vsub.f32 %v11369_v57, %v11536_v59 }
 0x550   : > { %v10758_v54 = vsel %vm431_vm1, %v10141_v14, 0  ;;  %10814 = vmatmul.f32.vlgmr.msra.gmra.mxu1 %v15866_v7  ;;  %10886 = vmatmul.f32.vlgmr.msrb.gmra.mxu0 %v15866_v7  ;;  %v11395_v14 = vsub.f32 %v16856_v12, %v16861_v4 }
 0x551   : > { %v10927_v42 = vand.u32 4294901760, %v10758_v54  ;;  %10906 = vmatpush.msrb.mxu1 %v10781_v43  ;;  %v9991_v50 = vpop.f32.mrf.mxu1  ;;  %v10067_v35 = vpop.f32.mrf.mxu0 }
 0x553   : > { %v10954_v21 = vsub.f32 %v10758_v54, %v10927_v42  ;;  %v9945_v8 = vpop.f32.mrf.mxu3  ;;  %10928 = vmatpush.msrb.mxu2 %v10927_v42  ;;  %11004 = vmatpush.msra.mxu1 %v10927_v42  ;;  %v10017_v49 = vpop.f32.mrf.mxu2 }
 0x554   : > { %v9946_v28 = vadd.f32 %v9945_v8, %v9922_v20  ;;  %10934 = vmatmul.f32.vlgmr.msrb.gmra.mxu2 %v15879_v52  ;;  %v10018_v25 = vadd.f32 %v10017_v49, %v15864_v53  ;;  %v17318_v20 = vld [vmem:[#allocation22_spill] sm:$0xff]  ;;  %v17319_v49 = vld [vmem:[#allocation23_spill] sm:$0xff] }
 0x555   : > { %10981 = vmatpush.msra.mxu0 %v10954_v21  ;;  %v10955_v48 = vand.u32 4294901760, %v10954_v21 }
 0x556   : > { %v9970_v62 = vadd.f32 %v9969_v19, %v9946_v28  ;;  %v16869_v19 = vand.u32 4294901760, %v11395_v14  ;;  %v17323_v14 = vld [vmem:[#allocation27_spill] sm:$0xff] }
 0x557   : > { %11030 = vmatpush.msra.mxu2 %v10955_v48  ;;  %v10956_v11 = vsub.f32 %v10954_v21, %v10955_v48  ;;  %v11371_v21 = vsel %vm431_vm1, %v17318_v20, 0 }
 0x558   : > { %v9992_v30 = vadd.f32 %v9991_v50, %v9970_v62  ;;  %10908 = vmatmul.f32.vlgmr.msrb.gmra.mxu1 %v15866_v7  ;;  %10984 = vmatmul.f32.vlgmr.msra.gmra.mxu0 %v15870_v39  ;;  %v11682_v50 = vand.u32 4294901760, %v11371_v21 }
 0x559   : > { %v10957_v26 = vand.u32 4294901760, %v10956_v11  ;;  %v10091_v23 = vpop.f32.mrf.mxu1  ;;  %v11373_v11 = vsel %vm431_vm1, %v17319_v49, 0 }
 0x55a   : > { %v10142_v33 = vmax.f32 %v9992_v30, 0.0  ;;  %v11709_v48 = vsub.f32 %v11371_v21, %v11682_v50 }
 0x55b   : > { %v10043_v45 = vpop.f32.mrf.mxu3  ;;  %10958 = vmatpush.msrb.mxu3 %v10957_v26  ;;  %v10115_v13 = vpop.f32.mrf.mxu2  ;;  %v11828_v26 = vand.u32 4294901760, %v11373_v11 }
 0x55c   : > { %v10761_v24 = vsel %vm431_vm1, %v10142_v33, 0  ;;  %v10044_v38 = vadd.f32 %v10043_v45, %v10018_v25  ;;  %10960 = vmatmul.f32.vlgmr.msrb.gmra.mxu3 %v15866_v7  ;;  %11032 = vmatmul.f32.vlgmr.msra.gmra.mxu2 %v15866_v7  ;;  %v11710_v62 = vand.u32 4294901760, %v11709_v48  ;;  %v16885_v45 = vpop.f32.mrf.mxu0 }
 0x55d   : > { %v11073_v55 = vand.u32 4294901760, %v10761_v24  ;;  %11052 = vmatpush.msra.mxu3 %v10927_v42  ;;  %v11564_v42 = vand.u32 4294901760, %v11563_v2  ;;  %v11855_v33 = vsub.f32 %v11373_v11, %v11828_v26 }
 0x55e   : > { %v10068_v9 = vadd.f32 %v10067_v35, %v10044_v38  ;;  %v11711_v30 = vsub.f32 %v11709_v48, %v11710_v62 }
 0x55f   : > { %v11100_v1 = vsub.f32 %v10761_v24, %v11073_v55  ;;  %11074 = vmatpush.msrb.mxu0 %v11073_v55  ;;  %11150 = vmatpush.msrb.mxu3 %v11073_v55  ;;  %v11565_v8 = vsub.f32 %v11563_v2, %v11564_v42  ;;  %v11856_v35 = vand.u32 4294901760, %v11855_v33  ;;  %v17320_v24 = vld [vmem:[#allocation24_spill] sm:$0xff] }
 0x560   : > { %v10092_v16 = vadd.f32 %v10091_v23, %v10068_v9  ;;  %11008 = vmatmul.f32.vlgmr.msra.gmra.mxu1 %v15873_v29  ;;  %11080 = vmatmul.f32.vlgmr.msrb.gmra.mxu0 %v15879_v52  ;;  %v11712_v25 = vand.u32 4294901760, %v11711_v30  ;;  %v11981_v38 = vsel %vm431_vm1, %v17320_v24, 0 }
 0x561   : > { %11127 = vmatpush.msrb.mxu2 %v11100_v1  ;;  %v11101_v46 = vand.u32 4294901760, %v11100_v1  ;;  %v11566_v28 = vand.u32 4294901760, %v11565_v8  ;;  %v11857_v44 = vsub.f32 %v11855_v33, %v11856_v35  ;;  %v12004_v0 = vand.u32 4294901760, %v11981_v38 }
 0x562   : > { %v10116_v22 = vadd.f32 %v10115_v13, %v10092_v16  ;;  %v17321_v16 = vld [vmem:[#allocation25_spill] sm:$0xff] }
 0x563   : > { %v10137_v10 = vpop.f32.mrf.mxu3  ;;  %11176 = vmatpush.msra.mxu0 %v11101_v46  ;;  %v11102_v17 = vsub.f32 %v11100_v1, %v11101_v46  ;;  %v16895_v23 = vpop.f32.mrf.mxu2  ;;  %v11858_v9 = vand.u32 4294901760, %v11857_v44  ;;  %v12031_v60 = vsub.f32 %v11981_v38, %v12004_v0  ;;  %v11983_v46 = vsel %vm431_vm1, %v17321_v16, 0 }
 0x564   : > { %v10138_v5 = vadd.f32 %v10137_v10, %v10116_v22  ;;  %11054 = vmatmul.f32.vlgmr.msra.gmra.mxu3 %v15866_v7  ;;  %11130 = vmatmul.f32.vlgmr.msrb.gmra.mxu2 %v15870_v39  ;;  %v16897_v1 = vpop.f32.mrf.mxu0  ;;  %v12150_v22 = vand.u32 4294901760, %v11983_v46 }
 0x565   : > { %v11103_v47 = vand.u32 4294901760, %v11102_v17 }
 0x566   : > { %v10143_v43 = vmax.f32 %v10138_v5, 0.0 }
 0x567   : > { %11104 = vmatpush.msrb.mxu1 %v11103_v47 }
 0x568   : > { %v10764_v40 = vsel %vm431_vm1, %v10143_v43, 0  ;;  %11106 = vmatmul.f32.vlgmr.msrb.gmra.mxu1 %v15866_v7  ;;  %11178 = vmatmul.f32.vlgmr.msra.gmra.mxu0 %v15866_v7  ;;  %v12177_v43 = vsub.f32 %v11983_v46, %v12150_v22 }
 0x569   : > { %v11219_v36 = vand.u32 4294901760, %v10764_v40  ;;  %11198 = vmatpush.msra.mxu1 %v11073_v55  ;;  %v16893_v55 = vpop.f32.mrf.mxu1 }
 0x56b   : > { %v11246_v6 = vsub.f32 %v10764_v40, %v11219_v36  ;;  %11220 = vmatpush.msra.mxu2 %v11219_v36  ;;  %11296 = vmatpush.msrb.mxu1 %v11219_v36  ;;  %v16899_v13 = vpop.f32.mrf.mxu3  ;;  %v16911_v17 = vpop.f32.mrf.mxu2  ;;  %v17322_v40 = vld [vmem:[#allocation26_spill] sm:$0xff] }
 0x56c   : > { %11154 = vmatmul.f32.vlgmr.msrb.gmra.mxu3 %v15873_v29  ;;  %11226 = vmatmul.f32.vlgmr.msra.gmra.mxu2 %v15879_v52  ;;  %v11985_v58 = vsel %vm431_vm1, %v17322_v40, 0 }
 0x56d   : > { %11273 = vmatpush.msrb.mxu0 %v11246_v6  ;;  %v11247_v41 = vand.u32 4294901760, %v11246_v6 }
 0x56f   : > { %11391 = vmatpush.msra.mxu0 %v11390_v51  ;;  %11322 = vmatpush.msrb.mxu2 %v11247_v41  ;;  %v11248_v3 = vsub.f32 %v11246_v6, %v11247_v41 }
 0x570   : > { %11200 = vmatmul.f32.vlgmr.msra.gmra.mxu1 %v15866_v7  ;;  %11276 = vmatmul.f32.vlgmr.msrb.gmra.mxu0 %v15870_v39 }
 0x571   : > { %11421 = vmatpush.msra.mxu1 %v11420_v37  ;;  %11444 = vmatpush.msra.mxu2 %v11417_v61  ;;  %v11249_v54 = vand.u32 4294901760, %v11248_v3  ;;  %v16907_v10 = vpop.f32.mrf.mxu1  ;;  %v16913_v61 = vpop.f32.mrf.mxu0 }
 0x572   : > { %11493 = vmatpush.msrb.mxu0 %v11418_v63  ;;  %v12178_v63 = vand.u32 4294901760, %v12177_v43 }
 0x573   : > { %11250 = vmatpush.msra.mxu3 %v11249_v54  ;;  %v16915_v5 = vpop.f32.mrf.mxu3  ;;  %v11987_v54 = vsel %vm431_vm1, %v17323_v14, 0 }
 0x574   : > { %11252 = vmatmul.f32.vlgmr.msra.gmra.mxu3 %v15866_v7  ;;  %11324 = vmatmul.f32.vlgmr.msrb.gmra.mxu2 %v15866_v7  ;;  %v12179_v6 = vsub.f32 %v12177_v43, %v12178_v63  ;;  %v12442_v20 = vand.u32 4294901760, %v11987_v54 }
 0x575   : > { %11344 = vmatpush.msrb.mxu3 %v11219_v36  ;;  %11537 = vmatpush.msrb.mxu2 %v11536_v59  ;;  %v16925_v36 = vpop.f32.mrf.mxu2 }
 0x576   : > { %v12180_v41 = vand.u32 4294901760, %v12179_v6  ;;  %v12469_v8 = vsub.f32 %v11987_v54, %v12442_v20 }
 0x577   : > { %11467 = vmatpush.msra.mxu3 %v11390_v51 }
 0x578   : > { %11300 = vmatmul.f32.vlgmr.msrb.gmra.mxu1 %v15873_v29  ;;  %11397 = vmatmul.f32.vlgmr.msra.gmra.mxu0 %v16869_v19  ;;  %v12470_v11 = vand.u32 4294901760, %v12469_v8 }
 0x579   : > { %11515 = vmatpush.msrb.mxu1 %v11390_v51  ;;  %11590 = vmatpush.msra.mxu0 %v11563_v2  ;;  %v12032_v51 = vand.u32 4294901760, %v12031_v60  ;;  %v16923_v57 = vpop.f32.mrf.mxu1  ;;  %v16927_v32 = vpop.f32.mrf.mxu0 }
 0x57b   : > { %v12033_v56 = vsub.f32 %v12031_v60, %v12032_v51 }
 0x57c   : > { %11346 = vmatmul.f32.vlgmr.msrb.gmra.mxu3 %v15866_v7  ;;  %11447 = vmatmul.f32.vlgmr.msra.gmra.mxu2 %v16856_v12 }
 0x57d   : > { %11567 = vmatpush.msrb.mxu3 %v11566_v28  ;;  %11639 = vmatpush.msra.mxu2 %v11564_v42  ;;  %v12034_v47 = vand.u32 4294901760, %v12033_v56  ;;  %v10220_v28 = vadd.f32 %v16893_v55, %v16885_v45  ;;  %v10366_v55 = vadd.f32 %v16915_v5, %v16911_v17 }
 0x57f   : > { %v10244_v30 = vadd.f32 %v16895_v23, %v10220_v28  ;;  %v10390_v16 = vadd.f32 %v16913_v61, %v10366_v55 }
 0x580   : > { %11423 = vmatmul.f32.vlgmr.msra.gmra.mxu1 %v16848_v15  ;;  %11495 = vmatmul.f32.vlgmr.msrb.gmra.mxu0 %v16848_v15 }
 0x581   : > { %11613 = vmatpush.msra.mxu1 %v11536_v59  ;;  %11683 = vmatpush.msrb.mxu0 %v11682_v50  ;;  %v16935_v3 = vpop.f32.mrf.mxu1  ;;  %v16943_v42 = vpop.f32.mrf.mxu0 }
 0x584   : > { %11471 = vmatmul.f32.vlgmr.msra.gmra.mxu3 %v16861_v4  ;;  %11543 = vmatmul.f32.vlgmr.msrb.gmra.mxu2 %v16869_v19 }
 0x585   : > { %11661 = vmatpush.msra.mxu3 %v11536_v59  ;;  %11736 = vmatpush.msrb.mxu2 %v11709_v48  ;;  %v16929_v59 = vpop.f32.mrf.mxu3 }
 0x588   : > { %11517 = vmatmul.f32.vlgmr.msrb.gmra.mxu1 %v16848_v15  ;;  %11593 = vmatmul.f32.vlgmr.msra.gmra.mxu0 %v16856_v12 }
 0x589   : > { %11713 = vmatpush.msrb.mxu1 %v11712_v25  ;;  %11785 = vmatpush.msra.mxu0 %v11710_v62  ;;  %v16957_v62 = vpop.f32.mrf.mxu0  ;;  %v10268_v25 = vadd.f32 %v16899_v13, %v10244_v30 }
 0x58b   : > { %v10292_v44 = vadd.f32 %v16897_v1, %v10268_v25 }
 0x58c   : > { %11569 = vmatmul.f32.vlgmr.msrb.gmra.mxu3 %v16848_v15  ;;  %11641 = vmatmul.f32.vlgmr.msra.gmra.mxu2 %v16848_v15 }
 0x58d   : > { %11759 = vmatpush.msrb.mxu3 %v11682_v50  ;;  %11829 = vmatpush.msra.mxu2 %v11828_v26 }
 0x590   : > { %11617 = vmatmul.f32.vlgmr.msra.gmra.mxu1 %v16861_v4  ;;  %11689 = vmatmul.f32.vlgmr.msrb.gmra.mxu0 %v16869_v19 }
 0x591   : > { %11807 = vmatpush.msra.mxu1 %v11682_v50  ;;  %11882 = vmatpush.msrb.mxu0 %v11855_v33  ;;  %v16951_v50 = vpop.f32.mrf.mxu1 }
 0x594   : > { %11663 = vmatmul.f32.vlgmr.msra.gmra.mxu3 %v16848_v15  ;;  %11739 = vmatmul.f32.vlgmr.msrb.gmra.mxu2 %v16856_v12 }
 0x595   : > { %11859 = vmatpush.msra.mxu3 %v11858_v9  ;;  %11931 = vmatpush.msrb.mxu2 %v11856_v35 }
 0x598   : > { %11715 = vmatmul.f32.vlgmr.msrb.gmra.mxu1 %v16848_v15  ;;  %11787 = vmatmul.f32.vlgmr.msra.gmra.mxu0 %v16848_v15 }
 0x599   : > { %11905 = vmatpush.msrb.mxu1 %v11828_v26  ;;  %12005 = vmatpush.msra.mxu0 %v12004_v0  ;;  %v16967_v45 = vpop.f32.mrf.mxu1 }
 0x59c   : > { %11763 = vmatmul.f32.vlgmr.msrb.gmra.mxu3 %v16861_v4  ;;  %11835 = vmatmul.f32.vlgmr.msra.gmra.mxu2 %v16869_v19 }
 0x59d   : > { %11953 = vmatpush.msrb.mxu3 %v11828_v26  ;;  %12058 = vmatpush.msra.mxu2 %v12031_v60  ;;  %v12471_v26 = vsub.f32 %v12469_v8, %v12470_v11 }
 0x59f   : > { %v12472_v33 = vand.u32 4294901760, %v12471_v26 }
 0x5a0   : > { %11809 = vmatmul.f32.vlgmr.msra.gmra.mxu1 %v16848_v15  ;;  %11885 = vmatmul.f32.vlgmr.msrb.gmra.mxu0 %v16856_v12  ;;  %v12296_v12 = vand.u32 4294901760, %v11985_v58 }
 0x5a1   : > { %12035 = vmatpush.msra.mxu1 %v12034_v47  ;;  %12107 = vmatpush.msrb.mxu0 %v12032_v51  ;;  %v10512_v47 = vadd.f32 %v16935_v3, %v16927_v32 }
 0x5a2   : > { %v12323_v37 = vsub.f32 %v11985_v58, %v12296_v12 }
 0x5a4   : > { %11861 = vmatmul.f32.vlgmr.msra.gmra.mxu3 %v16848_v15  ;;  %11933 = vmatmul.f32.vlgmr.msrb.gmra.mxu2 %v16848_v15  ;;  %v12324_v2 = vand.u32 4294901760, %v12323_v37 }
 0x5a5   : > { %12081 = vmatpush.msra.mxu3 %v12004_v0  ;;  %12151 = vmatpush.msrb.mxu2 %v12150_v22 }
 0x5a6   : > { %v12325_v19 = vsub.f32 %v12323_v37, %v12324_v2 }
 0x5a8   : > { %11909 = vmatmul.f32.vlgmr.msrb.gmra.mxu1 %v16861_v4  ;;  %12011 = vmatmul.f32.vlgmr.msra.gmra.mxu0 %v15734_v31  ;;  %v16939_v4 = vpop.f32.mrf.mxu2  ;;  %v12326_v21 = vand.u32 4294901760, %v12325_v19 }
 0x5a9   : > { %12129 = vmatpush.msrb.mxu1 %v12004_v0  ;;  %12204 = vmatpush.msra.mxu0 %v12177_v43  ;;  %v10314_v0 = vadd.f32 %v16907_v10, %v10292_v44  ;;  %v10536_v40 = vadd.f32 %v16939_v4, %v10512_v47 }
 0x5ac   : > { %11955 = vmatmul.f32.vlgmr.msrb.gmra.mxu3 %v16848_v15  ;;  %12061 = vmatmul.f32.vlgmr.msra.gmra.mxu2 %v15696_v27  ;;  %v16945_v15 = vpop.f32.mrf.mxu3 }
 0x5ad   : > { %12181 = vmatpush.msrb.mxu3 %v12180_v41  ;;  %12253 = vmatpush.msra.mxu2 %v12178_v63 }
 0x5b0   : > { %12037 = vmatmul.f32.vlgmr.msra.gmra.mxu1 %v15679_v18  ;;  %12109 = vmatmul.f32.vlgmr.msrb.gmra.mxu0 %v15679_v18  ;;  %v16955_v48 = vpop.f32.mrf.mxu2 }
 0x5b1   : > { %12227 = vmatpush.msra.mxu1 %v12150_v22  ;;  %12297 = vmatpush.msrb.mxu0 %v12296_v12 }
 0x5b4   : > { %12085 = vmatmul.f32.vlgmr.msra.gmra.mxu3 %v15709_v34  ;;  %12157 = vmatmul.f32.vlgmr.msrb.gmra.mxu2 %v15734_v31  ;;  %v16959_v49 = vpop.f32.mrf.mxu3 }
 0x5b5   : > { %12275 = vmatpush.msra.mxu3 %v12150_v22  ;;  %12350 = vmatpush.msrb.mxu2 %v12323_v37  ;;  %v10414_v22 = vadd.f32 %v16923_v57, %v10390_v16  ;;  %v10658_v14 = vadd.f32 %v16959_v49, %v16955_v48 }
 0x5b7   : > { %v10438_v63 = vadd.f32 %v16925_v36, %v10414_v22 }
 0x5b8   : > { %12131 = vmatmul.f32.vlgmr.msrb.gmra.mxu1 %v15679_v18  ;;  %12207 = vmatmul.f32.vlgmr.msra.gmra.mxu0 %v15696_v27  ;;  %v16971_v35 = vpop.f32.mrf.mxu2 }
 0x5b9   : > { %12327 = vmatpush.msrb.mxu1 %v12326_v21  ;;  %12399 = vmatpush.msra.mxu0 %v12324_v2  ;;  %v10460_v58 = vadd.f32 %v16929_v59, %v10438_v63 }
 0x5bc   : > { %12183 = vmatmul.f32.vlgmr.msrb.gmra.mxu3 %v15679_v18  ;;  %12255 = vmatmul.f32.vlgmr.msra.gmra.mxu2 %v15679_v18  ;;  %v16973_v38 = vpop.f32.mrf.mxu3 }
 0x5bd   : > { %12373 = vmatpush.msrb.mxu3 %v12296_v12  ;;  %12443 = vmatpush.msra.mxu2 %v12442_v20 }
 0x5c0   : > { %12231 = vmatmul.f32.vlgmr.msra.gmra.mxu1 %v15709_v34  ;;  %12303 = vmatmul.f32.vlgmr.msrb.gmra.mxu0 %v15734_v31 }
 0x5c1   : > { %12421 = vmatpush.msra.mxu1 %v12296_v12  ;;  %12496 = vmatpush.msrb.mxu0 %v12469_v8  ;;  %v10560_v12 = vadd.f32 %v16945_v15, %v10536_v40  ;;  %v10682_v15 = vadd.f32 %v16957_v62, %v10658_v14 }
 0x5c3   : > { %v10584_v36 = vadd.f32 %v16943_v42, %v10560_v12  ;;  %v10706_v42 = vadd.f32 %v16967_v45, %v10682_v15 }
 0x5c4   : > { %12277 = vmatmul.f32.vlgmr.msra.gmra.mxu3 %v15679_v18  ;;  %12353 = vmatmul.f32.vlgmr.msrb.gmra.mxu2 %v15696_v27 }
 0x5c5   : > { %12473 = vmatpush.msra.mxu3 %v12472_v33  ;;  %12545 = vmatpush.msrb.mxu2 %v12470_v11  ;;  %v10789_v24 = vpop.f32.mrf.mxu0  ;;  %v10606_v19 = vadd.f32 %v16951_v50, %v10584_v36 }
 0x5c6   : > { %v10790_v23 = vadd.f32 %v10789_v24, %v10314_v0  ;;  %v10730_v24 = vadd.f32 %v16971_v35, %v10706_v42 }
 0x5c8   : > { %12329 = vmatmul.f32.vlgmr.msrb.gmra.mxu1 %v15679_v18  ;;  %12401 = vmatmul.f32.vlgmr.msra.gmra.mxu0 %v15679_v18  ;;  %v10752_v0 = vadd.f32 %v16973_v38, %v10730_v24 }
 0x5c9   : > { %12519 = vmatpush.msrb.mxu1 %v12442_v20 }
 0x5cb   : > { %v10863_v51 = vpop.f32.mrf.mxu3 }
 0x5cc   : > { %12377 = vmatmul.f32.vlgmr.msrb.gmra.mxu3 %v15709_v34  ;;  %12449 = vmatmul.f32.vlgmr.msra.gmra.mxu2 %v15734_v31 }
 0x5cd   : > { %12567 = vmatpush.msrb.mxu3 %v12442_v20  ;;  %v10815_v9 = vpop.f32.mrf.mxu1  ;;  %v10887_v60 = vpop.f32.mrf.mxu0 }
 0x5ce   : > { %v10816_v13 = vadd.f32 %v10815_v9, %v10790_v23  ;;  %v10839_v1 = vpop.f32.mrf.mxu2 }
 0x5d0   : > { %v10840_v46 = vadd.f32 %v10839_v1, %v10816_v13  ;;  %12423 = vmatmul.f32.vlgmr.msra.gmra.mxu1 %v15679_v18  ;;  %12499 = vmatmul.f32.vlgmr.msrb.gmra.mxu0 %v15696_v27 }
 0x5d2   : > { %v10864_v56 = vadd.f32 %v10863_v51, %v10840_v46 }
 0x5d4   : > { %v10888_v10 = vadd.f32 %v10887_v60, %v10864_v56  ;;  %12475 = vmatmul.f32.vlgmr.msra.gmra.mxu3 %v15679_v18  ;;  %12547 = vmatmul.f32.vlgmr.msrb.gmra.mxu2 %v15679_v18 }
 0x5d5   : > { %v10909_v17 = vpop.f32.mrf.mxu1  ;;  %v10985_v5 = vpop.f32.mrf.mxu0 }
 0x5d6   : > { %v10910_v43 = vadd.f32 %v10909_v17, %v10888_v10 }
 0x5d7   : > { %v10935_v61 = vpop.f32.mrf.mxu2 }
 0x5d8   : > { %15159 = vst [vmem:[%s16050_s26 + $0xa0] sm:$0xff] %v10910_v43  ;;  %12523 = vmatmul.f32.vlgmr.msrb.gmra.mxu1 %v15709_v34  ;;  %v10936_v41 = vadd.f32 %v10935_v61, %v10460_v58 }
 0x5dc   : > { %12569 = vmatmul.f32.vlgmr.msrb.gmra.mxu3 %v15679_v18 }
 0x5dd   : > { %v11009_v57 = vpop.f32.mrf.mxu1  ;;  %v11081_v6 = vpop.f32.mrf.mxu0 }
 0x5de   : > { %v11082_v28 = vadd.f32 %v11081_v6, %v10606_v19 }
 0x5df   : > { %v10961_v37 = vpop.f32.mrf.mxu3  ;;  %v11033_v32 = vpop.f32.mrf.mxu2 }
 0x5e0   : > { %v10962_v3 = vadd.f32 %v10961_v37, %v10936_v41 }
 0x5e2   : > { %v10986_v2 = vadd.f32 %v10985_v5, %v10962_v3 }
 0x5e4   : > { %v11010_v4 = vadd.f32 %v11009_v57, %v10986_v2 }
 0x5e5   : > { %v11107_v54 = vpop.f32.mrf.mxu1  ;;  %v11179_v59 = vpop.f32.mrf.mxu0 }
 0x5e6   : > { %v11034_v20 = vadd.f32 %v11033_v32, %v11010_v4  ;;  %v11108_v30 = vadd.f32 %v11107_v54, %v11082_v28 }
 0x5e7   : > { %v11055_v21 = vpop.f32.mrf.mxu3  ;;  %v11131_v8 = vpop.f32.mrf.mxu2 }
 0x5e8   : > { %v11056_v11 = vadd.f32 %v11055_v21, %v11034_v20  ;;  %v11132_v48 = vadd.f32 %v11131_v8, %v11108_v30 }
 0x5ea   : > { %15160 = vst [vmem:[%s16050_s26 + $0xa8] sm:$0xff] %v11056_v11 }
 0x5ed   : > { %v11201_v26 = vpop.f32.mrf.mxu1  ;;  %v11277_v25 = vpop.f32.mrf.mxu0 }
 0x5ef   : > { %v11155_v49 = vpop.f32.mrf.mxu3  ;;  %v11227_v33 = vpop.f32.mrf.mxu2 }
 0x5f0   : > { %v11156_v50 = vadd.f32 %v11155_v49, %v11132_v48  ;;  %v11228_v23 = vadd.f32 %v11227_v33, %v10752_v0 }
 0x5f2   : > { %v11180_v44 = vadd.f32 %v11179_v59, %v11156_v50 }
 0x5f4   : > { %v11202_v55 = vadd.f32 %v11201_v26, %v11180_v44 }
 0x5f5   : > { %v11301_v62 = vpop.f32.mrf.mxu1  ;;  %v11398_v9 = vpop.f32.mrf.mxu0 }
 0x5f6   : > { %15161 = vst [vmem:[%s16050_s26 + $0xb0] sm:$0xff] %v11202_v55  ;;  %v11399_v35 = vadd.f32 %v11398_v9, %v15864_v53 }
 0x5f7   : > { %v11253_v60 = vpop.f32.mrf.mxu3  ;;  %v11325_v13 = vpop.f32.mrf.mxu2 }
 0x5f8   : > { %v11254_v45 = vadd.f32 %v11253_v60, %v11228_v23 }
 0x5fa   : > { %v11278_v1 = vadd.f32 %v11277_v25, %v11254_v45 }
 0x5fc   : > { %v11302_v51 = vadd.f32 %v11301_v62, %v11278_v1 }
 0x5fd   : > { %v11424_v16 = vpop.f32.mrf.mxu1  ;;  %v11496_v17 = vpop.f32.mrf.mxu0 }
 0x5fe   : > { %v11326_v46 = vadd.f32 %v11325_v13, %v11302_v51  ;;  %v11425_v38 = vadd.f32 %v11424_v16, %v11399_v35  ;;  %v17324_v35 = vld [vmem:[#allocation28_spill] sm:$0xff] }
 0x5ff   : > { %v11347_v56 = vpop.f32.mrf.mxu3  ;;  %v11448_v22 = vpop.f32.mrf.mxu2 }
 0x600   : > { %v11348_v10 = vadd.f32 %v11347_v56, %v11326_v46  ;;  %v11449_v47 = vadd.f32 %v11448_v22, %v11425_v38 }
 0x602   : > { %15162 = vst [vmem:[%s16050_s26 + $0xb8] sm:$0xff] %v11348_v10  ;;  %v13186_v10 = vsel %vm431_vm1, %v17324_v35, 0 }
 0x605   : > { %v11518_v5 = vpop.f32.mrf.mxu1  ;;  %v11594_v58 = vpop.f32.mrf.mxu0 }
 0x607   : > { %v11472_v43 = vpop.f32.mrf.mxu3  ;;  %v11544_v61 = vpop.f32.mrf.mxu2 }
 0x608   : > { %v11473_v63 = vadd.f32 %v11472_v43, %v11449_v47  ;;  %v11545_v41 = vadd.f32 %v11544_v61, %v15864_v53  ;;  %v15170_v47 = vld [vmem:[%s17271_s3 + $0x1c] sm:$0xf] }
 0x60a   : > { %v11497_v40 = vadd.f32 %v11496_v17, %v11473_v63  ;;  %v13209_v63 = vand.u32 4294901760, %v13186_v10 }
 0x60c   : > { %v11519_v57 = vadd.f32 %v11518_v5, %v11497_v40 }
 0x60d   : > { %v11618_v6 = vpop.f32.mrf.mxu1  ;;  %v11690_v59 = vpop.f32.mrf.mxu0 }
 0x60e   : > { %v11959_v12 = vmax.f32 %v11519_v57, 0.0  ;;  %v11691_v28 = vadd.f32 %v11690_v59, %v15864_v53  ;;  %v13184_v57 = vsel %vm427_vm0, %v15170_v47, 0 }
 0x60f   : > { %v11570_v37 = vpop.f32.mrf.mxu3  ;;  %v11642_v32 = vpop.f32.mrf.mxu2 }
 0x610   : > { %v12574_v3 = vsel %vm431_vm1, %v11959_v12, 0  ;;  %v11571_v36 = vadd.f32 %v11570_v37, %v11545_v41  ;;  %v13236_v37 = vsub.f32 %v13186_v10, %v13209_v63 }
 0x611   : > { %v12600_v2 = vand.u32 4294901760, %v12574_v3 }
 0x612   : > { %v11595_v14 = vadd.f32 %v11594_v58, %v11571_v36 }
 0x613   : > { %12601 = vmatpush.msra.mxu0 %v12600_v2  ;;  %12677 = vmatpush.msra.mxu3 %v12600_v2  ;;  %v12627_v4 = vsub.f32 %v12574_v3, %v12600_v2  ;;  %v17036_v3 = vand.u32 4294901760, %v13184_v57 }
 0x614   : > { %v11619_v54 = vadd.f32 %v11618_v6, %v11595_v14  ;;  %12607 = vmatmul.f32.vlgmr.msra.gmra.mxu0 %v15879_v52  ;;  %12681 = vmatmul.f32.vlgmr.msra.gmra.mxu3 %v15873_v29  ;;  %v13237_v14 = vand.u32 4294901760, %v13236_v37 }
 0x615   : > { %12654 = vmatpush.msra.mxu2 %v12627_v4  ;;  %v12628_v19 = vand.u32 4294901760, %v12627_v4  ;;  %v11716_v21 = vpop.f32.mrf.mxu1  ;;  %v11788_v33 = vpop.f32.mrf.mxu0 }
 0x616   : > { %v11643_v20 = vadd.f32 %v11642_v32, %v11619_v54  ;;  %12657 = vmatmul.f32.vlgmr.msra.gmra.mxu2 %v15870_v39  ;;  %v11717_v26 = vadd.f32 %v11716_v21, %v11691_v28  ;;  %v17325_v54 = vld [vmem:[#allocation29_spill] sm:$0xff] }
 0x617   : > { %v11664_v8 = vpop.f32.mrf.mxu3  ;;  %12703 = vmatpush.msrb.mxu0 %v12628_v19  ;;  %v12629_v15 = vsub.f32 %v12627_v4, %v12628_v19  ;;  %v11740_v30 = vpop.f32.mrf.mxu2  ;;  %v13188_v59 = vsel %vm431_vm1, %v17325_v54, 0  ;;  %v17044_v19 = vsub.f32 %v13184_v57, %v17036_v3 }
 0x618   : > { %v11665_v11 = vadd.f32 %v11664_v8, %v11643_v20  ;;  %v11741_v24 = vadd.f32 %v11740_v30, %v11717_v26  ;;  %v13238_v8 = vsub.f32 %v13236_v37, %v13237_v14 }
 0x619   : > { %v12630_v42 = vand.u32 4294901760, %v12629_v15  ;;  %v13355_v15 = vand.u32 4294901760, %v13188_v59  ;;  %v17049_v28 = vand.u32 4294901760, %v17044_v19 }
 0x61a   : > { %v11960_v25 = vmax.f32 %v11665_v11, 0.0  ;;  %v13239_v30 = vand.u32 4294901760, %v13238_v8 }
 0x61b   : > { %12631 = vmatpush.msra.mxu1 %v12630_v42  ;;  %v13382_v26 = vsub.f32 %v13188_v59, %v13355_v15 }
 0x61c   : > { %v12577_v48 = vsel %vm431_vm1, %v11960_v25, 0  ;;  %12633 = vmatmul.f32.vlgmr.msra.gmra.mxu1 %v15866_v7  ;;  %12705 = vmatmul.f32.vlgmr.msrb.gmra.mxu0 %v15866_v7  ;;  %v13214_v25 = vsub.f32 %v17044_v19, %v17049_v28 }
 0x61d   : > { %v12746_v49 = vand.u32 4294901760, %v12577_v48  ;;  %12725 = vmatpush.msrb.mxu1 %v12600_v2  ;;  %v11810_v0 = vpop.f32.mrf.mxu1  ;;  %v11886_v46 = vpop.f32.mrf.mxu0 }
 0x61f   : > { %v12773_v50 = vsub.f32 %v12577_v48, %v12746_v49  ;;  %v11764_v44 = vpop.f32.mrf.mxu3  ;;  %12747 = vmatpush.msrb.mxu2 %v12746_v49  ;;  %12823 = vmatpush.msra.mxu1 %v12746_v49  ;;  %v11836_v9 = vpop.f32.mrf.mxu2 }
 0x620   : > { %v11765_v55 = vadd.f32 %v11764_v44, %v11741_v24  ;;  %12753 = vmatmul.f32.vlgmr.msrb.gmra.mxu2 %v15879_v52  ;;  %v11837_v1 = vadd.f32 %v11836_v9, %v15864_v53  ;;  %v17326_v24 = vld [vmem:[#allocation30_spill] sm:$0xff]  ;;  %v17327_v9 = vld [vmem:[#allocation31_spill] sm:$0xff] }
 0x621   : > { %12800 = vmatpush.msra.mxu0 %v12773_v50  ;;  %v12774_v62 = vand.u32 4294901760, %v12773_v50 }
 0x622   : > { %v11789_v23 = vadd.f32 %v11788_v33, %v11765_v55  ;;  %v17057_v33 = vand.u32 4294901760, %v13214_v25 }
 0x623   : > { %12849 = vmatpush.msra.mxu2 %v12774_v62  ;;  %v12775_v60 = vsub.f32 %v12773_v50, %v12774_v62  ;;  %v13190_v50 = vsel %vm431_vm1, %v17326_v24, 0 }
 0x624   : > { %v11811_v13 = vadd.f32 %v11810_v0, %v11789_v23  ;;  %12727 = vmatmul.f32.vlgmr.msrb.gmra.mxu1 %v15866_v7  ;;  %12803 = vmatmul.f32.vlgmr.msra.gmra.mxu0 %v15870_v39  ;;  %v13501_v0 = vand.u32 4294901760, %v13190_v50 }
 0x625   : > { %v12776_v45 = vand.u32 4294901760, %v12775_v60  ;;  %v11910_v38 = vpop.f32.mrf.mxu1  ;;  %v13192_v60 = vsel %vm431_vm1, %v17327_v9, 0 }
 0x626   : > { %v11961_v51 = vmax.f32 %v11811_v13, 0.0  ;;  %v13528_v62 = vsub.f32 %v13190_v50, %v13501_v0 }
 0x627   : > { %v11862_v16 = vpop.f32.mrf.mxu3  ;;  %12777 = vmatpush.msrb.mxu3 %v12776_v45  ;;  %v11934_v61 = vpop.f32.mrf.mxu2  ;;  %v13647_v45 = vand.u32 4294901760, %v13192_v60 }
 0x628   : > { %v12580_v56 = vsel %vm431_vm1, %v11961_v51, 0  ;;  %v11863_v22 = vadd.f32 %v11862_v16, %v11837_v1  ;;  %12779 = vmatmul.f32.vlgmr.msrb.gmra.mxu3 %v15866_v7  ;;  %12851 = vmatmul.f32.vlgmr.msra.gmra.mxu2 %v15866_v7  ;;  %v13529_v23 = vand.u32 4294901760, %v13528_v62  ;;  %v17073_v16 = vpop.f32.mrf.mxu0 }
 0x629   : > { %v12892_v17 = vand.u32 4294901760, %v12580_v56  ;;  %12871 = vmatpush.msra.mxu3 %v12746_v49  ;;  %v13383_v49 = vand.u32 4294901760, %v13382_v26  ;;  %v13674_v51 = vsub.f32 %v13192_v60, %v13647_v45 }
 0x62a   : > { %v11887_v5 = vadd.f32 %v11886_v46, %v11863_v22  ;;  %v13530_v13 = vsub.f32 %v13528_v62, %v13529_v23  ;;  %v13796_v46 = vld.sshfl [vmem:[#allocation1] sm:$0xff pattern:$0x75316420] }
 0x62b   : > { %v12919_v43 = vsub.f32 %v12580_v56, %v12892_v17  ;;  %12893 = vmatpush.msrb.mxu0 %v12892_v17  ;;  %12969 = vmatpush.msrb.mxu3 %v12892_v17  ;;  %v13384_v44 = vsub.f32 %v13382_v26, %v13383_v49  ;;  %v13675_v56 = vand.u32 4294901760, %v13674_v51  ;;  %v13800_v22 = vsel %vm431_vm1, %v13796_v46, 0 }
 0x62c   : > { %v11911_v40 = vadd.f32 %v11910_v38, %v11887_v5  ;;  %12827 = vmatmul.f32.vlgmr.msra.gmra.mxu1 %v15873_v29  ;;  %12899 = vmatmul.f32.vlgmr.msrb.gmra.mxu0 %v15879_v52  ;;  %v13531_v1 = vand.u32 4294901760, %v13530_v13  ;;  %v13823_v10 = vand.u32 4294901760, %v13800_v22 }
 0x62d   : > { %12946 = vmatpush.msrb.mxu2 %v12919_v43  ;;  %v12920_v58 = vand.u32 4294901760, %v12919_v43  ;;  %v13385_v55 = vand.u32 4294901760, %v13384_v44  ;;  %v13676_v35 = vsub.f32 %v13674_v51, %v13675_v56 }
 0x62e   : > { %v11935_v6 = vadd.f32 %v11934_v61, %v11911_v40  ;;  %v13850_v47 = vsub.f32 %v13800_v22, %v13823_v10 }
 0x62f   : > { %v11956_v12 = vpop.f32.mrf.mxu3  ;;  %12995 = vmatpush.msra.mxu0 %v12920_v58  ;;  %v12921_v41 = vsub.f32 %v12919_v43, %v12920_v58  ;;  %v17082_v38 = vpop.f32.mrf.mxu2  ;;  %v13677_v5 = vand.u32 4294901760, %v13676_v35 }
 0x630   : > { %v11957_v32 = vadd.f32 %v11956_v12, %v11935_v6  ;;  %12873 = vmatmul.f32.vlgmr.msra.gmra.mxu3 %v15866_v7  ;;  %12949 = vmatmul.f32.vlgmr.msrb.gmra.mxu2 %v15870_v39  ;;  %v17084_v43 = vpop.f32.mrf.mxu0  ;;  %v13851_v40 = vand.u32 4294901760, %v13850_v47 }
 0x631   : > { %v12922_v36 = vand.u32 4294901760, %v12921_v41 }
 0x632   : > { %v11962_v2 = vmax.f32 %v11957_v32, 0.0  ;;  %v13852_v57 = vsub.f32 %v13850_v47, %v13851_v40 }
 0x633   : > { %12923 = vmatpush.msrb.mxu1 %v12922_v36 }
 0x634   : > { %v12583_v4 = vsel %vm431_vm1, %v11962_v2, 0  ;;  %12925 = vmatmul.f32.vlgmr.msrb.gmra.mxu1 %v15866_v7  ;;  %12997 = vmatmul.f32.vlgmr.msra.gmra.mxu0 %v15866_v7  ;;  %v13853_v36 = vand.u32 4294901760, %v13852_v57 }
 0x635   : > { %v13038_v20 = vand.u32 4294901760, %v12583_v4  ;;  %13017 = vmatpush.msra.mxu1 %v12892_v17  ;;  %v17080_v17 = vpop.f32.mrf.mxu1 }
 0x637   : > { %v13065_v21 = vsub.f32 %v12583_v4, %v13038_v20  ;;  %13039 = vmatpush.msra.mxu2 %v13038_v20  ;;  %13115 = vmatpush.msrb.mxu1 %v13038_v20  ;;  %v17086_v61 = vpop.f32.mrf.mxu3  ;;  %v17097_v41 = vpop.f32.mrf.mxu2 }
 0x638   : > { %12973 = vmatmul.f32.vlgmr.msrb.gmra.mxu3 %v15873_v29  ;;  %13045 = vmatmul.f32.vlgmr.msra.gmra.mxu2 %v15879_v52 }
 0x639   : > { %13092 = vmatpush.msrb.mxu0 %v13065_v21  ;;  %v13066_v11 = vand.u32 4294901760, %v13065_v21 }
 0x63b   : > { %13210 = vmatpush.msra.mxu0 %v13209_v63  ;;  %13141 = vmatpush.msrb.mxu2 %v13066_v11  ;;  %v13067_v42 = vsub.f32 %v13065_v21, %v13066_v11 }
 0x63c   : > { %13019 = vmatmul.f32.vlgmr.msra.gmra.mxu1 %v15866_v7  ;;  %13095 = vmatmul.f32.vlgmr.msrb.gmra.mxu0 %v15870_v39 }
 0x63d   : > { %13240 = vmatpush.msra.mxu1 %v13239_v30  ;;  %13263 = vmatpush.msra.mxu2 %v13236_v37  ;;  %v13068_v48 = vand.u32 4294901760, %v13067_v42  ;;  %v17093_v12 = vpop.f32.mrf.mxu1  ;;  %v17099_v37 = vpop.f32.mrf.mxu0  ;;  %v13799_v42 = vld.sshfl [vmem:[#allocation1 + $0x18] sm:$0xff pattern:$0x75316420] }
 0x63e   : > { %13312 = vmatpush.msrb.mxu0 %v13237_v14  ;;  %v13798_v14 = vld.sshfl [vmem:[#allocation1 + $0x10] sm:$0xff pattern:$0x75316420] }
 0x63f   : > { %13069 = vmatpush.msra.mxu3 %v13068_v48  ;;  %v17101_v32 = vpop.f32.mrf.mxu3  ;;  %v13804_v54 = vsel %vm431_vm1, %v13798_v14, 0  ;;  %v13806_v48 = vsel %vm431_vm1, %v13799_v42, 0 }
 0x640   : > { %13071 = vmatmul.f32.vlgmr.msra.gmra.mxu3 %v15866_v7  ;;  %13143 = vmatmul.f32.vlgmr.msrb.gmra.mxu2 %v15866_v7  ;;  %v14261_v24 = vand.u32 4294901760, %v13806_v48 }
 0x641   : > { %13163 = vmatpush.msrb.mxu3 %v13038_v20  ;;  %13356 = vmatpush.msrb.mxu2 %v13355_v15  ;;  %v17110_v20 = vpop.f32.mrf.mxu2 }
 0x642   : > { %v14288_v44 = vsub.f32 %v13806_v48, %v14261_v24 }
 0x643   : > { %13286 = vmatpush.msra.mxu3 %v13209_v63 }
 0x644   : > { %13119 = vmatmul.f32.vlgmr.msrb.gmra.mxu1 %v15873_v29  ;;  %13216 = vmatmul.f32.vlgmr.msra.gmra.mxu0 %v17057_v33  ;;  %v14289_v60 = vand.u32 4294901760, %v14288_v44 }
 0x645   : > { %13334 = vmatpush.msrb.mxu1 %v13209_v63  ;;  %13409 = vmatpush.msra.mxu0 %v13382_v26  ;;  %v13797_v63 = vld.sshfl [vmem:[#allocation1 + $0x8] sm:$0xff pattern:$0x75316420]  ;;  %v17108_v59 = vpop.f32.mrf.mxu1  ;;  %v17112_v8 = vpop.f32.mrf.mxu0 }
 0x646   : > { %v13802_v58 = vsel %vm431_vm1, %v13797_v63, 0 }
 0x647   : > { %v13969_v6 = vand.u32 4294901760, %v13802_v58 }
 0x648   : > { %13165 = vmatmul.f32.vlgmr.msrb.gmra.mxu3 %v15866_v7  ;;  %13266 = vmatmul.f32.vlgmr.msra.gmra.mxu2 %v17044_v19 }
 0x649   : > { %13386 = vmatpush.msrb.mxu3 %v13385_v55  ;;  %13458 = vmatpush.msra.mxu2 %v13383_v49  ;;  %v13996_v2 = vsub.f32 %v13802_v58, %v13969_v6  ;;  %v12039_v55 = vadd.f32 %v17080_v17, %v17073_v16  ;;  %v12185_v17 = vadd.f32 %v17101_v32, %v17097_v41 }
 0x64b   : > { %v13997_v4 = vand.u32 4294901760, %v13996_v2  ;;  %v12063_v13 = vadd.f32 %v17082_v38, %v12039_v55 }
 0x64c   : > { %13242 = vmatmul.f32.vlgmr.msra.gmra.mxu1 %v17036_v3  ;;  %13314 = vmatmul.f32.vlgmr.msrb.gmra.mxu0 %v17036_v3 }
 0x64d   : > { %13432 = vmatpush.msra.mxu1 %v13355_v15  ;;  %13502 = vmatpush.msrb.mxu0 %v13501_v0  ;;  %v13998_v21 = vsub.f32 %v13996_v2, %v13997_v4  ;;  %v17120_v26 = vpop.f32.mrf.mxu1  ;;  %v17127_v49 = vpop.f32.mrf.mxu0 }
 0x64e   : > { %v12331_v32 = vadd.f32 %v17120_v26, %v17112_v8 }
 0x64f   : > { %v13999_v11 = vand.u32 4294901760, %v13998_v21 }
 0x650   : > { %13290 = vmatmul.f32.vlgmr.msra.gmra.mxu3 %v17049_v28  ;;  %13362 = vmatmul.f32.vlgmr.msrb.gmra.mxu2 %v17057_v33 }
 0x651   : > { %13480 = vmatpush.msra.mxu3 %v13355_v15  ;;  %13555 = vmatpush.msrb.mxu2 %v13528_v62  ;;  %v17114_v15 = vpop.f32.mrf.mxu3 }
 0x654   : > { %13336 = vmatmul.f32.vlgmr.msrb.gmra.mxu1 %v17036_v3  ;;  %13412 = vmatmul.f32.vlgmr.msra.gmra.mxu0 %v17044_v19 }
 0x655   : > { %13532 = vmatpush.msrb.mxu1 %v13531_v1  ;;  %13604 = vmatpush.msra.mxu0 %v13529_v23  ;;  %v17141_v23 = vpop.f32.mrf.mxu0  ;;  %v12087_v1 = vadd.f32 %v17086_v61, %v12063_v13 }
 0x657   : > { %v12111_v35 = vadd.f32 %v17084_v43, %v12087_v1 }
 0x658   : > { %13388 = vmatmul.f32.vlgmr.msrb.gmra.mxu3 %v17036_v3  ;;  %13460 = vmatmul.f32.vlgmr.msra.gmra.mxu2 %v17036_v3 }
 0x659   : > { %13578 = vmatpush.msrb.mxu3 %v13501_v0  ;;  %13648 = vmatpush.msra.mxu2 %v13647_v45 }
 0x65c   : > { %13436 = vmatmul.f32.vlgmr.msra.gmra.mxu1 %v17049_v28  ;;  %13508 = vmatmul.f32.vlgmr.msrb.gmra.mxu0 %v17057_v33 }
 0x65d   : > { %13626 = vmatpush.msra.mxu1 %v13501_v0  ;;  %13701 = vmatpush.msrb.mxu0 %v13674_v51  ;;  %v17135_v0 = vpop.f32.mrf.mxu1 }
 0x660   : > { %13482 = vmatmul.f32.vlgmr.msra.gmra.mxu3 %v17036_v3  ;;  %13558 = vmatmul.f32.vlgmr.msrb.gmra.mxu2 %v17044_v19 }
 0x661   : > { %13678 = vmatpush.msra.mxu3 %v13677_v5  ;;  %13750 = vmatpush.msrb.mxu2 %v13675_v56 }
 0x664   : > { %13534 = vmatmul.f32.vlgmr.msrb.gmra.mxu1 %v17036_v3  ;;  %13606 = vmatmul.f32.vlgmr.msra.gmra.mxu0 %v17036_v3 }
 0x665   : > { %13724 = vmatpush.msrb.mxu1 %v13647_v45  ;;  %13824 = vmatpush.msra.mxu0 %v13823_v10  ;;  %v17151_v16 = vpop.f32.mrf.mxu1 }
 0x668   : > { %13582 = vmatmul.f32.vlgmr.msrb.gmra.mxu3 %v17049_v28  ;;  %13654 = vmatmul.f32.vlgmr.msra.gmra.mxu2 %v17057_v33 }
 0x669   : > { %13772 = vmatpush.msrb.mxu3 %v13647_v45  ;;  %13877 = vmatpush.msra.mxu2 %v13850_v47  ;;  %v14290_v45 = vsub.f32 %v14288_v44, %v14289_v60 }
 0x66b   : > { %v14291_v51 = vand.u32 4294901760, %v14290_v45 }
 0x66c   : > { %13628 = vmatmul.f32.vlgmr.msra.gmra.mxu1 %v17036_v3  ;;  %13704 = vmatmul.f32.vlgmr.msrb.gmra.mxu0 %v17044_v19  ;;  %v14115_v19 = vand.u32 4294901760, %v13804_v54 }
 0x66d   : > { %13854 = vmatpush.msra.mxu1 %v13853_v36  ;;  %13926 = vmatpush.msrb.mxu0 %v13851_v40  ;;  %v12209_v40 = vadd.f32 %v17099_v37, %v12185_v17 }
 0x66e   : > { %v14142_v30 = vsub.f32 %v13804_v54, %v14115_v19 }
 0x670   : > { %13680 = vmatmul.f32.vlgmr.msra.gmra.mxu3 %v17036_v3  ;;  %13752 = vmatmul.f32.vlgmr.msrb.gmra.mxu2 %v17036_v3  ;;  %v14143_v25 = vand.u32 4294901760, %v14142_v30 }
 0x671   : > { %13900 = vmatpush.msra.mxu3 %v13823_v10  ;;  %13970 = vmatpush.msrb.mxu2 %v13969_v6 }
 0x672   : > { %v14144_v33 = vsub.f32 %v14142_v30, %v14143_v25 }
 0x674   : > { %13728 = vmatmul.f32.vlgmr.msrb.gmra.mxu1 %v17049_v28  ;;  %13830 = vmatmul.f32.vlgmr.msra.gmra.mxu0 %v15734_v31  ;;  %v17124_v28 = vpop.f32.mrf.mxu2  ;;  %v14145_v50 = vand.u32 4294901760, %v14144_v33 }
 0x675   : > { %13948 = vmatpush.msrb.mxu1 %v13823_v10  ;;  %14023 = vmatpush.msra.mxu0 %v13996_v2  ;;  %v12133_v10 = vadd.f32 %v17093_v12, %v12111_v35 }
 0x678   : > { %13774 = vmatmul.f32.vlgmr.msrb.gmra.mxu3 %v17036_v3  ;;  %13880 = vmatmul.f32.vlgmr.msra.gmra.mxu2 %v15696_v27  ;;  %v17129_v3 = vpop.f32.mrf.mxu3 }
 0x679   : > { %14000 = vmatpush.msrb.mxu3 %v13999_v11  ;;  %14072 = vmatpush.msra.mxu2 %v13997_v4 }
 0x67c   : > { %13856 = vmatmul.f32.vlgmr.msra.gmra.mxu1 %v15679_v18  ;;  %13928 = vmatmul.f32.vlgmr.msrb.gmra.mxu0 %v15679_v18  ;;  %v17139_v62 = vpop.f32.mrf.mxu2 }
 0x67d   : > { %14046 = vmatpush.msra.mxu1 %v13969_v6  ;;  %14116 = vmatpush.msrb.mxu0 %v14115_v19 }
 0x680   : > { %13904 = vmatmul.f32.vlgmr.msra.gmra.mxu3 %v15709_v34  ;;  %13976 = vmatmul.f32.vlgmr.msrb.gmra.mxu2 %v15734_v31  ;;  %v17143_v9 = vpop.f32.mrf.mxu3 }
 0x681   : > { %14094 = vmatpush.msra.mxu3 %v13969_v6  ;;  %14169 = vmatpush.msrb.mxu2 %v14142_v30  ;;  %v12233_v6 = vadd.f32 %v17108_v59, %v12209_v40 }
 0x683   : > { %v12257_v2 = vadd.f32 %v17110_v20, %v12233_v6 }
 0x684   : > { %13950 = vmatmul.f32.vlgmr.msrb.gmra.mxu1 %v15679_v18  ;;  %14026 = vmatmul.f32.vlgmr.msra.gmra.mxu0 %v15696_v27  ;;  %v17155_v46 = vpop.f32.mrf.mxu2 }
 0x685   : > { %14146 = vmatpush.msrb.mxu1 %v14145_v50  ;;  %14218 = vmatpush.msra.mxu0 %v14143_v25  ;;  %v12279_v14 = vadd.f32 %v17114_v15, %v12257_v2 }
 0x688   : > { %14002 = vmatmul.f32.vlgmr.msrb.gmra.mxu3 %v15679_v18  ;;  %14074 = vmatmul.f32.vlgmr.msra.gmra.mxu2 %v15679_v18  ;;  %v17157_v22 = vpop.f32.mrf.mxu3 }
 0x689   : > { %14192 = vmatpush.msrb.mxu3 %v14115_v19  ;;  %14262 = vmatpush.msra.mxu2 %v14261_v24 }
 0x68c   : > { %14050 = vmatmul.f32.vlgmr.msra.gmra.mxu1 %v15709_v34  ;;  %14122 = vmatmul.f32.vlgmr.msrb.gmra.mxu0 %v15734_v31 }
 0x68d   : > { %14240 = vmatpush.msra.mxu1 %v14115_v19  ;;  %14315 = vmatpush.msrb.mxu0 %v14288_v44 }
 0x690   : > { %14096 = vmatmul.f32.vlgmr.msra.gmra.mxu3 %v15679_v18  ;;  %14172 = vmatmul.f32.vlgmr.msrb.gmra.mxu2 %v15696_v27 }
 0x691   : > { %14292 = vmatpush.msra.mxu3 %v14291_v51  ;;  %14364 = vmatpush.msrb.mxu2 %v14289_v60  ;;  %v12608_v56 = vpop.f32.mrf.mxu0 }
 0x692   : > { %v12609_v38 = vadd.f32 %v12608_v56, %v12133_v10 }
 0x694   : > { %14148 = vmatmul.f32.vlgmr.msrb.gmra.mxu1 %v15679_v18  ;;  %14220 = vmatmul.f32.vlgmr.msra.gmra.mxu0 %v15679_v18 }
 0x695   : > { %14338 = vmatpush.msrb.mxu1 %v14261_v24 }
 0x697   : > { %v12682_v63 = vpop.f32.mrf.mxu3 }
 0x698   : > { %14196 = vmatmul.f32.vlgmr.msrb.gmra.mxu3 %v15709_v34  ;;  %14268 = vmatmul.f32.vlgmr.msra.gmra.mxu2 %v15734_v31 }
 0x699   : > { %14386 = vmatpush.msrb.mxu3 %v14261_v24  ;;  %v12634_v5 = vpop.f32.mrf.mxu1  ;;  %v12706_v47 = vpop.f32.mrf.mxu0 }
 0x69a   : > { %v12635_v61 = vadd.f32 %v12634_v5, %v12609_v38  ;;  %v12658_v43 = vpop.f32.mrf.mxu2 }
 0x69c   : > { %v12659_v58 = vadd.f32 %v12658_v43, %v12635_v61  ;;  %14242 = vmatmul.f32.vlgmr.msra.gmra.mxu1 %v15679_v18  ;;  %14318 = vmatmul.f32.vlgmr.msrb.gmra.mxu0 %v15696_v27  ;;  %v12355_v27 = vadd.f32 %v17124_v28, %v12331_v32 }
 0x69e   : > { %v12683_v57 = vadd.f32 %v12682_v63, %v12659_v58  ;;  %v12379_v59 = vadd.f32 %v17129_v3, %v12355_v27 }
 0x6a0   : > { %v12707_v12 = vadd.f32 %v12706_v47, %v12683_v57  ;;  %14294 = vmatmul.f32.vlgmr.msra.gmra.mxu3 %v15679_v18  ;;  %14366 = vmatmul.f32.vlgmr.msrb.gmra.mxu2 %v15679_v18  ;;  %v12403_v20 = vadd.f32 %v17127_v49, %v12379_v59 }
 0x6a1   : > { %v12728_v31 = vpop.f32.mrf.mxu1  ;;  %v12804_v41 = vpop.f32.mrf.mxu0 }
 0x6a2   : > { %v12729_v36 = vadd.f32 %v12728_v31, %v12707_v12 }
 0x6a3   : > { %v12754_v37 = vpop.f32.mrf.mxu2 }
 0x6a4   : > { %15166 = vst [vmem:[%s16050_s26 + $0xc0] sm:$0xff] %v12729_v36  ;;  %14342 = vmatmul.f32.vlgmr.msrb.gmra.mxu1 %v15709_v34  ;;  %v12755_v21 = vadd.f32 %v12754_v37, %v12279_v14  ;;  %v12477_v34 = vadd.f32 %v17143_v9, %v17139_v62 }
 0x6a6   : > { %v12501_v3 = vadd.f32 %v17141_v23, %v12477_v34 }
 0x6a8   : > { %14388 = vmatmul.f32.vlgmr.msrb.gmra.mxu3 %v15679_v18  ;;  %v12425_v18 = vadd.f32 %v17135_v0, %v12403_v20  ;;  %v12525_v49 = vadd.f32 %v17151_v16, %v12501_v3 }
 0x6a9   : > { %v12828_v4 = vpop.f32.mrf.mxu1  ;;  %v12900_v54 = vpop.f32.mrf.mxu0 }
 0x6aa   : > { %v12901_v33 = vadd.f32 %v12900_v54, %v12425_v18  ;;  %v12549_v13 = vadd.f32 %v17155_v46, %v12525_v49 }
 0x6ab   : > { %v12780_v19 = vpop.f32.mrf.mxu3  ;;  %v12852_v8 = vpop.f32.mrf.mxu2 }
 0x6ac   : > { %v12781_v11 = vadd.f32 %v12780_v19, %v12755_v21  ;;  %v12571_v1 = vadd.f32 %v17157_v22, %v12549_v13 }
 0x6ae   : > { %v12805_v30 = vadd.f32 %v12804_v41, %v12781_v11 }
 0x6b0   : > { %v12829_v42 = vadd.f32 %v12828_v4, %v12805_v30 }
 0x6b1   : > { %v12926_v26 = vpop.f32.mrf.mxu1  ;;  %v12998_v15 = vpop.f32.mrf.mxu0 }
 0x6b2   : > { %v12853_v25 = vadd.f32 %v12852_v8, %v12829_v42  ;;  %v12927_v50 = vadd.f32 %v12926_v26, %v12901_v33 }
 0x6b3   : > { %v12874_v28 = vpop.f32.mrf.mxu3  ;;  %v12950_v48 = vpop.f32.mrf.mxu2 }
 0x6b4   : > { %v12875_v24 = vadd.f32 %v12874_v28, %v12853_v25  ;;  %v12951_v62 = vadd.f32 %v12950_v48, %v12927_v50 }
 0x6b6   : > { %15167 = vst [vmem:[%s16050_s26 + $0xc8] sm:$0xff] %v12875_v24 }
 0x6b9   : > { %v13020_v44 = vpop.f32.mrf.mxu1  ;;  %v13096_v55 = vpop.f32.mrf.mxu0 }
 0x6bb   : > { %v12974_v9 = vpop.f32.mrf.mxu3  ;;  %v13046_v60 = vpop.f32.mrf.mxu2 }
 0x6bc   : > { %v12975_v0 = vadd.f32 %v12974_v9, %v12951_v62  ;;  %v13047_v56 = vadd.f32 %v13046_v60, %v12571_v1 }
 0x6be   : > { %v12999_v45 = vadd.f32 %v12998_v15, %v12975_v0 }
 0x6c0   : > { %v13021_v51 = vadd.f32 %v13020_v44, %v12999_v45 }
 0x6c1   : > { %v13120_v23 = vpop.f32.mrf.mxu1  ;;  %v13217_v35 = vpop.f32.mrf.mxu0 }
 0x6c2   : > { %15168 = vst [vmem:[%s16050_s26 + $0xd0] sm:$0xff] %v13021_v51  ;;  %v13218_v46 = vadd.f32 %v13217_v35, %v15864_v53 }
 0x6c3   : > { %v13072_v10 = vpop.f32.mrf.mxu3  ;;  %v13144_v17 = vpop.f32.mrf.mxu2 }
 0x6c4   : > { %v13073_v16 = vadd.f32 %v13072_v10, %v13047_v56 }
 0x6c6   : > { %v13097_v38 = vadd.f32 %v13096_v55, %v13073_v16 }
 0x6c8   : > { %v13121_v5 = vadd.f32 %v13120_v23, %v13097_v38 }
 0x6c9   : > { %v13243_v47 = vpop.f32.mrf.mxu1  ;;  %v13315_v58 = vpop.f32.mrf.mxu0 }
 0x6ca   : > { %v13145_v61 = vadd.f32 %v13144_v17, %v13121_v5  ;;  %v13244_v22 = vadd.f32 %v13243_v47, %v13218_v46 }
 0x6cb   : > { %v13166_v43 = vpop.f32.mrf.mxu3  ;;  %v13267_v63 = vpop.f32.mrf.mxu2 }
 0x6cc   : > { %v13167_v40 = vadd.f32 %v13166_v43, %v13145_v61  ;;  %v13268_v6 = vadd.f32 %v13267_v63, %v13244_v22 }
 0x6ce   : > { %15169 = vst [vmem:[%s16050_s26 + $0xd8] sm:$0xff] %v13167_v40 }
 0x6d1   : > { %v13337_v57 = vpop.f32.mrf.mxu1  ;;  %v13413_v36 = vpop.f32.mrf.mxu0 }
 0x6d3   : > { %v13291_v12 = vpop.f32.mrf.mxu3  ;;  %v13363_v31 = vpop.f32.mrf.mxu2 }
 0x6d4   : > { %v13292_v41 = vadd.f32 %v13291_v12, %v13268_v6  ;;  %v13364_v14 = vadd.f32 %v13363_v31, %v15864_v53 }
 0x6d6   : > { %v13316_v32 = vadd.f32 %v13315_v58, %v13292_v41 }
 0x6d8   : > { %v13338_v37 = vadd.f32 %v13337_v57, %v13316_v32 }
 0x6d9   : > { %v13437_v2 = vpop.f32.mrf.mxu1  ;;  %v13509_v30 = vpop.f32.mrf.mxu0 }
 0x6da   : > { %v13778_v27 = vmax.f32 %v13338_v37, 0.0  ;;  %v13510_v25 = vadd.f32 %v13509_v30, %v15864_v53 }
 0x6db   : > { %v13389_v4 = vpop.f32.mrf.mxu3  ;;  %v13461_v54 = vpop.f32.mrf.mxu2 }
 0x6dc   : > { %v14393_v59 = vsel %vm431_vm1, %v13778_v27, 0  ;;  %v13390_v21 = vadd.f32 %v13389_v4, %v13364_v14 }
 0x6dd   : > { %v14419_v19 = vand.u32 4294901760, %v14393_v59 }
 0x6de   : > { %v13414_v8 = vadd.f32 %v13413_v36, %v13390_v21 }
 0x6df   : > { %14420 = vmatpush.msra.mxu0 %v14419_v19  ;;  %14496 = vmatpush.msra.mxu3 %v14419_v19  ;;  %v14446_v11 = vsub.f32 %v14393_v59, %v14419_v19 }
 0x6e0   : > { %v13438_v20 = vadd.f32 %v13437_v2, %v13414_v8  ;;  %14426 = vmatmul.f32.vlgmr.msra.gmra.mxu0 %v15879_v52  ;;  %14500 = vmatmul.f32.vlgmr.msra.gmra.mxu3 %v15873_v29 }
 0x6e1   : > { %14473 = vmatpush.msra.mxu2 %v14446_v11  ;;  %v14447_v34 = vand.u32 4294901760, %v14446_v11  ;;  %v13535_v26 = vpop.f32.mrf.mxu1  ;;  %v13607_v44 = vpop.f32.mrf.mxu0 }
 0x6e2   : > { %v13462_v42 = vadd.f32 %v13461_v54, %v13438_v20  ;;  %14476 = vmatmul.f32.vlgmr.msra.gmra.mxu2 %v15870_v39  ;;  %v13536_v33 = vadd.f32 %v13535_v26, %v13510_v25 }
 0x6e3   : > { %v13483_v15 = vpop.f32.mrf.mxu3  ;;  %14522 = vmatpush.msrb.mxu0 %v14447_v34  ;;  %v14448_v18 = vsub.f32 %v14446_v11, %v14447_v34  ;;  %v13559_v48 = vpop.f32.mrf.mxu2 }
 0x6e4   : > { %v13484_v28 = vadd.f32 %v13483_v15, %v13462_v42  ;;  %v13560_v55 = vadd.f32 %v13559_v48, %v13536_v33 }
 0x6e5   : > { %v14449_v3 = vand.u32 4294901760, %v14448_v18 }
 0x6e6   : > { %v13779_v24 = vmax.f32 %v13484_v28, 0.0 }
 0x6e7   : > { %14450 = vmatpush.msra.mxu1 %v14449_v3 }
 0x6e8   : > { %v14396_v50 = vsel %vm431_vm1, %v13779_v24, 0  ;;  %14452 = vmatmul.f32.vlgmr.msra.gmra.mxu1 %v15866_v7  ;;  %14524 = vmatmul.f32.vlgmr.msrb.gmra.mxu0 %v15866_v7 }
 0x6e9   : > { %v14565_v49 = vand.u32 4294901760, %v14396_v50  ;;  %14544 = vmatpush.msrb.mxu1 %v14419_v19  ;;  %v13629_v60 = vpop.f32.mrf.mxu1  ;;  %v13705_v16 = vpop.f32.mrf.mxu0 }
 0x6eb   : > { %v14592_v62 = vsub.f32 %v14396_v50, %v14565_v49  ;;  %v13583_v9 = vpop.f32.mrf.mxu3  ;;  %14566 = vmatpush.msrb.mxu2 %v14565_v49  ;;  %14642 = vmatpush.msra.mxu1 %v14565_v49  ;;  %v13655_v1 = vpop.f32.mrf.mxu2 }
 0x6ec   : > { %v13584_v13 = vadd.f32 %v13583_v9, %v13560_v55  ;;  %14572 = vmatmul.f32.vlgmr.msrb.gmra.mxu2 %v15879_v52  ;;  %v13656_v35 = vadd.f32 %v13655_v1, %v15864_v53 }
 0x6ed   : > { %14619 = vmatpush.msra.mxu0 %v14592_v62  ;;  %v14593_v0 = vand.u32 4294901760, %v14592_v62 }
 0x6ee   : > { %v13608_v45 = vadd.f32 %v13607_v44, %v13584_v13 }
 0x6ef   : > { %14668 = vmatpush.msra.mxu2 %v14593_v0  ;;  %v14594_v51 = vsub.f32 %v14592_v62, %v14593_v0 }
 0x6f0   : > { %v13630_v23 = vadd.f32 %v13629_v60, %v13608_v45  ;;  %14546 = vmatmul.f32.vlgmr.msrb.gmra.mxu1 %v15866_v7  ;;  %14622 = vmatmul.f32.vlgmr.msra.gmra.mxu0 %v15870_v39 }
 0x6f1   : > { %v14595_v56 = vand.u32 4294901760, %v14594_v51  ;;  %v13729_v61 = vpop.f32.mrf.mxu1 }
 0x6f2   : > { %v13780_v10 = vmax.f32 %v13630_v23, 0.0 }
 0x6f3   : > { %v13681_v17 = vpop.f32.mrf.mxu3  ;;  %14596 = vmatpush.msrb.mxu3 %v14595_v56  ;;  %v13753_v46 = vpop.f32.mrf.mxu2 }
 0x6f4   : > { %v14399_v38 = vsel %vm431_vm1, %v13780_v10, 0  ;;  %v13682_v5 = vadd.f32 %v13681_v17, %v13656_v35  ;;  %14598 = vmatmul.f32.vlgmr.msrb.gmra.mxu3 %v15866_v7  ;;  %14670 = vmatmul.f32.vlgmr.msra.gmra.mxu2 %v15866_v7 }
 0x6f5   : > { %v14711_v47 = vand.u32 4294901760, %v14399_v38  ;;  %14690 = vmatpush.msra.mxu3 %v14565_v49 }
 0x6f6   : > { %v13706_v43 = vadd.f32 %v13705_v16, %v13682_v5 }
 0x6f7   : > { %v14738_v63 = vsub.f32 %v14399_v38, %v14711_v47  ;;  %14712 = vmatpush.msrb.mxu0 %v14711_v47  ;;  %14788 = vmatpush.msrb.mxu3 %v14711_v47 }
 0x6f8   : > { %v13730_v53 = vadd.f32 %v13729_v61, %v13706_v43  ;;  %14646 = vmatmul.f32.vlgmr.msra.gmra.mxu1 %v15873_v29  ;;  %14718 = vmatmul.f32.vlgmr.msrb.gmra.mxu0 %v15879_v52 }
 0x6f9   : > { %14765 = vmatpush.msrb.mxu2 %v14738_v63  ;;  %v14739_v40 = vand.u32 4294901760, %v14738_v63  ;;  %v13857_v14 = vpop.f32.mrf.mxu1 }
 0x6fa   : > { %v13754_v58 = vadd.f32 %v13753_v46, %v13730_v53 }
 0x6fb   : > { %v13775_v22 = vpop.f32.mrf.mxu3  ;;  %14814 = vmatpush.msra.mxu0 %v14739_v40  ;;  %v14740_v57 = vsub.f32 %v14738_v63, %v14739_v40  ;;  %v13881_v4 = vpop.f32.mrf.mxu2 }
 0x6fc   : > { %v13776_v6 = vadd.f32 %v13775_v22, %v13754_v58  ;;  %14692 = vmatmul.f32.vlgmr.msra.gmra.mxu3 %v15866_v7  ;;  %14768 = vmatmul.f32.vlgmr.msrb.gmra.mxu2 %v15870_v39 }
 0x6fd   : > { %v14741_v12 = vand.u32 4294901760, %v14740_v57 }
 0x6fe   : > { %v13781_v31 = vmax.f32 %v13776_v6, 0.0 }
 0x6ff   : > { %14742 = vmatpush.msrb.mxu1 %v14741_v12 }
 0x700   : > { %v14402_v41 = vsel %vm431_vm1, %v13781_v31, 0  ;;  %14744 = vmatmul.f32.vlgmr.msrb.gmra.mxu1 %v15866_v7  ;;  %14816 = vmatmul.f32.vlgmr.msra.gmra.mxu0 %v15866_v7 }
 0x701   : > { %v14857_v32 = vand.u32 4294901760, %v14402_v41  ;;  %14836 = vmatpush.msra.mxu1 %v14711_v47  ;;  %v13951_v21 = vpop.f32.mrf.mxu1 }
 0x703   : > { %v14884_v36 = vsub.f32 %v14402_v41, %v14857_v32  ;;  %14858 = vmatpush.msra.mxu2 %v14857_v32  ;;  %14934 = vmatpush.msrb.mxu1 %v14857_v32  ;;  %v13905_v54 = vpop.f32.mrf.mxu3  ;;  %v13977_v19 = vpop.f32.mrf.mxu2 }
 0x704   : > { %14792 = vmatmul.f32.vlgmr.msrb.gmra.mxu3 %v15873_v29  ;;  %14864 = vmatmul.f32.vlgmr.msra.gmra.mxu2 %v15879_v52  ;;  %v13831_v52 = vpop.f32.mrf.mxu0 }
 0x705   : > { %14911 = vmatpush.msrb.mxu0 %v14884_v36  ;;  %v14885_v37 = vand.u32 4294901760, %v14884_v36  ;;  %v13858_v25 = vadd.f32 %v13857_v14, %v13831_v52 }
 0x707   : > { %14960 = vmatpush.msrb.mxu2 %v14885_v37  ;;  %v14886_v2 = vsub.f32 %v14884_v36, %v14885_v37  ;;  %v13882_v3 = vadd.f32 %v13881_v4, %v13858_v25 }
 0x708   : > { %14838 = vmatmul.f32.vlgmr.msra.gmra.mxu1 %v15866_v7  ;;  %14914 = vmatmul.f32.vlgmr.msrb.gmra.mxu0 %v15870_v39 }
 0x709   : > { %v14887_v27 = vand.u32 4294901760, %v14886_v2  ;;  %v14051_v11 = vpop.f32.mrf.mxu1  ;;  %v13906_v33 = vadd.f32 %v13905_v54, %v13882_v3 }
 0x70b   : > { %14888 = vmatpush.msra.mxu3 %v14887_v27  ;;  %v14003_v8 = vpop.f32.mrf.mxu3  ;;  %v14075_v20 = vpop.f32.mrf.mxu2 }
 0x70c   : > { %14890 = vmatmul.f32.vlgmr.msra.gmra.mxu3 %v15866_v7  ;;  %14962 = vmatmul.f32.vlgmr.msrb.gmra.mxu2 %v15866_v7  ;;  %v13929_v59 = vpop.f32.mrf.mxu0  ;;  %v14004_v9 = vadd.f32 %v14003_v8, %v13977_v19 }
 0x70d   : > { %14982 = vmatpush.msrb.mxu3 %v14857_v32  ;;  %v13930_v44 = vadd.f32 %v13929_v59, %v13906_v33 }
 0x70f   : > { %v13952_v62 = vadd.f32 %v13951_v21, %v13930_v44 }
 0x710   : > { %14938 = vmatmul.f32.vlgmr.msrb.gmra.mxu1 %v15873_v29 }
 0x711   : > { %v14149_v42 = vpop.f32.mrf.mxu1 }
 0x713   : > { %v14097_v30 = vpop.f32.mrf.mxu3  ;;  %v14173_v26 = vpop.f32.mrf.mxu2 }
 0x714   : > { %14984 = vmatmul.f32.vlgmr.msrb.gmra.mxu3 %v15866_v7  ;;  %v14027_v39 = vpop.f32.mrf.mxu0 }
 0x715   : > { %v14028_v51 = vadd.f32 %v14027_v39, %v14004_v9 }
 0x717   : > { %v14052_v10 = vadd.f32 %v14051_v11, %v14028_v51 }
 0x719   : > { %v14243_v29 = vpop.f32.mrf.mxu1  ;;  %v14076_v61 = vadd.f32 %v14075_v20, %v14052_v10 }
 0x71b   : > { %v14197_v15 = vpop.f32.mrf.mxu3  ;;  %v14269_v7 = vpop.f32.mrf.mxu2  ;;  %v14098_v46 = vadd.f32 %v14097_v30, %v14076_v61 }
 0x71c   : > { %v14123_v34 = vpop.f32.mrf.mxu0 }
 0x71d   : > { %v14150_v38 = vadd.f32 %v14149_v42, %v14123_v34 }
 0x71f   : > { %v14174_v43 = vadd.f32 %v14173_v26, %v14150_v38 }
 0x721   : > { %v14343_v24 = vpop.f32.mrf.mxu1  ;;  %v14198_v40 = vadd.f32 %v14197_v15, %v14174_v43 }
 0x723   : > { %v14295_v28 = vpop.f32.mrf.mxu3  ;;  %v14367_v50 = vpop.f32.mrf.mxu2 }
 0x724   : > { %v14221_v18 = vpop.f32.mrf.mxu0  ;;  %v14296_v41 = vadd.f32 %v14295_v28, %v14269_v7 }
 0x725   : > { %v14222_v12 = vadd.f32 %v14221_v18, %v14198_v40 }
 0x727   : > { %v14244_v37 = vadd.f32 %v14243_v29, %v14222_v12 }
 0x72b   : > { %v14389_v49 = vpop.f32.mrf.mxu3 }
 0x72c   : > { %v14319_v48 = vpop.f32.mrf.mxu0 }
 0x72d   : > { %v14320_v14 = vadd.f32 %v14319_v48, %v14296_v41 }
 0x72f   : > { %v14344_v19 = vadd.f32 %v14343_v24, %v14320_v14 }
 0x731   : > { %v14368_v30 = vadd.f32 %v14367_v50, %v14344_v19 }
 0x733   : > { %v14390_v15 = vadd.f32 %v14389_v49, %v14368_v30 }
 0x75d   : > { %v14427_v55 = vpop.f32.mrf.mxu0 }
 0x75e   : > { %v14428_v60 = vadd.f32 %v14427_v55, %v13952_v62 }
 0x763   : > { %v14501_v1 = vpop.f32.mrf.mxu3 }
 0x765   : > { %v14453_v13 = vpop.f32.mrf.mxu1  ;;  %v14477_v45 = vpop.f32.mrf.mxu2 }
 0x766   : > { %v14454_v0 = vadd.f32 %v14453_v13, %v14428_v60  ;;  %v14525_v56 = vpop.f32.mrf.mxu0 }
 0x768   : > { %v14478_v23 = vadd.f32 %v14477_v45, %v14454_v0 }
 0x76a   : > { %v14502_v35 = vadd.f32 %v14501_v1, %v14478_v23 }
 0x76c   : > { %v14526_v17 = vadd.f32 %v14525_v56, %v14502_v35 }
 0x76d   : > { %v14547_v16 = vpop.f32.mrf.mxu1 }
 0x76e   : > { %v14548_v5 = vadd.f32 %v14547_v16, %v14526_v17  ;;  %v14623_v63 = vpop.f32.mrf.mxu0 }
 0x76f   : > { %v14573_v47 = vpop.f32.mrf.mxu2 }
 0x770   : > { %15173 = vst [vmem:[%s16050_s26 + $0xe0] sm:$0xff] %v14548_v5  ;;  %v14574_v58 = vadd.f32 %v14573_v47, %v14098_v46 }
 0x775   : > { %v14647_v53 = vpop.f32.mrf.mxu1 }
 0x776   : > { %v14719_v36 = vpop.f32.mrf.mxu0 }
 0x777   : > { %v14599_v22 = vpop.f32.mrf.mxu3  ;;  %v14671_v57 = vpop.f32.mrf.mxu2  ;;  %v14720_v4 = vadd.f32 %v14719_v36, %v14244_v37 }
 0x778   : > { %v14600_v6 = vadd.f32 %v14599_v22, %v14574_v58 }
 0x77a   : > { %v14624_v31 = vadd.f32 %v14623_v63, %v14600_v6 }
 0x77c   : > { %v14648_v32 = vadd.f32 %v14647_v53, %v14624_v31 }
 0x77d   : > { %v14745_v27 = vpop.f32.mrf.mxu1 }
 0x77e   : > { %v14672_v2 = vadd.f32 %v14671_v57, %v14648_v32  ;;  %v14746_v21 = vadd.f32 %v14745_v27, %v14720_v4  ;;  %v14817_v8 = vpop.f32.mrf.mxu0 }
 0x77f   : > { %v14693_v52 = vpop.f32.mrf.mxu3  ;;  %v14769_v59 = vpop.f32.mrf.mxu2 }
 0x780   : > { %v14694_v54 = vadd.f32 %v14693_v52, %v14672_v2  ;;  %v14770_v39 = vadd.f32 %v14769_v59, %v14746_v21 }
 0x782   : > { %15174 = vst [vmem:[%s16050_s26 + $0xe8] sm:$0xff] %v14694_v54 }
 0x785   : > { %v14839_v20 = vpop.f32.mrf.mxu1 }
 0x786   : > { %v14915_v7 = vpop.f32.mrf.mxu0 }
 0x787   : > { %v14793_v11 = vpop.f32.mrf.mxu3  ;;  %v14865_v26 = vpop.f32.mrf.mxu2 }
 0x788   : > { %v14794_v34 = vadd.f32 %v14793_v11, %v14770_v39  ;;  %v14866_v29 = vadd.f32 %v14865_v26, %v14390_v15 }
 0x78a   : > { %v14818_v42 = vadd.f32 %v14817_v8, %v14794_v34 }
 0x78c   : > { %v14840_v18 = vadd.f32 %v14839_v20, %v14818_v42 }
 0x78d   : > { %v14939_v48 = vpop.f32.mrf.mxu1 }
 0x78e   : > { %15175 = vst [vmem:[%s16050_s26 + $0xf0] sm:$0xff] %v14840_v18 }
 0x78f   : > { %v14891_v25 = vpop.f32.mrf.mxu3  ;;  %v14963_v33 = vpop.f32.mrf.mxu2 }
 0x790   : > { %v14892_v28 = vadd.f32 %v14891_v25, %v14866_v29 }
 0x792   : > { %v14916_v3 = vadd.f32 %v14915_v7, %v14892_v28 }
 0x794   : > { %v14940_v24 = vadd.f32 %v14939_v48, %v14916_v3 }
 0x796   : > { %v14964_v50 = vadd.f32 %v14963_v33, %v14940_v24 }
 0x797   : > { %v14985_v49 = vpop.f32.mrf.mxu3 }
 0x798   : > { %v14986_v44 = vadd.f32 %v14985_v49, %v14964_v50 }
 0x79a   : > { %15176 = vst [vmem:[%s16050_s26 + $0xf8] sm:$0xff] %v14986_v44 }
 0x79b   : > { %15316 = shalt.err (!%p15313_p0)
}
 0x79c   : > { %s15378_s9 = smov 512   ;;  %s15379_s26 = smov 32  }
 0x79d   : > { %15187 = dma.vmem_to_hbm [thread:$0]  (%p15476_p9), %s15009_s14, 4096, %s15011_s22, %s14994_s30, %s15378_s9, %s15378_s9, %s15379_s26  }
 0x79e PF: > { %s15025_s25 = sand.u32 1, %s15351_s27   ;;  %p15194_p1 = pnand %p15119_p12, %p15483_p11 }
 0x79f   : > { %s15026_s11 = scalar_lea.sflag [#allocation4], %s15025_s25 }
 0x7a0   : > { %p15195_p2 = pneg %p15194_p1 }
 0x7a2   : > { %15346 = dma.done.wait (%p15195_p2), %s15026_s11, 4096  }
 0x7a3   : > { %15348 = vsyncadd (%p15195_p2), %s15026_s11, 4294963200  ;;  %s24_s10 = sadd.s32 1, %s15371_s10   ;;  %s17328_s16 = sld [smem:[#allocation10_spill]] }
 0x7a4   : > { %p21_p3 = scmp.ge.s32.totalorder %s24_s10, 4   ;;  %s17329_s30 = sld [smem:[#allocation8_spill]] }
 0x7a5   : > { %s17330_s9 = sld [smem:[#allocation9_spill]]  ;;  %s17331_s27 = smov %s15355_s28 }
 0x7a6   : > { %s17332_s28 = smov %s15359_s29  ;;  %23 = sbr.rel (!%p21_p3) target bundleno = 6 (0x6), region = 137 }
 0x7a9   : > { %s17333_s29 = smov %s17328_s16 }
 0x7ab   :  { %15032 = vsyncpa [#allocation3], 1 }
 0x7ac   :  { %15034 = vsyncpa [#allocation3 + $0x1], 1 }
 0x7ad   :  { %15035 = vsyncpa [#allocation4], 1 }
 0x7ae   :  { %15037 = vsyncpa [#allocation4 + $0x1], 1 }

</bundles_post_ra>
